<compile_context>
chip_gen: v7x
topology: tpu7x:2x2x1
jax: 0.10.0
libtpu: 0.0.40
codegen_flags: <defaults>
</compile_context>

<pallas_src>
import jax
import jax.numpy as jnp
from jax.experimental import pallas as pl
from jax.experimental.pallas import tpu as pltpu


def _round_up(n, m):
    return ((n + m - 1) // m) * m


# ----------------------------- Pallas kernel -------------------------------

def _make_dpcnn_kernel(num_layers, Bt, L0, strides, Cp):
    """Fused DPCNN kernel.

    Activation layout at layer i: a 2-D (Bt*strides[i], Cp) tile where batch b's
    L_i valid rows live at rows [b*strides[i] + 2, b*strides[i] + 2 + L_i) and
    all other ("halo") rows are exactly zero.
    """
    Ls = [L0 >> i for i in range(num_layers)]

    def kernel(*refs):
        x_ref, cw_ref, cb_ref = refs[0], refs[1], refs[2]
        wrefs = refs[3:3 + 4 * num_layers]
        o_ref = refs[3 + 4 * num_layers]
        p_ref = refs[4 + 4 * num_layers]      # (Mh0+8, Cp) haloed staging scratch
        a_ref = refs[5 + 4 * num_layers]      # (Mh0, 5*Cp) fused-tap scratch

        def row_mask(S, L):
            # (Mh, Cp) bool: True at valid data rows of the stacked layout.
            Mh = Bt * S
            r = jax.lax.broadcasted_iota(jnp.int32, (Mh, Cp), 0)
            m = (r >= 2) & (r < 2 + L)
            for b in range(1, Bt):
                m = m | ((r >= b * S + 2) & (r < b * S + 2 + L))
            return m

        def conv5(act, wf_ref, b_ref, Mh, mask):
            # 'same' Conv1d(k=5, pad=2): one fused (Mh, 5*Cp) @ (5*Cp, Cp) dot.
            # `act` must have zero halo rows (guaranteed by callers).
            p_ref[2:2 + Mh, :] = act
            for k in range(5):
                a_ref[0:Mh, k * Cp:(k + 1) * Cp] = p_ref[k:k + Mh, :]
            out = jnp.dot(a_ref[0:Mh, :], wf_ref[...],
                          preferred_element_type=jnp.float32) + b_ref[...]
            # Re-zero halo rows (kills bias / cross-batch / guard-row garbage).
            return jnp.where(mask, out, 0.0)

        # Pointwise Conv1d(E -> H, k=1): one (Bt*S0, E) @ (E, Cp) dot.
        S, L = strides[0], Ls[0]
        Mh = Bt * S
        mask = row_mask(S, L)
        h = jnp.dot(x_ref[...], cw_ref[...],
                    preferred_element_type=jnp.float32) + cb_ref[...]
        h = jnp.where(mask, h, 0.0)

        for i in range(num_layers):
            wf1, b1, wf2, b2 = wrefs[4 * i:4 * i + 4]
            r = conv5(jnp.maximum(h, 0.0), wf1, b1, Mh, mask)
            r = conv5(jnp.maximum(r, 0.0), wf2, b2, Mh, mask)
            out = h + r                               # halo rows stay exactly zero

            if i < num_layers - 1:
                # MaxPool1d(2), floor mode.  One store + two global stride-2
                # reads (data rows start at even offsets, strides are even).
                p_ref[2:2 + Mh, :] = out
                half = Mh // 2
                ev = p_ref[pl.ds(2, half, stride=2), :]
                od = p_ref[pl.ds(3, half, stride=2), :]
                pooled = jnp.maximum(ev, od)          # pooled[m] = max(row 2m, 2m+1)

                # Restack into the next layer's (smaller-stride) haloed layout.
                S_new, L_new = strides[i + 1], Ls[i + 1]
                Mh_new = Bt * S_new
                p_ref[2:2 + Mh_new, :] = jnp.zeros((Mh_new, Cp), jnp.float32)
                for b in range(Bt):
                    src = b * (S // 2) + 1
                    dst = 2 + b * S_new + 2
                    p_ref[dst:dst + L_new, :] = pooled[src:src + L_new, :]
                h = p_ref[2:2 + Mh_new, :]
                S, L, Mh = S_new, L_new, Mh_new
                mask = row_mask(S, L)
            else:
                h = out

        o_ref[...] = h                                # (Bt*strides[-1], Cp), lane dense

    return kernel


# ------------------------------ wrapper -------------------------------------

def dpcnn_forward(x_bcl, params):
    """x_bcl: (B, embed_size, L) in the PyTorch Conv1d layout."""
    B, E, L0 = x_bcl.shape
    C = params["cnn_w"].shape[1]
    num_layers = len(params["blocks"])
    Cp = _round_up(C, 128)                            # lane-dense channel dim

    Ls = [L0 >> i for i in range(num_layers)]
    L_f = Ls[-1]
    assert L_f >= 1, "sequence length collapsed to zero"
    strides = [_round_up(L + 4, 8) for L in Ls]       # per-layer haloed stride
    S0, S_last = strides[0], strides[-1]

    # Batch folding: several batch elements per grid step so matmul M ~ Bt*L.
    Bt = max(1, min(B, max(1, 256 // S0)))
    while Bt > 1 and Bt * S0 > 1024:                  # keep fused-tap scratch modest
        Bt //= 2
    B_pad = _round_up(B, Bt)
    G = B_pad // Bt
    Mh0 = Bt * S0

    # (B, E, L) -> zero-haloed, batch-stacked (B_pad*S0, E) layout (halos done in XLA).
    x_ble = jnp.transpose(x_bcl, (0, 2, 1)).astype(jnp.float32)
    x_stack = jnp.pad(x_ble, ((0, B_pad - B), (2, S0 - 2 - L0), (0, 0)))
    x_stack = x_stack.reshape(B_pad * S0, E)

    # Lane-pad channels to Cp and fuse the 5 conv taps into one (5*Cp, Cp) matrix.
    cw = jnp.pad(params["cnn_w"].astype(jnp.float32), ((0, 0), (0, Cp - C)))
    cb = jnp.pad(params["cnn_b"].astype(jnp.float32).reshape(1, C),
                 ((0, 0), (0, Cp - C)))
    args = [x_stack, cw, cb]
    in_specs = [
        pl.BlockSpec((Bt * S0, E), lambda g: (g, 0)),
        pl.BlockSpec((E, Cp), lambda g: (0, 0)),
        pl.BlockSpec((1, Cp), lambda g: (0, 0)),
    ]
    for blk in params["blocks"]:
        for w, b in ((blk["w1"], blk["b1"]), (blk["w2"], blk["b2"])):
            wf = jnp.pad(w.astype(jnp.float32),
                         ((0, 0), (0, Cp - C), (0, Cp - C))).reshape(5 * Cp, Cp)
            bp = jnp.pad(b.astype(jnp.float32).reshape(1, C), ((0, 0), (0, Cp - C)))
            args += [wf, bp]
            in_specs += [pl.BlockSpec((5 * Cp, Cp), lambda g: (0, 0)),
                         pl.BlockSpec((1, Cp), lambda g: (0, 0))]

    # ---- VMEM budget: generous estimate, capped at 75% of physical VMEM ----
    def vbytes(rows, cols):
        return _round_up(max(rows, 1), 8) * _round_up(max(cols, 1), 128) * 4

    w_bytes = (vbytes(E, Cp) + vbytes(1, Cp)
               + num_layers * 2 * (vbytes(5 * Cp, Cp) + vbytes(1, Cp)))
    io_bytes = 2 * vbytes(Bt * S0, E) + 2 * vbytes(Bt * S_last, Cp)
    scr_bytes = vbytes(Mh0 + 8, Cp) + vbytes(Mh0, 5 * Cp)
    live_bytes = 8 * vbytes(Mh0, Cp) + 2 * vbytes(Mh0, 5 * Cp)
    need = 2 * w_bytes + io_bytes + scr_bytes + live_bytes
    try:
        cap = int(pltpu.get_tpu_info().vmem_capacity_bytes)
    except Exception:
        cap = 64 * 2 ** 20                            # v7x floor
    vmem_limit = int(min(max(2 * need, 16 * 2 ** 20), (3 * cap) // 4))

    # ---- advisory cost estimate for XLA scheduling around the custom call ----
    flops = 2 * B_pad * S0 * E * Cp
    for i in range(num_layers):
        flops += 2 * (2 * B_pad * strides[i] * (5 * Cp) * Cp)
    bytes_accessed = 4 * (sum(int(a.size) for a in args) + B_pad * S_last * Cp)
    cost = pl.CostEstimate(flops=int(flops), transcendentals=0,
                           bytes_accessed=int(bytes_accessed))

    out = pl.pallas_call(
        _make_dpcnn_kernel(num_layers, Bt, L0, strides, Cp),
        out_shape=jax.ShapeDtypeStruct((B_pad * S_last, Cp), jnp.float32),
        grid=(G,),
        in_specs=in_specs,
        out_specs=pl.BlockSpec((Bt * S_last, Cp), lambda g: (g, 0)),
        scratch_shapes=[pltpu.VMEM((Mh0 + 8, Cp), jnp.float32),
                        pltpu.VMEM((Mh0, 5 * Cp), jnp.float32)],
        compiler_params=pltpu.CompilerParams(
            dimension_semantics=("parallel",),
            vmem_limit_bytes=vmem_limit),
        cost_estimate=cost,
    )(*args)

    out = out.reshape(B_pad, S_last, Cp)[:B, 2:2 + L_f, :C]   # (B, L_f, C)
    if L_f == 1:                                              # torch .squeeze(-1)
        return out[:, 0, :]
    return jnp.transpose(out, (0, 2, 1))                      # -> (B, hidden, L_f)


# ----------------------- deterministic parameter init ----------------------

def init_params(key, embed_size, hidden_size, num_layers):
    def uniform(k, shape, fan_in):
        bound = 1.0 / (fan_in ** 0.5)
        return jax.random.uniform(k, shape, jnp.float32, -bound, bound)

    keys = jax.random.split(key, 2 + 4 * num_layers)
    params = {
        # stored as (E, H) == torch weight (H, E, 1) transposed
        "cnn_w": uniform(keys[0], (embed_size, hidden_size), embed_size),
        "cnn_b": uniform(keys[1], (hidden_size,), embed_size),
        "blocks": [],
    }
    C, K = hidden_size, 5
    for i in range(num_layers):
        k = keys[2 + 4 * i: 6 + 4 * i]
        params["blocks"].append({
            # stored as (K, C_in, C_out) == torch weight (C_out, C_in, K) transposed
            "w1": uniform(k[0], (K, C, C), C * K),
            "b1": uniform(k[1], (C,), C * K),
            "w2": uniform(k[2], (K, C, C), C * K),
            "b2": uniform(k[3], (C,), C * K),
        })
    return params


# ----------------------------- pure-JAX reference --------------------------

def ref_forward(x_bcl, params):
    def conv1d(x, w, b, pad):
        y = jax.lax.conv_general_dilated(
            x, w, window_strides=(1,), padding=[(pad, pad)],
            dimension_numbers=("NCH", "OIH", "NCH"))
        return y + b[None, :, None]

    w_cnn = params["cnn_w"].T[:, :, None]                    # (H, E, 1)
    h = conv1d(x_bcl, w_cnn, params["cnn_b"], 0)
    n = len(params["blocks"])
    for i, blk in enumerate(params["blocks"]):
        w1 = jnp.transpose(blk["w1"], (2, 1, 0))             # -> (C_out, C_in, K)
        w2 = jnp.transpose(blk["w2"], (2, 1, 0))
        r = jax.nn.relu(h)
        r = conv1d(r, w1, blk["b1"], 2)
        r = jax.nn.relu(r)
        r = conv1d(r, w2, blk["b2"], 2)
        out = h + r
        if i < n - 1:                                        # MaxPool1d(2)
            B, C, L = out.shape
            out = out[:, :, :2 * (L // 2)].reshape(B, C, L // 2, 2).max(axis=-1)
        h = out
    if h.shape[-1] == 1:
        h = jnp.squeeze(h, axis=-1)
    return h


# --------------------------------- main -------------------------------------

if __name__ == "__main__":
    B, embed_size, hidden_size, num_layers, L = 2, 8, 32, 3, 16
    key = jax.random.PRNGKey(0)
    kx, kp = jax.random.split(key)
    x = jax.random.normal(kx, (B, embed_size, L), jnp.float32)
    params = init_params(kp, embed_size, hidden_size, num_layers)

    out = jax.block_until_ready(dpcnn_forward(x, params))    # fused Pallas kernel
    ref = jax.block_until_ready(ref_forward(x, params))      # pure-JAX reference

    assert out.shape == ref.shape, (out.shape, ref.shape)
    max_err = float(jnp.max(jnp.abs(out - ref)))
    assert max_err < 1e-4, max_err
    print("KERNEL_OK")
</pallas_src>

<mosaic_0001>
module attributes {stable_mosaic.version = 11 : i64} {
  func.func @kernel(%arg0: i32, %arg1: memref<48x8xf32, #tpu.memory_space<vmem>>, %arg2: memref<8x128xf32, #tpu.memory_space<vmem>>, %arg3: memref<1x128xf32, #tpu.memory_space<vmem>>, %arg4: memref<640x128xf32, #tpu.memory_space<vmem>>, %arg5: memref<1x128xf32, #tpu.memory_space<vmem>>, %arg6: memref<640x128xf32, #tpu.memory_space<vmem>>, %arg7: memref<1x128xf32, #tpu.memory_space<vmem>>, %arg8: memref<640x128xf32, #tpu.memory_space<vmem>>, %arg9: memref<1x128xf32, #tpu.memory_space<vmem>>, %arg10: memref<640x128xf32, #tpu.memory_space<vmem>>, %arg11: memref<1x128xf32, #tpu.memory_space<vmem>>, %arg12: memref<640x128xf32, #tpu.memory_space<vmem>>, %arg13: memref<1x128xf32, #tpu.memory_space<vmem>>, %arg14: memref<640x128xf32, #tpu.memory_space<vmem>>, %arg15: memref<1x128xf32, #tpu.memory_space<vmem>>, %arg16: memref<16x128xf32, #tpu.memory_space<vmem>>, %arg17: memref<56x128xf32, #tpu.memory_space<vmem>>, %arg18: memref<48x640xf32, #tpu.memory_space<vmem>>) attributes {dimension_semantics = [#tpu.dimension_semantics<parallel>], iteration_bounds = array<i64: 1>, scalar_prefetch = 0 : i64, scratch_operands = 2 : i64, tpu.core_type = #tpu.core_type<tc>, window_params = [{transform_indices = @transform_0, window_bounds = array<i64: 48, 8>}, {pipeline_mode = #tpu.pipeline_mode<synchronous>, transform_indices = @transform_1, window_bounds = array<i64: 8, 128>}, {pipeline_mode = #tpu.pipeline_mode<synchronous>, transform_indices = @transform_2, window_bounds = array<i64: 1, 128>}, {pipeline_mode = #tpu.pipeline_mode<synchronous>, transform_indices = @transform_3, window_bounds = array<i64: 640, 128>}, {pipeline_mode = #tpu.pipeline_mode<synchronous>, transform_indices = @transform_4, window_bounds = array<i64: 1, 128>}, {pipeline_mode = #tpu.pipeline_mode<synchronous>, transform_indices = @transform_5, window_bounds = array<i64: 640, 128>}, {pipeline_mode = #tpu.pipeline_mode<synchronous>, transform_indices = @transform_6, window_bounds = array<i64: 1, 128>}, {pipeline_mode = #tpu.pipeline_mode<synchronous>, transform_indices = @transform_7, window_bounds = array<i64: 640, 128>}, {pipeline_mode = #tpu.pipeline_mode<synchronous>, transform_indices = @transform_8, window_bounds = array<i64: 1, 128>}, {pipeline_mode = #tpu.pipeline_mode<synchronous>, transform_indices = @transform_9, window_bounds = array<i64: 640, 128>}, {pipeline_mode = #tpu.pipeline_mode<synchronous>, transform_indices = @transform_10, window_bounds = array<i64: 1, 128>}, {pipeline_mode = #tpu.pipeline_mode<synchronous>, transform_indices = @transform_11, window_bounds = array<i64: 640, 128>}, {pipeline_mode = #tpu.pipeline_mode<synchronous>, transform_indices = @transform_12, window_bounds = array<i64: 1, 128>}, {pipeline_mode = #tpu.pipeline_mode<synchronous>, transform_indices = @transform_13, window_bounds = array<i64: 640, 128>}, {pipeline_mode = #tpu.pipeline_mode<synchronous>, transform_indices = @transform_14, window_bounds = array<i64: 1, 128>}, {transform_indices = @transform_15, window_bounds = array<i64: 16, 128>}]} {
    %0 = tpu.iota {dimensions = array<i32: 0>} : vector<48x128xi32>
    %c2_i32 = arith.constant 2 : i32
    %1 = vector.broadcast %c2_i32 : i32 to vector<48x128xi32>
    %2 = arith.cmpi sge, %0, %1 : vector<48x128xi32>
    %c18_i32 = arith.constant 18 : i32
    %3 = vector.broadcast %c18_i32 : i32 to vector<48x128xi32>
    %4 = arith.cmpi slt, %0, %3 : vector<48x128xi32>
    %5 = arith.andi %2, %4 : vector<48x128xi1>
    %c26_i32 = arith.constant 26 : i32
    %6 = vector.broadcast %c26_i32 : i32 to vector<48x128xi32>
    %7 = arith.cmpi sge, %0, %6 : vector<48x128xi32>
    %c42_i32 = arith.constant 42 : i32
    %8 = vector.broadcast %c42_i32 : i32 to vector<48x128xi32>
    %9 = arith.cmpi slt, %0, %8 : vector<48x128xi32>
    %10 = arith.andi %7, %9 : vector<48x128xi1>
    %11 = arith.ori %5, %10 : vector<48x128xi1>
    %c0 = arith.constant 0 : index
    %c0_0 = arith.constant 0 : index
    %12 = vector.load %arg1[%c0, %c0_0] : memref<48x8xf32, #tpu.memory_space<vmem>>, vector<48x8xf32>
    %c0_1 = arith.constant 0 : index
    %c0_2 = arith.constant 0 : index
    %13 = vector.load %arg2[%c0_1, %c0_2] : memref<8x128xf32, #tpu.memory_space<vmem>>, vector<8x128xf32>
    %cst = arith.constant dense<0.000000e+00> : vector<48x128xf32>
    %14 = tpu.matmul %12, %13, %cst {dimension_numbers = #tpu.dot_dimension_numbers<[1], [0], [0], [1], [0, 0, 1, 1], [], []>} : vector<48x8xf32>, vector<8x128xf32>, vector<48x128xf32> -> vector<48x128xf32>
    %c0_3 = arith.constant 0 : index
    %c0_4 = arith.constant 0 : index
    %15 = vector.load %arg3[%c0_3, %c0_4] : memref<1x128xf32, #tpu.memory_space<vmem>>, vector<1x128xf32>
    %16 = vector.broadcast %15 : vector<1x128xf32> to vector<48x128xf32>
    %17 = arith.addf %14, %16 : vector<48x128xf32>
    %cst_5 = arith.constant 0.000000e+00 : f32
    %18 = vector.broadcast %cst_5 : f32 to vector<48x128xf32>
    %19 = arith.select %11, %17, %18 : vector<48x128xi1>, vector<48x128xf32>
    %cst_6 = arith.constant 0.000000e+00 : f32
    %20 = vector.broadcast %cst_6 : f32 to vector<48x128xf32>
    %21 = arith.maximumf %19, %20 : vector<48x128xf32>
    %c2 = arith.constant 2 : index
    %c0_7 = arith.constant 0 : index
    %22 = vector.load %arg17[%c2, %c0_7] : memref<56x128xf32, #tpu.memory_space<vmem>>, vector<48x128xf32>
    tpu.vector_store %arg17[%c2, %c0_7], %21 {strides = array<i32>} : memref<56x128xf32, #tpu.memory_space<vmem>>, vector<48x128xf32>,
    %c0_8 = arith.constant 0 : index
    %c0_9 = arith.constant 0 : index
    %23 = vector.load %arg17[%c0_8, %c0_9] : memref<56x128xf32, #tpu.memory_space<vmem>>, vector<48x128xf32>
    %c0_10 = arith.constant 0 : index
    %c0_11 = arith.constant 0 : index
    %24 = vector.load %arg18[%c0_10, %c0_11] : memref<48x640xf32, #tpu.memory_space<vmem>>, vector<48x128xf32>
    tpu.vector_store %arg18[%c0_10, %c0_11], %23 {strides = array<i32>} : memref<48x640xf32, #tpu.memory_space<vmem>>, vector<48x128xf32>,
    %c1 = arith.constant 1 : index
    %c0_12 = arith.constant 0 : index
    %25 = vector.load %arg17[%c1, %c0_12] : memref<56x128xf32, #tpu.memory_space<vmem>>, vector<48x128xf32>
    %c0_13 = arith.constant 0 : index
    %c128 = arith.constant 128 : index
    %26 = vector.load %arg18[%c0_13, %c128] : memref<48x640xf32, #tpu.memory_space<vmem>>, vector<48x128xf32>
    tpu.vector_store %arg18[%c0_13, %c128], %25 {strides = array<i32>} : memref<48x640xf32, #tpu.memory_space<vmem>>, vector<48x128xf32>,
    %c2_14 = arith.constant 2 : index
    %c0_15 = arith.constant 0 : index
    %27 = vector.load %arg17[%c2_14, %c0_15] : memref<56x128xf32, #tpu.memory_space<vmem>>, vector<48x128xf32>
    %c0_16 = arith.constant 0 : index
    %c256 = arith.constant 256 : index
    %28 = vector.load %arg18[%c0_16, %c256] : memref<48x640xf32, #tpu.memory_space<vmem>>, vector<48x128xf32>
    tpu.vector_store %arg18[%c0_16, %c256], %27 {strides = array<i32>} : memref<48x640xf32, #tpu.memory_space<vmem>>, vector<48x128xf32>,
    %c3 = arith.constant 3 : index
    %c0_17 = arith.constant 0 : index
    %29 = vector.load %arg17[%c3, %c0_17] : memref<56x128xf32, #tpu.memory_space<vmem>>, vector<48x128xf32>
    %c0_18 = arith.constant 0 : index
    %c384 = arith.constant 384 : index
    %30 = vector.load %arg18[%c0_18, %c384] : memref<48x640xf32, #tpu.memory_space<vmem>>, vector<48x128xf32>
    tpu.vector_store %arg18[%c0_18, %c384], %29 {strides = array<i32>} : memref<48x640xf32, #tpu.memory_space<vmem>>, vector<48x128xf32>,
    %c4 = arith.constant 4 : index
    %c0_19 = arith.constant 0 : index
    %31 = vector.load %arg17[%c4, %c0_19] : memref<56x128xf32, #tpu.memory_space<vmem>>, vector<48x128xf32>
    %c0_20 = arith.constant 0 : index
    %c512 = arith.constant 512 : index
    %32 = vector.load %arg18[%c0_20, %c512] : memref<48x640xf32, #tpu.memory_space<vmem>>, vector<48x128xf32>
    tpu.vector_store %arg18[%c0_20, %c512], %31 {strides = array<i32>} : memref<48x640xf32, #tpu.memory_space<vmem>>, vector<48x128xf32>,
    %c0_21 = arith.constant 0 : index
    %c0_22 = arith.constant 0 : index
    %33 = vector.load %arg18[%c0_21, %c0_22] : memref<48x640xf32, #tpu.memory_space<vmem>>, vector<48x640xf32>
    %c0_23 = arith.constant 0 : index
    %c0_24 = arith.constant 0 : index
    %34 = vector.load %arg4[%c0_23, %c0_24] : memref<640x128xf32, #tpu.memory_space<vmem>>, vector<640x128xf32>
    %cst_25 = arith.constant dense<0.000000e+00> : vector<48x128xf32>
    %35 = tpu.matmul %33, %34, %cst_25 {dimension_numbers = #tpu.dot_dimension_numbers<[1], [0], [0], [1], [0, 0, 1, 1], [], []>} : vector<48x640xf32>, vector<640x128xf32>, vector<48x128xf32> -> vector<48x128xf32>
    %c0_26 = arith.constant 0 : index
    %c0_27 = arith.constant 0 : index
    %36 = vector.load %arg5[%c0_26, %c0_27] : memref<1x128xf32, #tpu.memory_space<vmem>>, vector<1x128xf32>
    %37 = vector.broadcast %36 : vector<1x128xf32> to vector<48x128xf32>
    %38 = arith.addf %35, %37 : vector<48x128xf32>
    %cst_28 = arith.constant 0.000000e+00 : f32
    %39 = vector.broadcast %cst_28 : f32 to vector<48x128xf32>
    %40 = arith.select %11, %38, %39 : vector<48x128xi1>, vector<48x128xf32>
    %cst_29 = arith.constant 0.000000e+00 : f32
    %41 = vector.broadcast %cst_29 : f32 to vector<48x128xf32>
    %42 = arith.maximumf %40, %41 : vector<48x128xf32>
    %c2_30 = arith.constant 2 : index
    %c0_31 = arith.constant 0 : index
    %43 = vector.load %arg17[%c2_30, %c0_31] : memref<56x128xf32, #tpu.memory_space<vmem>>, vector<48x128xf32>
    tpu.vector_store %arg17[%c2_30, %c0_31], %42 {strides = array<i32>} : memref<56x128xf32, #tpu.memory_space<vmem>>, vector<48x128xf32>,
    %c0_32 = arith.constant 0 : index
    %c0_33 = arith.constant 0 : index
    %44 = vector.load %arg17[%c0_32, %c0_33] : memref<56x128xf32, #tpu.memory_space<vmem>>, vector<48x128xf32>
    %c0_34 = arith.constant 0 : index
    %c0_35 = arith.constant 0 : index
    %45 = vector.load %arg18[%c0_34, %c0_35] : memref<48x640xf32, #tpu.memory_space<vmem>>, vector<48x128xf32>
    tpu.vector_store %arg18[%c0_34, %c0_35], %44 {strides = array<i32>} : memref<48x640xf32, #tpu.memory_space<vmem>>, vector<48x128xf32>,
    %c1_36 = arith.constant 1 : index
    %c0_37 = arith.constant 0 : index
    %46 = vector.load %arg17[%c1_36, %c0_37] : memref<56x128xf32, #tpu.memory_space<vmem>>, vector<48x128xf32>
    %c0_38 = arith.constant 0 : index
    %c128_39 = arith.constant 128 : index
    %47 = vector.load %arg18[%c0_38, %c128_39] : memref<48x640xf32, #tpu.memory_space<vmem>>, vector<48x128xf32>
    tpu.vector_store %arg18[%c0_38, %c128_39], %46 {strides = array<i32>} : memref<48x640xf32, #tpu.memory_space<vmem>>, vector<48x128xf32>,
    %c2_40 = arith.constant 2 : index
    %c0_41 = arith.constant 0 : index
    %48 = vector.load %arg17[%c2_40, %c0_41] : memref<56x128xf32, #tpu.memory_space<vmem>>, vector<48x128xf32>
    %c0_42 = arith.constant 0 : index
    %c256_43 = arith.constant 256 : index
    %49 = vector.load %arg18[%c0_42, %c256_43] : memref<48x640xf32, #tpu.memory_space<vmem>>, vector<48x128xf32>
    tpu.vector_store %arg18[%c0_42, %c256_43], %48 {strides = array<i32>} : memref<48x640xf32, #tpu.memory_space<vmem>>, vector<48x128xf32>,
    %c3_44 = arith.constant 3 : index
    %c0_45 = arith.constant 0 : index
    %50 = vector.load %arg17[%c3_44, %c0_45] : memref<56x128xf32, #tpu.memory_space<vmem>>, vector<48x128xf32>
    %c0_46 = arith.constant 0 : index
    %c384_47 = arith.constant 384 : index
    %51 = vector.load %arg18[%c0_46, %c384_47] : memref<48x640xf32, #tpu.memory_space<vmem>>, vector<48x128xf32>
    tpu.vector_store %arg18[%c0_46, %c384_47], %50 {strides = array<i32>} : memref<48x640xf32, #tpu.memory_space<vmem>>, vector<48x128xf32>,
    %c4_48 = arith.constant 4 : index
    %c0_49 = arith.constant 0 : index
    %52 = vector.load %arg17[%c4_48, %c0_49] : memref<56x128xf32, #tpu.memory_space<vmem>>, vector<48x128xf32>
    %c0_50 = arith.constant 0 : index
    %c512_51 = arith.constant 512 : index
    %53 = vector.load %arg18[%c0_50, %c512_51] : memref<48x640xf32, #tpu.memory_space<vmem>>, vector<48x128xf32>
    tpu.vector_store %arg18[%c0_50, %c512_51], %52 {strides = array<i32>} : memref<48x640xf32, #tpu.memory_space<vmem>>, vector<48x128xf32>,
    %c0_52 = arith.constant 0 : index
    %c0_53 = arith.constant 0 : index
    %54 = vector.load %arg18[%c0_52, %c0_53] : memref<48x640xf32, #tpu.memory_space<vmem>>, vector<48x640xf32>
    %c0_54 = arith.constant 0 : index
    %c0_55 = arith.constant 0 : index
    %55 = vector.load %arg6[%c0_54, %c0_55] : memref<640x128xf32, #tpu.memory_space<vmem>>, vector<640x128xf32>
    %cst_56 = arith.constant dense<0.000000e+00> : vector<48x128xf32>
    %56 = tpu.matmul %54, %55, %cst_56 {dimension_numbers = #tpu.dot_dimension_numbers<[1], [0], [0], [1], [0, 0, 1, 1], [], []>} : vector<48x640xf32>, vector<640x128xf32>, vector<48x128xf32> -> vector<48x128xf32>
    %c0_57 = arith.constant 0 : index
    %c0_58 = arith.constant 0 : index
    %57 = vector.load %arg7[%c0_57, %c0_58] : memref<1x128xf32, #tpu.memory_space<vmem>>, vector<1x128xf32>
    %58 = vector.broadcast %57 : vector<1x128xf32> to vector<48x128xf32>
    %59 = arith.addf %56, %58 : vector<48x128xf32>
    %cst_59 = arith.constant 0.000000e+00 : f32
    %60 = vector.broadcast %cst_59 : f32 to vector<48x128xf32>
    %61 = arith.select %11, %59, %60 : vector<48x128xi1>, vector<48x128xf32>
    %62 = arith.addf %19, %61 : vector<48x128xf32>
    %c2_60 = arith.constant 2 : index
    %c0_61 = arith.constant 0 : index
    %63 = vector.load %arg17[%c2_60, %c0_61] : memref<56x128xf32, #tpu.memory_space<vmem>>, vector<48x128xf32>
    tpu.vector_store %arg17[%c2_60, %c0_61], %62 {strides = array<i32>} : memref<56x128xf32, #tpu.memory_space<vmem>>, vector<48x128xf32>,
    %c2_62 = arith.constant 2 : index
    %c0_63 = arith.constant 0 : index
    %64 = tpu.strided_load %arg17[%c2_62, %c0_63] {strides = array<i32: 2, 1>} : memref<56x128xf32, #tpu.memory_space<vmem>>, vector<24x128xf32>
    %c3_64 = arith.constant 3 : index
    %c0_65 = arith.constant 0 : index
    %65 = tpu.strided_load %arg17[%c3_64, %c0_65] {strides = array<i32: 2, 1>} : memref<56x128xf32, #tpu.memory_space<vmem>>, vector<24x128xf32>
    %66 = arith.maximumf %64, %65 : vector<24x128xf32>
    %cst_66 = arith.constant 0.000000e+00 : f32
    %67 = vector.broadcast %cst_66 : f32 to vector<32x128xf32>
    %c2_67 = arith.constant 2 : index
    %c0_68 = arith.constant 0 : index
    %68 = vector.load %arg17[%c2_67, %c0_68] : memref<56x128xf32, #tpu.memory_space<vmem>>, vector<32x128xf32>
    tpu.vector_store %arg17[%c2_67, %c0_68], %67 {strides = array<i32>} : memref<56x128xf32, #tpu.memory_space<vmem>>, vector<32x128xf32>,
    %69 = vector.extract_strided_slice %66 {offsets = [1, 0], sizes = [8, 128], strides = [1, 1]} : vector<24x128xf32> to vector<8x128xf32>
    %c4_69 = arith.constant 4 : index
    %c0_70 = arith.constant 0 : index
    %70 = vector.load %arg17[%c4_69, %c0_70] : memref<56x128xf32, #tpu.memory_space<vmem>>, vector<8x128xf32>
    tpu.vector_store %arg17[%c4_69, %c0_70], %69 {strides = array<i32>} : memref<56x128xf32, #tpu.memory_space<vmem>>, vector<8x128xf32>,
    %71 = vector.extract_strided_slice %66 {offsets = [13, 0], sizes = [8, 128], strides = [1, 1]} : vector<24x128xf32> to vector<8x128xf32>
    %c20 = arith.constant 20 : index
    %c0_71 = arith.constant 0 : index
    %72 = vector.load %arg17[%c20, %c0_71] : memref<56x128xf32, #tpu.memory_space<vmem>>, vector<8x128xf32>
    tpu.vector_store %arg17[%c20, %c0_71], %71 {strides = array<i32>} : memref<56x128xf32, #tpu.memory_space<vmem>>, vector<8x128xf32>,
    %c2_72 = arith.constant 2 : index
    %c0_73 = arith.constant 0 : index
    %73 = vector.load %arg17[%c2_72, %c0_73] : memref<56x128xf32, #tpu.memory_space<vmem>>, vector<32x128xf32>
    %74 = tpu.iota {dimensions = array<i32: 0>} : vector<32x128xi32>
    %c2_i32_74 = arith.constant 2 : i32
    %75 = vector.broadcast %c2_i32_74 : i32 to vector<32x128xi32>
    %76 = arith.cmpi sge, %74, %75 : vector<32x128xi32>
    %c10_i32 = arith.constant 10 : i32
    %77 = vector.broadcast %c10_i32 : i32 to vector<32x128xi32>
    %78 = arith.cmpi slt, %74, %77 : vector<32x128xi32>
    %79 = arith.andi %76, %78 : vector<32x128xi1>
    %c18_i32_75 = arith.constant 18 : i32
    %80 = vector.broadcast %c18_i32_75 : i32 to vector<32x128xi32>
    %81 = arith.cmpi sge, %74, %80 : vector<32x128xi32>
    %c26_i32_76 = arith.constant 26 : i32
    %82 = vector.broadcast %c26_i32_76 : i32 to vector<32x128xi32>
    %83 = arith.cmpi slt, %74, %82 : vector<32x128xi32>
    %84 = arith.andi %81, %83 : vector<32x128xi1>
    %85 = arith.ori %79, %84 : vector<32x128xi1>
    %cst_77 = arith.constant 0.000000e+00 : f32
    %86 = vector.broadcast %cst_77 : f32 to vector<32x128xf32>
    %87 = arith.maximumf %73, %86 : vector<32x128xf32>
    %c2_78 = arith.constant 2 : index
    %c0_79 = arith.constant 0 : index
    %88 = vector.load %arg17[%c2_78, %c0_79] : memref<56x128xf32, #tpu.memory_space<vmem>>, vector<32x128xf32>
    tpu.vector_store %arg17[%c2_78, %c0_79], %87 {strides = array<i32>} : memref<56x128xf32, #tpu.memory_space<vmem>>, vector<32x128xf32>,
    %c0_80 = arith.constant 0 : index
    %c0_81 = arith.constant 0 : index
    %89 = vector.load %arg17[%c0_80, %c0_81] : memref<56x128xf32, #tpu.memory_space<vmem>>, vector<32x128xf32>
    %c0_82 = arith.constant 0 : index
    %c0_83 = arith.constant 0 : index
    %90 = vector.load %arg18[%c0_82, %c0_83] : memref<48x640xf32, #tpu.memory_space<vmem>>, vector<32x128xf32>
    tpu.vector_store %arg18[%c0_82, %c0_83], %89 {strides = array<i32>} : memref<48x640xf32, #tpu.memory_space<vmem>>, vector<32x128xf32>,
    %c1_84 = arith.constant 1 : index
    %c0_85 = arith.constant 0 : index
    %91 = vector.load %arg17[%c1_84, %c0_85] : memref<56x128xf32, #tpu.memory_space<vmem>>, vector<32x128xf32>
    %c0_86 = arith.constant 0 : index
    %c128_87 = arith.constant 128 : index
    %92 = vector.load %arg18[%c0_86, %c128_87] : memref<48x640xf32, #tpu.memory_space<vmem>>, vector<32x128xf32>
    tpu.vector_store %arg18[%c0_86, %c128_87], %91 {strides = array<i32>} : memref<48x640xf32, #tpu.memory_space<vmem>>, vector<32x128xf32>,
    %c2_88 = arith.constant 2 : index
    %c0_89 = arith.constant 0 : index
    %93 = vector.load %arg17[%c2_88, %c0_89] : memref<56x128xf32, #tpu.memory_space<vmem>>, vector<32x128xf32>
    %c0_90 = arith.constant 0 : index
    %c256_91 = arith.constant 256 : index
    %94 = vector.load %arg18[%c0_90, %c256_91] : memref<48x640xf32, #tpu.memory_space<vmem>>, vector<32x128xf32>
    tpu.vector_store %arg18[%c0_90, %c256_91], %93 {strides = array<i32>} : memref<48x640xf32, #tpu.memory_space<vmem>>, vector<32x128xf32>,
    %c3_92 = arith.constant 3 : index
    %c0_93 = arith.constant 0 : index
    %95 = vector.load %arg17[%c3_92, %c0_93] : memref<56x128xf32, #tpu.memory_space<vmem>>, vector<32x128xf32>
    %c0_94 = arith.constant 0 : index
    %c384_95 = arith.constant 384 : index
    %96 = vector.load %arg18[%c0_94, %c384_95] : memref<48x640xf32, #tpu.memory_space<vmem>>, vector<32x128xf32>
    tpu.vector_store %arg18[%c0_94, %c384_95], %95 {strides = array<i32>} : memref<48x640xf32, #tpu.memory_space<vmem>>, vector<32x128xf32>,
    %c4_96 = arith.constant 4 : index
    %c0_97 = arith.constant 0 : index
    %97 = vector.load %arg17[%c4_96, %c0_97] : memref<56x128xf32, #tpu.memory_space<vmem>>, vector<32x128xf32>
    %c0_98 = arith.constant 0 : index
    %c512_99 = arith.constant 512 : index
    %98 = vector.load %arg18[%c0_98, %c512_99] : memref<48x640xf32, #tpu.memory_space<vmem>>, vector<32x128xf32>
    tpu.vector_store %arg18[%c0_98, %c512_99], %97 {strides = array<i32>} : memref<48x640xf32, #tpu.memory_space<vmem>>, vector<32x128xf32>,
    %c0_100 = arith.constant 0 : index
    %c0_101 = arith.constant 0 : index
    %99 = vector.load %arg18[%c0_100, %c0_101] : memref<48x640xf32, #tpu.memory_space<vmem>>, vector<32x640xf32>
    %c0_102 = arith.constant 0 : index
    %c0_103 = arith.constant 0 : index
    %100 = vector.load %arg8[%c0_102, %c0_103] : memref<640x128xf32, #tpu.memory_space<vmem>>, vector<640x128xf32>
    %cst_104 = arith.constant dense<0.000000e+00> : vector<32x128xf32>
    %101 = tpu.matmul %99, %100, %cst_104 {dimension_numbers = #tpu.dot_dimension_numbers<[1], [0], [0], [1], [0, 0, 1, 1], [], []>} : vector<32x640xf32>, vector<640x128xf32>, vector<32x128xf32> -> vector<32x128xf32>
    %c0_105 = arith.constant 0 : index
    %c0_106 = arith.constant 0 : index
    %102 = vector.load %arg9[%c0_105, %c0_106] : memref<1x128xf32, #tpu.memory_space<vmem>>, vector<1x128xf32>
    %103 = vector.broadcast %102 : vector<1x128xf32> to vector<32x128xf32>
    %104 = arith.addf %101, %103 : vector<32x128xf32>
    %cst_107 = arith.constant 0.000000e+00 : f32
    %105 = vector.broadcast %cst_107 : f32 to vector<32x128xf32>
    %106 = arith.select %85, %104, %105 : vector<32x128xi1>, vector<32x128xf32>
    %cst_108 = arith.constant 0.000000e+00 : f32
    %107 = vector.broadcast %cst_108 : f32 to vector<32x128xf32>
    %108 = arith.maximumf %106, %107 : vector<32x128xf32>
    %c2_109 = arith.constant 2 : index
    %c0_110 = arith.constant 0 : index
    %109 = vector.load %arg17[%c2_109, %c0_110] : memref<56x128xf32, #tpu.memory_space<vmem>>, vector<32x128xf32>
    tpu.vector_store %arg17[%c2_109, %c0_110], %108 {strides = array<i32>} : memref<56x128xf32, #tpu.memory_space<vmem>>, vector<32x128xf32>,
    %c0_111 = arith.constant 0 : index
    %c0_112 = arith.constant 0 : index
    %110 = vector.load %arg17[%c0_111, %c0_112] : memref<56x128xf32, #tpu.memory_space<vmem>>, vector<32x128xf32>
    %c0_113 = arith.constant 0 : index
    %c0_114 = arith.constant 0 : index
    %111 = vector.load %arg18[%c0_113, %c0_114] : memref<48x640xf32, #tpu.memory_space<vmem>>, vector<32x128xf32>
    tpu.vector_store %arg18[%c0_113, %c0_114], %110 {strides = array<i32>} : memref<48x640xf32, #tpu.memory_space<vmem>>, vector<32x128xf32>,
    %c1_115 = arith.constant 1 : index
    %c0_116 = arith.constant 0 : index
    %112 = vector.load %arg17[%c1_115, %c0_116] : memref<56x128xf32, #tpu.memory_space<vmem>>, vector<32x128xf32>
    %c0_117 = arith.constant 0 : index
    %c128_118 = arith.constant 128 : index
    %113 = vector.load %arg18[%c0_117, %c128_118] : memref<48x640xf32, #tpu.memory_space<vmem>>, vector<32x128xf32>
    tpu.vector_store %arg18[%c0_117, %c128_118], %112 {strides = array<i32>} : memref<48x640xf32, #tpu.memory_space<vmem>>, vector<32x128xf32>,
    %c2_119 = arith.constant 2 : index
    %c0_120 = arith.constant 0 : index
    %114 = vector.load %arg17[%c2_119, %c0_120] : memref<56x128xf32, #tpu.memory_space<vmem>>, vector<32x128xf32>
    %c0_121 = arith.constant 0 : index
    %c256_122 = arith.constant 256 : index
    %115 = vector.load %arg18[%c0_121, %c256_122] : memref<48x640xf32, #tpu.memory_space<vmem>>, vector<32x128xf32>
    tpu.vector_store %arg18[%c0_121, %c256_122], %114 {strides = array<i32>} : memref<48x640xf32, #tpu.memory_space<vmem>>, vector<32x128xf32>,
    %c3_123 = arith.constant 3 : index
    %c0_124 = arith.constant 0 : index
    %116 = vector.load %arg17[%c3_123, %c0_124] : memref<56x128xf32, #tpu.memory_space<vmem>>, vector<32x128xf32>
    %c0_125 = arith.constant 0 : index
    %c384_126 = arith.constant 384 : index
    %117 = vector.load %arg18[%c0_125, %c384_126] : memref<48x640xf32, #tpu.memory_space<vmem>>, vector<32x128xf32>
    tpu.vector_store %arg18[%c0_125, %c384_126], %116 {strides = array<i32>} : memref<48x640xf32, #tpu.memory_space<vmem>>, vector<32x128xf32>,
    %c4_127 = arith.constant 4 : index
    %c0_128 = arith.constant 0 : index
    %118 = vector.load %arg17[%c4_127, %c0_128] : memref<56x128xf32, #tpu.memory_space<vmem>>, vector<32x128xf32>
    %c0_129 = arith.constant 0 : index
    %c512_130 = arith.constant 512 : index
    %119 = vector.load %arg18[%c0_129, %c512_130] : memref<48x640xf32, #tpu.memory_space<vmem>>, vector<32x128xf32>
    tpu.vector_store %arg18[%c0_129, %c512_130], %118 {strides = array<i32>} : memref<48x640xf32, #tpu.memory_space<vmem>>, vector<32x128xf32>,
    %c0_131 = arith.constant 0 : index
    %c0_132 = arith.constant 0 : index
    %120 = vector.load %arg18[%c0_131, %c0_132] : memref<48x640xf32, #tpu.memory_space<vmem>>, vector<32x640xf32>
    %c0_133 = arith.constant 0 : index
    %c0_134 = arith.constant 0 : index
    %121 = vector.load %arg10[%c0_133, %c0_134] : memref<640x128xf32, #tpu.memory_space<vmem>>, vector<640x128xf32>
    %cst_135 = arith.constant dense<0.000000e+00> : vector<32x128xf32>
    %122 = tpu.matmul %120, %121, %cst_135 {dimension_numbers = #tpu.dot_dimension_numbers<[1], [0], [0], [1], [0, 0, 1, 1], [], []>} : vector<32x640xf32>, vector<640x128xf32>, vector<32x128xf32> -> vector<32x128xf32>
    %c0_136 = arith.constant 0 : index
    %c0_137 = arith.constant 0 : index
    %123 = vector.load %arg11[%c0_136, %c0_137] : memref<1x128xf32, #tpu.memory_space<vmem>>, vector<1x128xf32>
    %124 = vector.broadcast %123 : vector<1x128xf32> to vector<32x128xf32>
    %125 = arith.addf %122, %124 : vector<32x128xf32>
    %cst_138 = arith.constant 0.000000e+00 : f32
    %126 = vector.broadcast %cst_138 : f32 to vector<32x128xf32>
    %127 = arith.select %85, %125, %126 : vector<32x128xi1>, vector<32x128xf32>
    %128 = arith.addf %73, %127 : vector<32x128xf32>
    %c2_139 = arith.constant 2 : index
    %c0_140 = arith.constant 0 : index
    %129 = vector.load %arg17[%c2_139, %c0_140] : memref<56x128xf32, #tpu.memory_space<vmem>>, vector<32x128xf32>
    tpu.vector_store %arg17[%c2_139, %c0_140], %128 {strides = array<i32>} : memref<56x128xf32, #tpu.memory_space<vmem>>, vector<32x128xf32>,
    %c2_141 = arith.constant 2 : index
    %c0_142 = arith.constant 0 : index
    %130 = tpu.strided_load %arg17[%c2_141, %c0_142] {strides = array<i32: 2, 1>} : memref<56x128xf32, #tpu.memory_space<vmem>>, vector<16x128xf32>
    %c3_143 = arith.constant 3 : index
    %c0_144 = arith.constant 0 : index
    %131 = tpu.strided_load %arg17[%c3_143, %c0_144] {strides = array<i32: 2, 1>} : memref<56x128xf32, #tpu.memory_space<vmem>>, vector<16x128xf32>
    %132 = arith.maximumf %130, %131 : vector<16x128xf32>
    %cst_145 = arith.constant 0.000000e+00 : f32
    %133 = vector.broadcast %cst_145 : f32 to vector<16x128xf32>
    %c2_146 = arith.constant 2 : index
    %c0_147 = arith.constant 0 : index
    %134 = vector.load %arg17[%c2_146, %c0_147] : memref<56x128xf32, #tpu.memory_space<vmem>>, vector<16x128xf32>
    tpu.vector_store %arg17[%c2_146, %c0_147], %133 {strides = array<i32>} : memref<56x128xf32, #tpu.memory_space<vmem>>, vector<16x128xf32>,
    %135 = vector.extract_strided_slice %132 {offsets = [1, 0], sizes = [4, 128], strides = [1, 1]} : vector<16x128xf32> to vector<4x128xf32>
    %c4_148 = arith.constant 4 : index
    %c0_149 = arith.constant 0 : index
    %136 = vector.load %arg17[%c4_148, %c0_149] : memref<56x128xf32, #tpu.memory_space<vmem>>, vector<4x128xf32>
    tpu.vector_store %arg17[%c4_148, %c0_149], %135 {strides = array<i32>} : memref<56x128xf32, #tpu.memory_space<vmem>>, vector<4x128xf32>,
    %137 = vector.extract_strided_slice %132 {offsets = [9, 0], sizes = [4, 128], strides = [1, 1]} : vector<16x128xf32> to vector<4x128xf32>
    %c12 = arith.constant 12 : index
    %c0_150 = arith.constant 0 : index
    %138 = vector.load %arg17[%c12, %c0_150] : memref<56x128xf32, #tpu.memory_space<vmem>>, vector<4x128xf32>
    tpu.vector_store %arg17[%c12, %c0_150], %137 {strides = array<i32>} : memref<56x128xf32, #tpu.memory_space<vmem>>, vector<4x128xf32>,
    %c2_151 = arith.constant 2 : index
    %c0_152 = arith.constant 0 : index
    %139 = vector.load %arg17[%c2_151, %c0_152] : memref<56x128xf32, #tpu.memory_space<vmem>>, vector<16x128xf32>
    %140 = tpu.iota {dimensions = array<i32: 0>} : vector<16x128xi32>
    %c2_i32_153 = arith.constant 2 : i32
    %141 = vector.broadcast %c2_i32_153 : i32 to vector<16x128xi32>
    %142 = arith.cmpi sge, %140, %141 : vector<16x128xi32>
    %c6_i32 = arith.constant 6 : i32
    %143 = vector.broadcast %c6_i32 : i32 to vector<16x128xi32>
    %144 = arith.cmpi slt, %140, %143 : vector<16x128xi32>
    %145 = arith.andi %142, %144 : vector<16x128xi1>
    %c10_i32_154 = arith.constant 10 : i32
    %146 = vector.broadcast %c10_i32_154 : i32 to vector<16x128xi32>
    %147 = arith.cmpi sge, %140, %146 : vector<16x128xi32>
    %c14_i32 = arith.constant 14 : i32
    %148 = vector.broadcast %c14_i32 : i32 to vector<16x128xi32>
    %149 = arith.cmpi slt, %140, %148 : vector<16x128xi32>
    %150 = arith.andi %147, %149 : vector<16x128xi1>
    %151 = arith.ori %145, %150 : vector<16x128xi1>
    %cst_155 = arith.constant 0.000000e+00 : f32
    %152 = vector.broadcast %cst_155 : f32 to vector<16x128xf32>
    %153 = arith.maximumf %139, %152 : vector<16x128xf32>
    %c2_156 = arith.constant 2 : index
    %c0_157 = arith.constant 0 : index
    %154 = vector.load %arg17[%c2_156, %c0_157] : memref<56x128xf32, #tpu.memory_space<vmem>>, vector<16x128xf32>
    tpu.vector_store %arg17[%c2_156, %c0_157], %153 {strides = array<i32>} : memref<56x128xf32, #tpu.memory_space<vmem>>, vector<16x128xf32>,
    %c0_158 = arith.constant 0 : index
    %c0_159 = arith.constant 0 : index
    %155 = vector.load %arg17[%c0_158, %c0_159] : memref<56x128xf32, #tpu.memory_space<vmem>>, vector<16x128xf32>
    %c0_160 = arith.constant 0 : index
    %c0_161 = arith.constant 0 : index
    %156 = vector.load %arg18[%c0_160, %c0_161] : memref<48x640xf32, #tpu.memory_space<vmem>>, vector<16x128xf32>
    tpu.vector_store %arg18[%c0_160, %c0_161], %155 {strides = array<i32>} : memref<48x640xf32, #tpu.memory_space<vmem>>, vector<16x128xf32>,
    %c1_162 = arith.constant 1 : index
    %c0_163 = arith.constant 0 : index
    %157 = vector.load %arg17[%c1_162, %c0_163] : memref<56x128xf32, #tpu.memory_space<vmem>>, vector<16x128xf32>
    %c0_164 = arith.constant 0 : index
    %c128_165 = arith.constant 128 : index
    %158 = vector.load %arg18[%c0_164, %c128_165] : memref<48x640xf32, #tpu.memory_space<vmem>>, vector<16x128xf32>
    tpu.vector_store %arg18[%c0_164, %c128_165], %157 {strides = array<i32>} : memref<48x640xf32, #tpu.memory_space<vmem>>, vector<16x128xf32>,
    %c2_166 = arith.constant 2 : index
    %c0_167 = arith.constant 0 : index
    %159 = vector.load %arg17[%c2_166, %c0_167] : memref<56x128xf32, #tpu.memory_space<vmem>>, vector<16x128xf32>
    %c0_168 = arith.constant 0 : index
    %c256_169 = arith.constant 256 : index
    %160 = vector.load %arg18[%c0_168, %c256_169] : memref<48x640xf32, #tpu.memory_space<vmem>>, vector<16x128xf32>
    tpu.vector_store %arg18[%c0_168, %c256_169], %159 {strides = array<i32>} : memref<48x640xf32, #tpu.memory_space<vmem>>, vector<16x128xf32>,
    %c3_170 = arith.constant 3 : index
    %c0_171 = arith.constant 0 : index
    %161 = vector.load %arg17[%c3_170, %c0_171] : memref<56x128xf32, #tpu.memory_space<vmem>>, vector<16x128xf32>
    %c0_172 = arith.constant 0 : index
    %c384_173 = arith.constant 384 : index
    %162 = vector.load %arg18[%c0_172, %c384_173] : memref<48x640xf32, #tpu.memory_space<vmem>>, vector<16x128xf32>
    tpu.vector_store %arg18[%c0_172, %c384_173], %161 {strides = array<i32>} : memref<48x640xf32, #tpu.memory_space<vmem>>, vector<16x128xf32>,
    %c4_174 = arith.constant 4 : index
    %c0_175 = arith.constant 0 : index
    %163 = vector.load %arg17[%c4_174, %c0_175] : memref<56x128xf32, #tpu.memory_space<vmem>>, vector<16x128xf32>
    %c0_176 = arith.constant 0 : index
    %c512_177 = arith.constant 512 : index
    %164 = vector.load %arg18[%c0_176, %c512_177] : memref<48x640xf32, #tpu.memory_space<vmem>>, vector<16x128xf32>
    tpu.vector_store %arg18[%c0_176, %c512_177], %163 {strides = array<i32>} : memref<48x640xf32, #tpu.memory_space<vmem>>, vector<16x128xf32>,
    %c0_178 = arith.constant 0 : index
    %c0_179 = arith.constant 0 : index
    %165 = vector.load %arg18[%c0_178, %c0_179] : memref<48x640xf32, #tpu.memory_space<vmem>>, vector<16x640xf32>
    %c0_180 = arith.constant 0 : index
    %c0_181 = arith.constant 0 : index
    %166 = vector.load %arg12[%c0_180, %c0_181] : memref<640x128xf32, #tpu.memory_space<vmem>>, vector<640x128xf32>
    %cst_182 = arith.constant dense<0.000000e+00> : vector<16x128xf32>
    %167 = tpu.matmul %165, %166, %cst_182 {dimension_numbers = #tpu.dot_dimension_numbers<[1], [0], [0], [1], [0, 0, 1, 1], [], []>} : vector<16x640xf32>, vector<640x128xf32>, vector<16x128xf32> -> vector<16x128xf32>
    %c0_183 = arith.constant 0 : index
    %c0_184 = arith.constant 0 : index
    %168 = vector.load %arg13[%c0_183, %c0_184] : memref<1x128xf32, #tpu.memory_space<vmem>>, vector<1x128xf32>
    %169 = vector.broadcast %168 : vector<1x128xf32> to vector<16x128xf32>
    %170 = arith.addf %167, %169 : vector<16x128xf32>
    %cst_185 = arith.constant 0.000000e+00 : f32
    %171 = vector.broadcast %cst_185 : f32 to vector<16x128xf32>
    %172 = arith.select %151, %170, %171 : vector<16x128xi1>, vector<16x128xf32>
    %cst_186 = arith.constant 0.000000e+00 : f32
    %173 = vector.broadcast %cst_186 : f32 to vector<16x128xf32>
    %174 = arith.maximumf %172, %173 : vector<16x128xf32>
    %c2_187 = arith.constant 2 : index
    %c0_188 = arith.constant 0 : index
    %175 = vector.load %arg17[%c2_187, %c0_188] : memref<56x128xf32, #tpu.memory_space<vmem>>, vector<16x128xf32>
    tpu.vector_store %arg17[%c2_187, %c0_188], %174 {strides = array<i32>} : memref<56x128xf32, #tpu.memory_space<vmem>>, vector<16x128xf32>,
    %c0_189 = arith.constant 0 : index
    %c0_190 = arith.constant 0 : index
    %176 = vector.load %arg17[%c0_189, %c0_190] : memref<56x128xf32, #tpu.memory_space<vmem>>, vector<16x128xf32>
    %c0_191 = arith.constant 0 : index
    %c0_192 = arith.constant 0 : index
    %177 = vector.load %arg18[%c0_191, %c0_192] : memref<48x640xf32, #tpu.memory_space<vmem>>, vector<16x128xf32>
    tpu.vector_store %arg18[%c0_191, %c0_192], %176 {strides = array<i32>} : memref<48x640xf32, #tpu.memory_space<vmem>>, vector<16x128xf32>,
    %c1_193 = arith.constant 1 : index
    %c0_194 = arith.constant 0 : index
    %178 = vector.load %arg17[%c1_193, %c0_194] : memref<56x128xf32, #tpu.memory_space<vmem>>, vector<16x128xf32>
    %c0_195 = arith.constant 0 : index
    %c128_196 = arith.constant 128 : index
    %179 = vector.load %arg18[%c0_195, %c128_196] : memref<48x640xf32, #tpu.memory_space<vmem>>, vector<16x128xf32>
    tpu.vector_store %arg18[%c0_195, %c128_196], %178 {strides = array<i32>} : memref<48x640xf32, #tpu.memory_space<vmem>>, vector<16x128xf32>,
    %c2_197 = arith.constant 2 : index
    %c0_198 = arith.constant 0 : index
    %180 = vector.load %arg17[%c2_197, %c0_198] : memref<56x128xf32, #tpu.memory_space<vmem>>, vector<16x128xf32>
    %c0_199 = arith.constant 0 : index
    %c256_200 = arith.constant 256 : index
    %181 = vector.load %arg18[%c0_199, %c256_200] : memref<48x640xf32, #tpu.memory_space<vmem>>, vector<16x128xf32>
    tpu.vector_store %arg18[%c0_199, %c256_200], %180 {strides = array<i32>} : memref<48x640xf32, #tpu.memory_space<vmem>>, vector<16x128xf32>,
    %c3_201 = arith.constant 3 : index
    %c0_202 = arith.constant 0 : index
    %182 = vector.load %arg17[%c3_201, %c0_202] : memref<56x128xf32, #tpu.memory_space<vmem>>, vector<16x128xf32>
    %c0_203 = arith.constant 0 : index
    %c384_204 = arith.constant 384 : index
    %183 = vector.load %arg18[%c0_203, %c384_204] : memref<48x640xf32, #tpu.memory_space<vmem>>, vector<16x128xf32>
    tpu.vector_store %arg18[%c0_203, %c384_204], %182 {strides = array<i32>} : memref<48x640xf32, #tpu.memory_space<vmem>>, vector<16x128xf32>,
    %c4_205 = arith.constant 4 : index
    %c0_206 = arith.constant 0 : index
    %184 = vector.load %arg17[%c4_205, %c0_206] : memref<56x128xf32, #tpu.memory_space<vmem>>, vector<16x128xf32>
    %c0_207 = arith.constant 0 : index
    %c512_208 = arith.constant 512 : index
    %185 = vector.load %arg18[%c0_207, %c512_208] : memref<48x640xf32, #tpu.memory_space<vmem>>, vector<16x128xf32>
    tpu.vector_store %arg18[%c0_207, %c512_208], %184 {strides = array<i32>} : memref<48x640xf32, #tpu.memory_space<vmem>>, vector<16x128xf32>,
    %c0_209 = arith.constant 0 : index
    %c0_210 = arith.constant 0 : index
    %186 = vector.load %arg18[%c0_209, %c0_210] : memref<48x640xf32, #tpu.memory_space<vmem>>, vector<16x640xf32>
    %c0_211 = arith.constant 0 : index
    %c0_212 = arith.constant 0 : index
    %187 = vector.load %arg14[%c0_211, %c0_212] : memref<640x128xf32, #tpu.memory_space<vmem>>, vector<640x128xf32>
    %cst_213 = arith.constant dense<0.000000e+00> : vector<16x128xf32>
    %188 = tpu.matmul %186, %187, %cst_213 {dimension_numbers = #tpu.dot_dimension_numbers<[1], [0], [0], [1], [0, 0, 1, 1], [], []>} : vector<16x640xf32>, vector<640x128xf32>, vector<16x128xf32> -> vector<16x128xf32>
    %c0_214 = arith.constant 0 : index
    %c0_215 = arith.constant 0 : index
    %189 = vector.load %arg15[%c0_214, %c0_215] : memref<1x128xf32, #tpu.memory_space<vmem>>, vector<1x128xf32>
    %190 = vector.broadcast %189 : vector<1x128xf32> to vector<16x128xf32>
    %191 = arith.addf %188, %190 : vector<16x128xf32>
    %cst_216 = arith.constant 0.000000e+00 : f32
    %192 = vector.broadcast %cst_216 : f32 to vector<16x128xf32>
    %193 = arith.select %151, %191, %192 : vector<16x128xi1>, vector<16x128xf32>
    %194 = arith.addf %139, %193 : vector<16x128xf32>
    %c0_217 = arith.constant 0 : index
    %c0_218 = arith.constant 0 : index
    %195 = vector.load %arg16[%c0_217, %c0_218] : memref<16x128xf32, #tpu.memory_space<vmem>>, vector<16x128xf32>
    tpu.vector_store %arg16[%c0_217, %c0_218], %194 {strides = array<i32>} : memref<16x128xf32, #tpu.memory_space<vmem>>, vector<16x128xf32>,
    return
  }
  func.func @transform_0(%arg0: i32) -> (i32, i32) {
    %c0_i32 = arith.constant 0 : i32
    %c0_i32_0 = arith.constant 0 : i32
    return %arg0, %c0_i32 : i32, i32
  }
  func.func @transform_1(%arg0: i32) -> (i32, i32) {
    %c0_i32 = arith.constant 0 : i32
    %c0_i32_0 = arith.constant 0 : i32
    %c0_i32_1 = arith.constant 0 : i32
    return %c0_i32, %c0_i32_0 : i32, i32
  }
  func.func @transform_2(%arg0: i32) -> (i32, i32) {
    %c0_i32 = arith.constant 0 : i32
    %c0_i32_0 = arith.constant 0 : i32
    %c0_i32_1 = arith.constant 0 : i32
    return %c0_i32, %c0_i32_0 : i32, i32
  }
  func.func @transform_3(%arg0: i32) -> (i32, i32) {
    %c0_i32 = arith.constant 0 : i32
    %c0_i32_0 = arith.constant 0 : i32
    %c0_i32_1 = arith.constant 0 : i32
    return %c0_i32, %c0_i32_0 : i32, i32
  }
  func.func @transform_4(%arg0: i32) -> (i32, i32) {
    %c0_i32 = arith.constant 0 : i32
    %c0_i32_0 = arith.constant 0 : i32
    %c0_i32_1 = arith.constant 0 : i32
    return %c0_i32, %c0_i32_0 : i32, i32
  }
  func.func @transform_5(%arg0: i32) -> (i32, i32) {
    %c0_i32 = arith.constant 0 : i32
    %c0_i32_0 = arith.constant 0 : i32
    %c0_i32_1 = arith.constant 0 : i32
    return %c0_i32, %c0_i32_0 : i32, i32
  }
  func.func @transform_6(%arg0: i32) -> (i32, i32) {
    %c0_i32 = arith.constant 0 : i32
    %c0_i32_0 = arith.constant 0 : i32
    %c0_i32_1 = arith.constant 0 : i32
    return %c0_i32, %c0_i32_0 : i32, i32
  }
  func.func @transform_7(%arg0: i32) -> (i32, i32) {
    %c0_i32 = arith.constant 0 : i32
    %c0_i32_0 = arith.constant 0 : i32
    %c0_i32_1 = arith.constant 0 : i32
    return %c0_i32, %c0_i32_0 : i32, i32
  }
  func.func @transform_8(%arg0: i32) -> (i32, i32) {
    %c0_i32 = arith.constant 0 : i32
    %c0_i32_0 = arith.constant 0 : i32
    %c0_i32_1 = arith.constant 0 : i32
    return %c0_i32, %c0_i32_0 : i32, i32
  }
  func.func @transform_9(%arg0: i32) -> (i32, i32) {
    %c0_i32 = arith.constant 0 : i32
    %c0_i32_0 = arith.constant 0 : i32
    %c0_i32_1 = arith.constant 0 : i32
    return %c0_i32, %c0_i32_0 : i32, i32
  }
  func.func @transform_10(%arg0: i32) -> (i32, i32) {
    %c0_i32 = arith.constant 0 : i32
    %c0_i32_0 = arith.constant 0 : i32
    %c0_i32_1 = arith.constant 0 : i32
    return %c0_i32, %c0_i32_0 : i32, i32
  }
  func.func @transform_11(%arg0: i32) -> (i32, i32) {
    %c0_i32 = arith.constant 0 : i32
    %c0_i32_0 = arith.constant 0 : i32
    %c0_i32_1 = arith.constant 0 : i32
    return %c0_i32, %c0_i32_0 : i32, i32
  }
  func.func @transform_12(%arg0: i32) -> (i32, i32) {
    %c0_i32 = arith.constant 0 : i32
    %c0_i32_0 = arith.constant 0 : i32
    %c0_i32_1 = arith.constant 0 : i32
    return %c0_i32, %c0_i32_0 : i32, i32
  }
  func.func @transform_13(%arg0: i32) -> (i32, i32) {
    %c0_i32 = arith.constant 0 : i32
    %c0_i32_0 = arith.constant 0 : i32
    %c0_i32_1 = arith.constant 0 : i32
    return %c0_i32, %c0_i32_0 : i32, i32
  }
  func.func @transform_14(%arg0: i32) -> (i32, i32) {
    %c0_i32 = arith.constant 0 : i32
    %c0_i32_0 = arith.constant 0 : i32
    %c0_i32_1 = arith.constant 0 : i32
    return %c0_i32, %c0_i32_0 : i32, i32
  }
  func.func @transform_15(%arg0: i32) -> (i32, i32) {
    %c0_i32 = arith.constant 0 : i32
    %c0_i32_0 = arith.constant 0 : i32
    return %arg0, %c0_i32 : i32, i32
  }
}

</mosaic_0001>

<bundles_post_ra>
// kernel: tpu_custom_call.1
= control target key start
LH: loop header
LB: loop body
LE: loop exit
PB: predicated region body
PF: predicated region fallthrough
CT: control target
= control target key end

     0   :  { %20 = vsyncpa [#allocation5], 0  ;;  %s5014_s0 = inlined_call_operand.vmem [shape: f32[48,8], index: 0, kind: input, shape index: {}]   ;;  %s5015_s1 = inlined_call_operand.vmem [shape: f32[8,128], index: 1, kind: input, shape index: {}]   ;;  %s5016_s2 = inlined_call_operand.vmem [shape: f32[1,128], index: 2, kind: input, shape index: {}]   ;;  %s5017_s3 = inlined_call_operand.hbm [shape: f32[640,128], index: 3, kind: input, shape index: {}]   ;;  %s5018_s4 = inlined_call_operand.vmem [shape: f32[1,128], index: 4, kind: input, shape index: {}]   ;;  %s5019_s5 = inlined_call_operand.hbm [shape: f32[640,128], index: 5, kind: input, shape index: {}]   ;;  %s5020_s6 = inlined_call_operand.vmem [shape: f32[1,128], index: 6, kind: input, shape index: {}]   ;;  %s5021_s7 = inlined_call_operand.hbm [shape: f32[640,128], index: 7, kind: input, shape index: {}]   ;;  %s5022_s8 = inlined_call_operand.vmem [shape: f32[1,128], index: 8, kind: input, shape index: {}]   ;;  %s5023_s9 = inlined_call_operand.hbm [shape: f32[640,128], index: 9, kind: input, shape index: {}]   ;;  %s5024_s10 = inlined_call_operand.vmem [shape: f32[1,128], index: 10, kind: input, shape index: {}]   ;;  %s5025_s11 = inlined_call_operand.hbm [shape: f32[640,128], index: 11, kind: input, shape index: {}]   ;;  %s5026_s12 = inlined_call_operand.vmem [shape: f32[1,128], index: 12, kind: input, shape index: {}]   ;;  %s5027_s13 = inlined_call_operand.hbm [shape: f32[640,128], index: 13, kind: input, shape index: {}]   ;;  %s5028_s14 = inlined_call_operand.vmem [shape: f32[1,128], index: 14, kind: input, shape index: {}]   ;;  %s5029_s15 = inlined_call_operand.hbm [shape: f32[16,128], index: 15, kind: output, shape index: {}]  }
   0x1   :  { %21 = vsyncpa [#allocation8], 0 }
   0x2   :  { %22 = vsyncpa [#allocation11], 0 }
   0x3   :  { %23 = vsyncpa [#allocation14], 0 }
   0x4   :  { %24 = vsyncpa [#allocation6], 0  ;;  %s4576_s18 = smov [#allocation7]   ;;  %s4577_s20 = smov [#allocation10]  }
   0x5   :  { %s50_s19 = sshll.u32 %s4576_s18, 4  ;;  %s78_s21 = sshll.u32 %s4577_s20, 4  ;;  %s51_s19 = int_to_ptr.vmem [resolvable:$true] %s50_s19  ;;  %s4666_s21 = int_to_ptr.vmem [resolvable:$true] %s78_s21 }
   0x6   :  { %s4412_s24 = scalar_lea.hbm %s5019_s5, 10240 }
   0x7   :  { %p4413_p0 = scmp.ne.s32.totalorder %s5019_s5, %s4412_s24  ;;  %p4416_p1 = scmp.lt.u32.totalorder %s4412_s24, %s5019_s5 }
   0x9   :  { %p4418_p2 = pnand %p4416_p1, %p4413_p0 }
   0xb   :  { %4421 = shalt.err (!%p4418_p2)
}
   0xc   :  { %s4422_s29 = scalar_lea.vmem %s51_s19, 10240  ;;  %p4427_p4 = scmp.lt.s32.totalorder %s51_s19, %s51_s19 }
   0xd   :  { %p4423_p3 = scmp.ne.s32.totalorder %s51_s19, %s4422_s29  ;;  %p4428_p5 = scmp.lt.s32.totalorder %s4422_s29, %s4422_s29 }
   0xf   :  { %p4429_p6 = por %p4428_p5, %p4427_p4 }
  0x11   :  { %p4430_p7 = pnand %p4429_p6, %p4423_p3 }
  0x13   :  { %4433 = shalt.err (!%p4430_p7)
}
  0x14   :  { %s4578_s30 = smov 128   ;;  %s4579_s16 = smov 8  }
  0x15   :  { %56 = dma.hbm_to_vmem [thread:$0]  %s5019_s5, 10240, %s51_s19, [#allocation8], %s4578_s30, %s4578_s30, %s4579_s16  }
  0x16   :  { %s4434_s23 = scalar_lea.hbm %s5023_s9, 10240 }
  0x17   :  { %p4435_p8 = scmp.ne.s32.totalorder %s5023_s9, %s4434_s23  ;;  %p4438_p9 = scmp.lt.u32.totalorder %s4434_s23, %s5023_s9 }
  0x19   :  { %p4440_p10 = pnand %p4438_p9, %p4435_p8 }
  0x1b   :  { %4443 = shalt.err (!%p4440_p10)
}
  0x1c   :  { %s4444_s28 = scalar_lea.vmem %s4666_s21, 10240  ;;  %p4449_p12 = scmp.lt.s32.totalorder %s4666_s21, %s4666_s21 }
  0x1d   :  { %p4445_p11 = scmp.ne.s32.totalorder %s4666_s21, %s4444_s28  ;;  %p4450_p13 = scmp.lt.s32.totalorder %s4444_s28, %s4444_s28 }
  0x1f   :  { %p4451_p0 = por %p4450_p13, %p4449_p12 }
  0x21   :  { %p4452_p1 = pnand %p4451_p0, %p4445_p11 }
  0x23   :  { %4455 = shalt.err (!%p4452_p1)
}
  0x24   :  { %84 = dma.hbm_to_vmem [thread:$0]  %s5023_s9, 10240, %s4666_s21, [#allocation11], %s4578_s30, %s4578_s30, %s4579_s16  }
  0x25   :  { %s4580_s29 = smov [#allocation4]   ;;  %s4581_s18 = smov [#allocation9]  }
  0x26   :  { %s36_s17 = sshll.u32 %s4580_s29, 4  ;;  %s64_s20 = sshll.u32 %s4581_s18, 4  ;;  %s37_s17 = int_to_ptr.vmem [resolvable:$true] %s36_s17  ;;  %s4703_s20 = int_to_ptr.vmem [resolvable:$true] %s64_s20 }
  0x27   :  { %s4456_s24 = scalar_lea.hbm %s5017_s3, 10240 }
  0x28   :  { %p4457_p2 = scmp.ne.s32.totalorder %s5017_s3, %s4456_s24  ;;  %p4460_p3 = scmp.lt.u32.totalorder %s4456_s24, %s5017_s3 }
  0x2a   :  { %p4462_p4 = pnand %p4460_p3, %p4457_p2 }
  0x2c   :  { %4465 = shalt.err (!%p4462_p4)
}
  0x2d   :  { %s4466_s9 = scalar_lea.vmem %s37_s17, 10240  ;;  %p4471_p6 = scmp.lt.s32.totalorder %s37_s17, %s37_s17 }
  0x2e   :  { %p4467_p5 = scmp.ne.s32.totalorder %s37_s17, %s4466_s9  ;;  %p4472_p7 = scmp.lt.s32.totalorder %s4466_s9, %s4466_s9 }
  0x30   :  { %p4473_p8 = por %p4472_p7, %p4471_p6 }
  0x32   :  { %p4474_p9 = pnand %p4473_p8, %p4467_p5 }
  0x34   :  { %4477 = shalt.err (!%p4474_p9)
}
  0x35   :  { %42 = dma.hbm_to_vmem [thread:$0]  %s5017_s3, 10240, %s37_s17, [#allocation5], %s4578_s30, %s4578_s30, %s4579_s16  }
  0x36   :  { %s4478_s18 = scalar_lea.hbm %s5021_s7, 10240 }
  0x37   :  { %p4479_p10 = scmp.ne.s32.totalorder %s5021_s7, %s4478_s18  ;;  %p4482_p11 = scmp.lt.u32.totalorder %s4478_s18, %s5021_s7 }
  0x39   :  { %p4484_p12 = pnand %p4482_p11, %p4479_p10 }
  0x3b   :  { %4487 = shalt.err (!%p4484_p12)
}
  0x3c   :  { %s4488_s26 = scalar_lea.vmem %s4703_s20, 10240  ;;  %p4493_p0 = scmp.lt.s32.totalorder %s4703_s20, %s4703_s20 }
  0x3d   :  { %p4489_p13 = scmp.ne.s32.totalorder %s4703_s20, %s4488_s26  ;;  %p4494_p1 = scmp.lt.s32.totalorder %s4488_s26, %s4488_s26 }
  0x3f   :  { %p4495_p2 = por %p4494_p1, %p4493_p0 }
  0x41   :  { %p4496_p3 = pnand %p4495_p2, %p4489_p13 }
  0x43   :  { %4499 = shalt.err (!%p4496_p3)
}
  0x44   :  { %70 = dma.hbm_to_vmem [thread:$0]  %s5021_s7, 10240, %s4703_s20, [#allocation8], %s4578_s30, %s4578_s30, %s4579_s16  }
  0x45   :  { %s4582_s27 = smov [#allocation12]   ;;  %s4583_s9 = smov [#allocation13]  }
  0x46   :  { %s92_s28 = sshll.u32 %s4582_s27, 4  ;;  %s106_s21 = sshll.u32 %s4583_s9, 4  ;;  %s93_s28 = int_to_ptr.vmem [resolvable:$true] %s92_s28  ;;  %s4740_s21 = int_to_ptr.vmem [resolvable:$true] %s106_s21 }
  0x47   :  { %s4500_s29 = scalar_lea.hbm %s5025_s11, 10240 }
  0x48   :  { %p4501_p4 = scmp.ne.s32.totalorder %s5025_s11, %s4500_s29  ;;  %p4504_p5 = scmp.lt.u32.totalorder %s4500_s29, %s5025_s11 }
  0x4a   :  { %p4506_p6 = pnand %p4504_p5, %p4501_p4 }
  0x4c   :  { %4509 = shalt.err (!%p4506_p6)
}
  0x4d   :  { %s4510_s7 = scalar_lea.vmem %s93_s28, 10240  ;;  %p4515_p8 = scmp.lt.s32.totalorder %s93_s28, %s93_s28 }
  0x4e   :  { %p4511_p7 = scmp.ne.s32.totalorder %s93_s28, %s4510_s7  ;;  %p4516_p9 = scmp.lt.s32.totalorder %s4510_s7, %s4510_s7 }
  0x50   :  { %p4517_p10 = por %p4516_p9, %p4515_p8 }
  0x52   :  { %p4518_p11 = pnand %p4517_p10, %p4511_p7 }
  0x54   :  { %4521 = shalt.err (!%p4518_p11)
}
  0x55   :  { %98 = dma.hbm_to_vmem [thread:$0]  %s5025_s11, 10240, %s93_s28, [#allocation11], %s4578_s30, %s4578_s30, %s4579_s16  }
  0x56   :  { %s4522_s17 = scalar_lea.hbm %s5027_s13, 10240 }
  0x57   :  { %p4523_p12 = scmp.ne.s32.totalorder %s5027_s13, %s4522_s17  ;;  %p4526_p13 = scmp.lt.u32.totalorder %s4522_s17, %s5027_s13 }
  0x59   :  { %p4528_p0 = pnand %p4526_p13, %p4523_p12 }
  0x5b   :  { %4531 = shalt.err (!%p4528_p0)
}
  0x5c   :  { %s4532_s29 = scalar_lea.vmem %s4740_s21, 10240  ;;  %p4537_p2 = scmp.lt.s32.totalorder %s4740_s21, %s4740_s21 }
  0x5d   :  { %p4533_p1 = scmp.ne.s32.totalorder %s4740_s21, %s4532_s29  ;;  %p4538_p3 = scmp.lt.s32.totalorder %s4532_s29, %s4532_s29 }
  0x5f   :  { %p4539_p4 = por %p4538_p3, %p4537_p2 }
  0x61   :  { %p4540_p5 = pnand %p4539_p4, %p4533_p1 }
  0x63   :  { %4543 = shalt.err (!%p4540_p5)
}
  0x64   :  { %112 = dma.hbm_to_vmem [thread:$0]  %s5027_s13, 10240, %s4740_s21, [#allocation14], %s4578_s30, %s4578_s30, %s4579_s16  }
  0x65   :  { %4566 = dma.done.wait [#allocation5], 10240  }
  0x66   :  { %4567 = vsyncadd [#allocation5], 4294957056 }
  0x67   :  { %4568 = dma.done.wait [#allocation8], 20480  }
  0x68   :  { %4569 = vsyncadd [#allocation8], 4294946816 }
  0x69   :  { %4570 = dma.done.wait [#allocation11], 20480  }
  0x6a   :  { %4571 = vsyncadd [#allocation11], 4294946816 }
  0x6b   :  { %4572 = dma.done.wait [#allocation14], 10240  }
  0x6c   :  { %4573 = vsyncadd [#allocation14], 4294957056  ;;  %vm196_vm0 = vcmask 64512   ;;  %v188_v0 = vld [vmem:[%s5015_s1] sm:$0xff]  ;;  %v183_v2 = vld [vmem:[%s5014_s0 + $0x8] sm:$0xff]  ;;  %s4585_s22 = smov [#allocation15]  }
  0x6d   :  { %v182_v1 = vld [vmem:[%s5014_s0] sm:$0xff]  ;;  %3587 = vmatprep.subr.mxu0 %v188_v0  ;;  %v184_v3 = vld [vmem:[%s5014_s0 + $0x10] sm:$0xff]  ;;  %v185_v4 = vld [vmem:[%s5014_s0 + $0x18] sm:$0xff] }
  0x6e   :  { %3589 = vmatprep.mubr.msk.f32.mxu0 %vm196_vm0, %v182_v1  ;;  %3588 = vmatpush3.msra.mxu0 %v188_v0  ;;  %v434_v5 = vld [vmem:[#allocation4 + $0x80] sm:$0xff]  ;;  %v435_v6 = vld [vmem:[#allocation4 + $0x88] sm:$0xff]  ;;  %v436_v18 = vld [vmem:[#allocation4 + $0x90] sm:$0xff] }
  0x6f   :  { %3590 = vmatmul.mubr.msk.f32.vlgmr.msra.gmra.mrb[0].mxu0 %vm196_vm0, %v183_v2  ;;  %v186_v7 = vld [vmem:[%s5014_s0 + $0x20] sm:$0xff]  ;;  %v3826_v8 = vpack.c.bf16 %v435_v6, %v434_v5  ;;  %v418_v9 = vld [vmem:[#allocation4] sm:$0xff]  ;;  %v437_v19 = vld [vmem:[#allocation4 + $0x98] sm:$0xff] }
  0x70   :  { %v419_v10 = vld [vmem:[#allocation4 + $0x8] sm:$0xff]  ;;  %v466_v11 = vld [vmem:[#allocation4 + $0x180] sm:$0xff]  ;;  %3592 = vmatprep.mubr.msk.f32.mxu0 %vm196_vm0, %v184_v3  ;;  %v420_v20 = vld [vmem:[#allocation4 + $0x10] sm:$0xff]  ;;  %v3830_v22 = vpack.c.bf16 %v437_v19, %v436_v18 }
  0x71   :  { %v3828_v12 = vpack.c.bf16 %v419_v10, %v418_v9  ;;  %v467_v13 = vld [vmem:[#allocation4 + $0x188] sm:$0xff]  ;;  %v450_v14 = vld [vmem:[#allocation4 + $0x100] sm:$0xff]  ;;  %3827 = vmatprep.subr.bf16.mxu1 %v3826_v8  ;;  %v187_v21 = vld [vmem:[%s5014_s0 + $0x28] sm:$0xff] }
  0x72   :  { %v451_v15 = vld [vmem:[#allocation4 + $0x108] sm:$0xff]  ;;  %v3858_v16 = vpack.c.bf16 %v467_v13, %v466_v11  ;;  %v421_v23 = vld [vmem:[#allocation4 + $0x18] sm:$0xff]  ;;  %v468_v24 = vld [vmem:[#allocation4 + $0x190] sm:$0xff] }
  0x73   :  { %v3860_v17 = vpack.c.bf16 %v451_v15, %v450_v14  ;;  %3829 = vmatpush3.bf16.msra.mxu1 %v3828_v12  ;;  %v469_v25 = vld [vmem:[#allocation4 + $0x198] sm:$0xff]  ;;  %3593 = vmatmul.mubr.msk.f32.gmra.mrb[2].mxu0 %vm196_vm0, %v185_v4  ;;  %v3832_v26 = vpack.c.bf16 %v421_v23, %v420_v20  ;;  %v452_v28 = vld [vmem:[#allocation4 + $0x110] sm:$0xff]  ;;  %v438_v30 = vld [vmem:[#allocation4 + $0xa0] sm:$0xff] }
  0x74   :  { %3859 = vmatprep.subr.bf16.mxu0 %v3858_v16  ;;  %v3862_v27 = vpack.c.bf16 %v469_v25, %v468_v24  ;;  %v453_v29 = vld [vmem:[#allocation4 + $0x118] sm:$0xff]  ;;  %3595 = vmatprep.mubr.msk.f32.mxu0 %vm196_vm0, %v186_v7  ;;  %v439_v32 = vld [vmem:[#allocation4 + $0xa8] sm:$0xff]  ;;  %v422_v33 = vld [vmem:[#allocation4 + $0x20] sm:$0xff] }
  0x75   :  { %3861 = vmatpush3.bf16.msra.mxu0 %v3860_v17  ;;  %v3864_v31 = vpack.c.bf16 %v453_v29, %v452_v28  ;;  %v423_v34 = vld [vmem:[#allocation4 + $0x28] sm:$0xff]  ;;  %3831 = vmatprep.subr.bf16.mxu1 %v3830_v22  ;;  %v3834_v35 = vpack.c.bf16 %v439_v32, %v438_v30  ;;  %v470_v36 = vld [vmem:[#allocation4 + $0x1a0] sm:$0xff]  ;;  %v440_v42 = vld [vmem:[#allocation4 + $0xb0] sm:$0xff] }
  0x76   :  { %3863 = vmatprep.subr.bf16.mxu0 %v3862_v27  ;;  %v471_v37 = vld [vmem:[#allocation4 + $0x1a8] sm:$0xff]  ;;  %v454_v38 = vld [vmem:[#allocation4 + $0x120] sm:$0xff]  ;;  %v3836_v39 = vpack.c.bf16 %v423_v34, %v422_v33  ;;  %v441_v43 = vld [vmem:[#allocation4 + $0xb8] sm:$0xff] }
  0x77   :  { %3833 = vmatpush3.bf16.msra.mxu1 %v3832_v26  ;;  %v3866_v40 = vpack.c.bf16 %v471_v37, %v470_v36  ;;  %v455_v41 = vld [vmem:[#allocation4 + $0x128] sm:$0xff]  ;;  %3596 = vmatmul.mubr.msk.f32.gmra.mrb[4].mxu0 %vm196_vm0, %v187_v21  ;;  %v3838_v44 = vpack.c.bf16 %v441_v43, %v440_v42  ;;  %v424_v45 = vld [vmem:[#allocation4 + $0x30] sm:$0xff]  ;;  %v425_v46 = vld [vmem:[#allocation4 + $0x38] sm:$0xff]  ;;  %v133_v42 = vlaneseq }
  0x78   :  { %3835 = vmatprep.subr.bf16.mxu1 %v3834_v35  ;;  %v472_v47 = vld [vmem:[#allocation4 + $0x1b0] sm:$0xff]  ;;  %v3868_v48 = vpack.c.bf16 %v455_v41, %v454_v38  ;;  %v473_v49 = vld [vmem:[#allocation4 + $0x1b8] sm:$0xff]  ;;  %v442_v53 = vld [vmem:[#allocation4 + $0xc0] sm:$0xff]  ;;  %v3840_v55 = vpack.c.bf16 %v425_v46, %v424_v45 }
  0x79   :  { %3865 = vmatpush3.bf16.msra.mxu0 %v3864_v31  ;;  %v456_v50 = vld [vmem:[#allocation4 + $0x130] sm:$0xff]  ;;  %v3870_v51 = vpack.c.bf16 %v473_v49, %v472_v47  ;;  %v457_v52 = vld [vmem:[#allocation4 + $0x138] sm:$0xff]  ;;  %v443_v54 = vld [vmem:[#allocation4 + $0xc8] sm:$0xff]  ;;  %v4804_v43 = vshrl.u32 %v133_v42, 7 }
  0x7a   :  { %3867 = vmatprep.subr.bf16.mxu0 %v3866_v40  ;;  %v3842_v56 = vpack.c.bf16 %v443_v54, %v442_v53  ;;  %v3872_v57 = vpack.c.bf16 %v457_v52, %v456_v50  ;;  %v426_v58 = vld [vmem:[#allocation4 + $0x40] sm:$0xff]  ;;  %v427_v59 = vld [vmem:[#allocation4 + $0x48] sm:$0xff]  ;;  %v444_v3 = vld [vmem:[#allocation4 + $0xd0] sm:$0xff] }
  0x7b   :  { %3837 = vmatpush3.bf16.msra.mxu1 %v3836_v39  ;;  %v474_v60 = vld [vmem:[#allocation4 + $0x1c0] sm:$0xff]  ;;  %v3844_v61 = vpack.c.bf16 %v427_v59, %v426_v58  ;;  %v475_v62 = vld [vmem:[#allocation4 + $0x1c8] sm:$0xff]  ;;  %v445_v4 = vld [vmem:[#allocation4 + $0xd8] sm:$0xff]  ;;  %v4810_v46 = vadd.s32 24, %v4804_v43  ;;  %vm140_vm1 = vcmp.ge.s32.totalorder %v4804_v43, 2  ;;  %v4816_v49 = vadd.s32 16, %v4804_v43 }
  0x7c   :  { %3839 = vmatprep.subr.bf16.mxu1 %v3838_v44  ;;  %v3874_v63 = vpack.c.bf16 %v475_v62, %v474_v60  ;;  %v458_v0 = vld [vmem:[#allocation4 + $0x140] sm:$0xff]  ;;  %v459_v1 = vld [vmem:[#allocation4 + $0x148] sm:$0xff]  ;;  %v3846_v5 = vpack.c.bf16 %v445_v4, %v444_v3  ;;  %v428_v6 = vld [vmem:[#allocation4 + $0x50] sm:$0xff]  ;;  %v4825_v54 = vadd.s32 40, %v4804_v43  ;;  %vm2187_vm10 = vcmp.lt.s32.totalorder %v4804_v43, 6 }
  0x7d   :  { %3869 = vmatpush3.bf16.msra.mxu0 %v3868_v48  ;;  %v3876_v2 = vpack.c.bf16 %v459_v1, %v458_v0  ;;  %v429_v7 = vld [vmem:[#allocation4 + $0x58] sm:$0xff]  ;;  %v476_v8 = vld [vmem:[#allocation4 + $0x1d0] sm:$0xff]  ;;  %v446_v15 = vld [vmem:[#allocation4 + $0xe0] sm:$0xff]  ;;  %vm161_vm2 = vcmp.ge.s32.totalorder %v4810_v46, 26  ;;  %vm148_vm3 = vcmp.lt.s32.totalorder %v4816_v49, 18  ;;  %vm1330_vm6 = vcmp.lt.s32.totalorder %v4810_v46, 26 }
  0x7e   :  { %3871 = vmatprep.subr.bf16.mxu0 %v3870_v51  ;;  %v3848_v9 = vpack.c.bf16 %v429_v7, %v428_v6  ;;  %v477_v10 = vld [vmem:[#allocation4 + $0x1d8] sm:$0xff]  ;;  %v460_v12 = vld [vmem:[#allocation4 + $0x150] sm:$0xff]  ;;  %v447_v16 = vld [vmem:[#allocation4 + $0xe8] sm:$0xff]  ;;  %vm169_vm4 = vcmp.lt.s32.totalorder %v4825_v54, 42  ;;  %vm1325_vm7 = vcmp.ge.s32.totalorder %v4816_v49, 18 }
  0x7f   :  { %3841 = vmatpush3.bf16.msra.mxu1 %v3840_v55  ;;  %v3878_v11 = vpack.c.bf16 %v477_v10, %v476_v8  ;;  %v461_v13 = vld [vmem:[#allocation4 + $0x158] sm:$0xff]  ;;  %v3850_v17 = vpack.c.bf16 %v447_v16, %v446_v15  ;;  %v430_v18 = vld [vmem:[#allocation4 + $0x60] sm:$0xff]  ;;  %v431_v19 = vld [vmem:[#allocation4 + $0x68] sm:$0xff] }
  0x80   :  { %3843 = vmatprep.subr.bf16.mxu1 %v3842_v56  ;;  %v3880_v14 = vpack.c.bf16 %v461_v13, %v460_v12  ;;  %v478_v20 = vld [vmem:[#allocation4 + $0x1e0] sm:$0xff]  ;;  %v3852_v21 = vpack.c.bf16 %v431_v19, %v430_v18  ;;  %v479_v22 = vld [vmem:[#allocation4 + $0x1e8] sm:$0xff]  ;;  %v448_v27 = vld [vmem:[#allocation4 + $0xf0] sm:$0xff] }
  0x81   :  { %3873 = vmatpush3.bf16.msra.mxu0 %v3872_v57  ;;  %v462_v23 = vld [vmem:[#allocation4 + $0x160] sm:$0xff]  ;;  %v463_v24 = vld [vmem:[#allocation4 + $0x168] sm:$0xff]  ;;  %v3882_v25 = vpack.c.bf16 %v479_v22, %v478_v20  ;;  %v449_v28 = vld [vmem:[#allocation4 + $0xf8] sm:$0xff] }
  0x82   :  { %3875 = vmatprep.subr.bf16.mxu0 %v3874_v63  ;;  %v3884_v26 = vpack.c.bf16 %v463_v24, %v462_v23  ;;  %v3854_v29 = vpack.c.bf16 %v449_v28, %v448_v27  ;;  %v432_v30 = vld [vmem:[#allocation4 + $0x70] sm:$0xff]  ;;  %v433_v31 = vld [vmem:[#allocation4 + $0x78] sm:$0xff]  ;;  %v482_v39 = vld [vmem:[#allocation4 + $0x200] sm:$0xff] }
  0x83   :  { %3845 = vmatpush3.bf16.msra.mxu1 %v3844_v61  ;;  %v480_v32 = vld [vmem:[#allocation4 + $0x1f0] sm:$0xff]  ;;  %v3856_v33 = vpack.c.bf16 %v433_v31, %v432_v30  ;;  %v481_v34 = vld [vmem:[#allocation4 + $0x1f8] sm:$0xff]  ;;  %v483_v40 = vld [vmem:[#allocation4 + $0x208] sm:$0xff] }
  0x84   :  { %3847 = vmatprep.subr.bf16.mxu1 %v3846_v5  ;;  %v464_v35 = vld [vmem:[#allocation4 + $0x170] sm:$0xff]  ;;  %v465_v36 = vld [vmem:[#allocation4 + $0x178] sm:$0xff]  ;;  %v3886_v37 = vpack.c.bf16 %v481_v34, %v480_v32  ;;  %v3890_v41 = vpack.c.bf16 %v483_v40, %v482_v39  ;;  %v2919_v44 = vld [vmem:[%s5016_s2] ss:$0 sm:$0xff] }
  0x85   :  { %3877 = vmatpush3.bf16.msra.mxu0 %v3876_v2  ;;  %v3888_v38 = vpack.c.bf16 %v465_v36, %v464_v35  ;;  %v484_v6 = vld [vmem:[#allocation4 + $0x210] sm:$0xff]  ;;  %v485_v7 = vld [vmem:[#allocation4 + $0x218] sm:$0xff]  ;;  %v486_v12 = vld [vmem:[#allocation4 + $0x220] sm:$0xff] }
  0x86   :  { %3879 = vmatprep.subr.bf16.mxu0 %v3878_v11  ;;  %v3894_v11 = vpack.c.bf16 %v485_v7, %v484_v6  ;;  %v487_v13 = vld [vmem:[#allocation4 + $0x228] sm:$0xff]  ;;  %v489_v20 = vld [vmem:[#allocation4 + $0x238] sm:$0xff]  ;;  %v490_v24 = vld [vmem:[#allocation4 + $0x240] sm:$0xff] }
  0x87   :  { %3849 = vmatpush3.bf16.msra.mxu1 %v3848_v9  ;;  %v3898_v16 = vpack.c.bf16 %v487_v13, %v486_v12  ;;  %v491_v27 = vld [vmem:[#allocation4 + $0x248] sm:$0xff]  ;;  %v492_v32 = vld [vmem:[#allocation4 + $0x250] sm:$0xff]  ;;  %v494_v36 = vld [vmem:[#allocation4 + $0x260] sm:$0xff] }
  0x88   :  { %3851 = vmatprep.subr.bf16.mxu1 %v3850_v17  ;;  %v488_v17 = vld [vmem:[#allocation4 + $0x230] sm:$0xff]  ;;  %v3906_v30 = vpack.c.bf16 %v491_v27, %v490_v24  ;;  %v495_v39 = vld [vmem:[#allocation4 + $0x268] sm:$0xff]  ;;  %v901_v13 = vld [vmem:[#allocation7 + $0x18] sm:$0xff] }
  0x89   :  { %3881 = vmatpush3.bf16.msra.mxu0 %v3880_v14  ;;  %v3902_v23 = vpack.c.bf16 %v489_v20, %v488_v17  ;;  %v496_v42 = vld [vmem:[#allocation4 + $0x270] sm:$0xff]  ;;  %v931_v6 = vld [vmem:[#allocation7 + $0x108] sm:$0xff]  ;;  %v902_v24 = vld [vmem:[#allocation7 + $0x20] sm:$0xff] }
  0x8a   :  { %3883 = vmatprep.subr.bf16.mxu0 %v3882_v25  ;;  %v900_v12 = vld [vmem:[#allocation7 + $0x10] sm:$0xff]  ;;  %vm4982_vm12 = vmand %vm140_vm1, %vm2187_vm10 }
  0x8b   :  { %3853 = vmatpush3.bf16.msra.mxu1 %v3852_v21  ;;  %v932_v17 = vld [vmem:[#allocation7 + $0x110] sm:$0xff] }
  0x8c   :  { %3855 = vmatprep.subr.bf16.mxu1 %v3854_v29 }
  0x8d   :  { %3885 = vmatpush3.bf16.msra.mxu0 %v3884_v26 }
  0x8e   :  { %3887 = vmatprep.subr.bf16.mxu0 %v3886_v37 }
  0x8f   :  { %3857 = vmatpush3.bf16.msra.mxu1 %v3856_v33  ;;  %v493_v33 = vld [vmem:[#allocation4 + $0x258] sm:$0xff] }
  0x90   :  { %3891 = vmatprep.subr.bf16.mxu1 %v3890_v41  ;;  %v3910_v35 = vpack.c.bf16 %v493_v33, %v492_v32  ;;  %v920_v33 = vld [vmem:[#allocation7 + $0xb0] sm:$0xff] }
  0x91   :  { %3889 = vmatpush3.bf16.msra.mxu0 %v3888_v38 }
 0x142   :  { %v3591_v45 = vpop.f32.mrb[0].mxu0 }
 0x143   :  { %v4812_v47 = vadd.f32 %v3591_v45, %v2919_v44  ;;  %v281_v48 = vpop.f32.mrb[1].mxu0 }
 0x144   :  { %v282_v50 = vadd.f32 %v2919_v44, %v281_v48 }
 0x145   :  { %v317_v51 = vmax.f32 %v4812_v47, 0.0 }
 0x146   :  { %v4821_v52 = vsel %vm140_vm1, %v282_v50, 0.0  ;;  %v3594_v53 = vpop.f32.mrb[2].mxu0 }
 0x147   :  { %323 = vst [vmem:[#allocation2 + $0xa] sm:$0xff] %v317_v51  ;;  %v316_v55 = vmax.f32 %v4821_v52, 0.0  ;;  %v297_v56 = vadd.f32 %v3594_v53, %v2919_v44  ;;  %v291_v57 = vpop.f32.mrb[3].mxu0 }
 0x148   :  { %v292_v58 = vadd.f32 %v2919_v44, %v291_v57  ;;  %v914_v57 = vld [vmem:[#allocation7 + $0x80] sm:$0xff] }
 0x149   :  { %322 = vst [vmem:[#allocation2 + $0x2] sm:$0xff] %v316_v55  ;;  %v4831_v59 = vsel %vm161_vm2, %v297_v56, 0.0 }
 0x14a   :  { %v319_v60 = vmax.f32 %v4831_v59, 0.0  ;;  %v4836_v61 = vsel %vm148_vm3, %v292_v58, 0.0  ;;  %v3597_v62 = vpop.f32.mrb[4].mxu0  ;;  %v915_v58 = vld [vmem:[#allocation7 + $0x88] sm:$0xff] }
 0x14b   :  { %v318_v63 = vmax.f32 %v4836_v61, 0.0  ;;  %v307_v0 = vadd.f32 %v3597_v62, %v2919_v44  ;;  %v301_v1 = vpop.f32.mrb[5].mxu0  ;;  %v898_v62 = vld [vmem:[#allocation7] sm:$0xff] }
 0x14c   :  { %325 = vst [vmem:[#allocation2 + $0x1a] sm:$0xff] %v319_v60  ;;  %v4842_v2 = vadd.f32 %v2919_v44, %v301_v1  ;;  %v497_v44 = vld [vmem:[#allocation4 + $0x278] sm:$0xff] }
 0x14d   :  { %324 = vst [vmem:[#allocation2 + $0x12] sm:$0xff] %v318_v63  ;;  %v4846_v3 = vsel %vm169_vm4, %v307_v0, 0.0  ;;  %v3918_v48 = vpack.c.bf16 %v497_v44, %v496_v42  ;;  %v946_v0 = vld [vmem:[#allocation7 + $0x180] sm:$0xff]  ;;  %v936_v42 = vld [vmem:[#allocation7 + $0x130] sm:$0xff]  ;;  %v937_v44 = vld [vmem:[#allocation7 + $0x138] sm:$0xff] }
 0x14e   :  { %v321_v4 = vmax.f32 %v4846_v3, 0.0  ;;  %v320_v5 = vmax.f32 %v4842_v2, 0.0 }
 0x150   :  { %v364_v8 = vld [vmem:[#allocation2 + $0x3] sm:$0xff]  ;;  %327 = vst [vmem:[#allocation2 + $0x2a] sm:$0xff] %v321_v4  ;;  %326 = vst [vmem:[#allocation2 + $0x22] sm:$0xff] %v320_v5 }
 0x151   :  { %v340_v9 = vld [vmem:[#allocation2 + $0x1] sm:$0xff]  ;;  %664 = vmatprep.mubr.f32.mxu0 %v364_v8  ;;  %v341_v14 = vld [vmem:[#allocation2 + $0x9] sm:$0xff] }
 0x152   :  { %v328_v10 = vld [vmem:[#allocation2] sm:$0xff]  ;;  %569 = vmatprep.mubr.f32.mxu1 %v340_v9  ;;  %665 = vmatmul.mubr.f32.vlgmr.msra.gmra.mrb[6].mxu0 %v316_v55  ;;  %v329_v18 = vld [vmem:[#allocation2 + $0x8] sm:$0xff] }
 0x153   :  { %570 = vmatmul.mubr.f32.vlgmr.msra.gmra.mrb[0].mxu1 %v328_v10  ;;  %v376_v45 = vld [vmem:[#allocation2 + $0x4] sm:$0xff]  ;;  %v917_v10 = vld [vmem:[#allocation7 + $0x98] sm:$0xff] }
 0x154   :  { %3893 = vmatpush3.bf16.msra.mxu1 %v3890_v41  ;;  %574 = vmatprep.mubr.f32.mxu1 %v341_v14  ;;  %v365_v15 = vld [vmem:[#allocation2 + $0xb] sm:$0xff]  ;;  %v366_v19 = vld [vmem:[#allocation2 + $0x13] sm:$0xff]  ;;  %v3914_v41 = vpack.c.bf16 %v495_v39, %v494_v36 }
 0x155   :  { %3895 = vmatprep.subr.bf16.mxu1 %v3894_v11  ;;  %669 = vmatprep.mubr.f32.mxu0 %v365_v15  ;;  %v342_v21 = vld [vmem:[#allocation2 + $0x11] sm:$0xff]  ;;  %v343_v22 = vld [vmem:[#allocation2 + $0x19] sm:$0xff]  ;;  %v916_v9 = vld [vmem:[#allocation7 + $0x90] sm:$0xff]  ;;  %v3928_v15 = vpack.c.bf16 %v901_v13, %v900_v12 }
 0x156   :  { %670 = vmatmul.mubr.f32.gmra.mrb[8].mxu0 %v317_v51  ;;  %v330_v25 = vld [vmem:[#allocation2 + $0x10] sm:$0xff]  ;;  %v331_v28 = vld [vmem:[#allocation2 + $0x18] sm:$0xff]  ;;  %v948_v14 = vld [vmem:[#allocation7 + $0x190] sm:$0xff] }
 0x157   :  { %575 = vmatmul.mubr.f32.gmra.mrb[2].mxu1 %v329_v18  ;;  %674 = vmatprep.mubr.f32.mxu0 %v366_v19  ;;  %v367_v26 = vld [vmem:[#allocation2 + $0x1b] sm:$0xff]  ;;  %v368_v31 = vld [vmem:[#allocation2 + $0x23] sm:$0xff]  ;;  %v369_v38 = vld [vmem:[#allocation2 + $0x2b] sm:$0xff] }
 0x158   :  { %3897 = vmatpush3.bf16.msra.mxu1 %v3894_v11  ;;  %579 = vmatprep.mubr.f32.mxu1 %v342_v21  ;;  %v344_v29 = vld [vmem:[#allocation2 + $0x21] sm:$0xff]  ;;  %v345_v34 = vld [vmem:[#allocation2 + $0x29] sm:$0xff]  ;;  %v378_v51 = vld [vmem:[#allocation2 + $0x14] sm:$0xff]  ;;  %v3926_v11 = vpack.c.bf16 %v917_v10, %v916_v9 }
 0x159   :  { %3899 = vmatprep.subr.bf16.mxu1 %v3898_v16  ;;  %v332_v37 = vld [vmem:[#allocation2 + $0x20] sm:$0xff]  ;;  %v333_v40 = vld [vmem:[#allocation2 + $0x28] sm:$0xff]  ;;  %v933_v18 = vld [vmem:[#allocation7 + $0x118] sm:$0xff] }
 0x15a   :  { %675 = vmatmul.mubr.f32.gmra.mrb[10].mxu0 %v318_v63  ;;  %v377_v50 = vld [vmem:[#allocation2 + $0xc] sm:$0xff]  ;;  %v379_v53 = vld [vmem:[#allocation2 + $0x1c] sm:$0xff]  ;;  %v380_v55 = vld [vmem:[#allocation2 + $0x24] sm:$0xff]  ;;  %v3960_v20 = vpack.c.bf16 %v933_v18, %v932_v17 }
 0x15b   :  { %580 = vmatmul.mubr.f32.gmra.mrb[4].mxu1 %v330_v25  ;;  %679 = vmatprep.mubr.f32.mxu0 %v367_v26  ;;  %v381_v56 = vld [vmem:[#allocation2 + $0x2c] sm:$0xff]  ;;  %v899_v63 = vld [vmem:[#allocation7 + $0x8] sm:$0xff]  ;;  %v918_v21 = vld [vmem:[#allocation7 + $0xa0] sm:$0xff] }
 0x15c   :  { %3901 = vmatpush3.bf16.msra.mxu1 %v3898_v16  ;;  %584 = vmatprep.mubr.f32.mxu1 %v343_v22  ;;  %v3924_v1 = vpack.c.bf16 %v899_v63, %v898_v62  ;;  %v949_v16 = vld [vmem:[#allocation7 + $0x198] sm:$0xff]  ;;  %v919_v22 = vld [vmem:[#allocation7 + $0xa8] sm:$0xff]  ;;  %v950_v26 = vld [vmem:[#allocation7 + $0x1a0] sm:$0xff] }
 0x15d   :  { %3903 = vmatprep.subr.bf16.mxu1 %v3902_v23  ;;  %v3958_v19 = vpack.c.bf16 %v949_v16, %v948_v14  ;;  %v903_v25 = vld [vmem:[#allocation7 + $0x28] sm:$0xff]  ;;  %v953_v39 = vld [vmem:[#allocation7 + $0x1b8] sm:$0xff]  ;;  %v938_v62 = vld [vmem:[#allocation7 + $0x140] sm:$0xff] }
 0x15e   :  { %680 = vmatmul.mubr.f32.gmra.mrb[12].mxu0 %v319_v60  ;;  %v3922_v60 = vpack.c.bf16 %v915_v58, %v914_v57  ;;  %v3932_v27 = vpack.c.bf16 %v903_v25, %v902_v24  ;;  %v955_v58 = vld [vmem:[#allocation7 + $0x1c8] sm:$0xff]  ;;  %v957_v10 = vld [vmem:[#allocation7 + $0x1d8] sm:$0xff]  ;;  %v910_v18 = vld [vmem:[#allocation7 + $0x60] sm:$0xff] }
 0x15f   :  { %585 = vmatmul.mubr.f32.gmra.mrb[6].mxu1 %v331_v28  ;;  %684 = vmatprep.mubr.f32.mxu0 %v368_v31  ;;  %v951_v28 = vld [vmem:[#allocation7 + $0x1a8] sm:$0xff]  ;;  %v941_v12 = vld [vmem:[#allocation7 + $0x158] sm:$0xff] }
 0x160   :  { %3905 = vmatpush3.bf16.msra.mxu1 %v3902_v23  ;;  %589 = vmatprep.mubr.f32.mxu1 %v344_v29  ;;  %v3930_v23 = vpack.c.bf16 %v919_v22, %v918_v21  ;;  %v934_v29 = vld [vmem:[#allocation7 + $0x120] sm:$0xff]  ;;  %v3962_v31 = vpack.c.bf16 %v951_v28, %v950_v26  ;;  %v939_v63 = vld [vmem:[#allocation7 + $0x148] sm:$0xff]  ;;  %v929_v28 = vld [vmem:[#allocation7 + $0xf8] sm:$0xff] }
 0x161   :  { %3907 = vmatprep.subr.bf16.mxu1 %v3906_v30  ;;  %3923 = vmatprep.subr.bf16.mxu0 %v3922_v60  ;;  %v927_v16 = vld [vmem:[#allocation7 + $0xe8] sm:$0xff] }
 0x162   :  { %685 = vmatmul.mubr.f32.gmra.mrb[14].mxu0 %v320_v5  ;;  %v930_v5 = vld [vmem:[#allocation7 + $0x100] sm:$0xff]  ;;  %v959_v22 = vld [vmem:[#allocation7 + $0x1e8] sm:$0xff] }
 0x163   :  { %590 = vmatmul.mubr.f32.gmra.mrb[8].mxu1 %v332_v37  ;;  %689 = vmatprep.mubr.f32.mxu0 %v369_v38  ;;  %v3956_v8 = vpack.c.bf16 %v931_v6, %v930_v5  ;;  %v905_v37 = vld [vmem:[#allocation7 + $0x38] sm:$0xff]  ;;  %v952_v38 = vld [vmem:[#allocation7 + $0x1b0] sm:$0xff]  ;;  %v943_v24 = vld [vmem:[#allocation7 + $0x168] sm:$0xff] }
 0x164   :  { %3909 = vmatpush3.bf16.msra.mxu1 %v3906_v30  ;;  %594 = vmatprep.mubr.f32.mxu1 %v345_v34  ;;  %v935_v30 = vld [vmem:[#allocation7 + $0x128] sm:$0xff]  ;;  %v921_v34 = vld [vmem:[#allocation7 + $0xb8] sm:$0xff]  ;;  %v908_v6 = vld [vmem:[#allocation7 + $0x50] sm:$0xff] }
 0x165   :  { %3911 = vmatprep.subr.bf16.mxu1 %v3910_v35  ;;  %3925 = vmatpush3.bf16.msra.mxu0 %v3924_v1  ;;  %v3964_v32 = vpack.c.bf16 %v935_v30, %v934_v29  ;;  %v3934_v36 = vpack.c.bf16 %v921_v34, %v920_v33  ;;  %v924_v1 = vld [vmem:[#allocation7 + $0xd0] sm:$0xff]  ;;  %v961_v34 = vld [vmem:[#allocation7 + $0x1f8] sm:$0xff] }
 0x166   :  { %690 = vmatmul.mubr.f32.gmra.mrb[16].mxu0 %v321_v4  ;;  %v947_v4 = vld [vmem:[#allocation7 + $0x188] sm:$0xff]  ;;  %3927 = vmatprep.subr.bf16.mxu0 %v3926_v11  ;;  %v940_v11 = vld [vmem:[#allocation7 + $0x150] sm:$0xff] }
 0x167   :  { %595 = vmatmul.mubr.f32.gmra.mrb[10].mxu1 %v333_v40  ;;  %v3954_v7 = vpack.c.bf16 %v947_v4, %v946_v0  ;;  %v3972_v0 = vpack.c.bf16 %v939_v63, %v938_v62  ;;  %v925_v4 = vld [vmem:[#allocation7 + $0xd8] sm:$0xff]  ;;  %v3976_v14 = vpack.c.bf16 %v941_v12, %v940_v11  ;;  %v912_v30 = vld [vmem:[#allocation7 + $0x70] sm:$0xff] }
 0x168   :  { %3913 = vmatpush3.bf16.msra.mxu1 %v3910_v35  ;;  %3630 = vmatprep.mubr.f32.mxu1 %v376_v45  ;;  %v904_v35 = vld [vmem:[#allocation7 + $0x30] sm:$0xff]  ;;  %v922_v45 = vld [vmem:[#allocation7 + $0xc0] sm:$0xff]  ;;  %v3942_v5 = vpack.c.bf16 %v925_v4, %v924_v1 }
 0x169   :  { %3915 = vmatprep.subr.bf16.mxu1 %v3914_v41  ;;  %3929 = vmatpush3.bf16.msra.mxu0 %v3928_v15  ;;  %v3936_v40 = vpack.c.bf16 %v905_v37, %v904_v35  ;;  %v926_v15 = vld [vmem:[#allocation7 + $0xe0] sm:$0xff]  ;;  %v944_v35 = vld [vmem:[#allocation7 + $0x170] sm:$0xff] }
 0x16a   :  { %3931 = vmatprep.subr.bf16.mxu0 %v3930_v23  ;;  %v3946_v17 = vpack.c.bf16 %v927_v16, %v926_v15  ;;  %v942_v23 = vld [vmem:[#allocation7 + $0x160] sm:$0xff] }
 0x16b   :  { %v3980_v26 = vpack.c.bf16 %v943_v24, %v942_v23 }
 0x16c   :  { %3917 = vmatpush3.bf16.msra.mxu1 %v3914_v41  ;;  %v3966_v41 = vpack.c.bf16 %v953_v39, %v952_v38  ;;  %v962_v39 = vld [vmem:[#allocation7 + $0x200] sm:$0xff] }
 0x16d   :  { %3919 = vmatprep.subr.bf16.mxu1 %v3918_v48  ;;  %3933 = vmatpush3.bf16.msra.mxu0 %v3932_v27  ;;  %v928_v27 = vld [vmem:[#allocation7 + $0xf0] sm:$0xff] }
 0x16e   :  { %3935 = vmatprep.subr.bf16.mxu0 %v3934_v36  ;;  %v3950_v29 = vpack.c.bf16 %v929_v28, %v928_v27  ;;  %v945_v36 = vld [vmem:[#allocation7 + $0x178] sm:$0xff] }
 0x16f   :  { %v3984_v38 = vpack.c.bf16 %v945_v36, %v944_v35 }
 0x170   :  { %3921 = vmatpush3.bf16.msra.mxu1 %v3918_v48  ;;  %v3968_v48 = vpack.c.bf16 %v937_v44, %v936_v42 }
 0x171   :  { %3955 = vmatprep.subr.bf16.mxu1 %v3954_v7  ;;  %3937 = vmatpush3.bf16.msra.mxu0 %v3936_v40  ;;  %v909_v7 = vld [vmem:[#allocation7 + $0x58] sm:$0xff]  ;;  %v963_v40 = vld [vmem:[#allocation7 + $0x208] sm:$0xff] }
 0x172   :  { %v3944_v9 = vpack.c.bf16 %v909_v7, %v908_v6 }
 0x173   :  { %3631 = vmatmul.mubr.f32.vlgmr.msra.gmra.mrb[12].mxu1 %v377_v50  ;;  %v923_v50 = vld [vmem:[#allocation7 + $0xc8] sm:$0xff] }
 0x174   :  { %3633 = vmatprep.mubr.f32.mxu1 %v378_v51  ;;  %3957 = vmatpush3.bf16.msra.mxu1 %v3956_v8  ;;  %v3938_v51 = vpack.c.bf16 %v923_v50, %v922_v45  ;;  %v956_v8 = vld [vmem:[#allocation7 + $0x1d0] sm:$0xff] }
 0x175   :  { %3959 = vmatprep.subr.bf16.mxu1 %v3958_v19  ;;  %v3974_v13 = vpack.c.bf16 %v957_v10, %v956_v8  ;;  %v911_v19 = vld [vmem:[#allocation7 + $0x68] sm:$0xff] }
 0x176   :  { %3939 = vmatprep.subr.bf16.mxu0 %v3938_v51  ;;  %v3948_v21 = vpack.c.bf16 %v911_v19, %v910_v18 }
 0x177   :  { %3634 = vmatmul.mubr.f32.gmra.mrb[14].mxu1 %v379_v53  ;;  %v906_v53 = vld [vmem:[#allocation7 + $0x40] sm:$0xff] }
 0x178   :  { %3636 = vmatprep.mubr.f32.mxu1 %v380_v55  ;;  %3961 = vmatpush3.bf16.msra.mxu1 %v3960_v20  ;;  %v907_v55 = vld [vmem:[#allocation7 + $0x48] sm:$0xff]  ;;  %v958_v20 = vld [vmem:[#allocation7 + $0x1e0] sm:$0xff] }
 0x179   :  { %3963 = vmatprep.subr.bf16.mxu1 %v3962_v31  ;;  %v3940_v57 = vpack.c.bf16 %v907_v55, %v906_v53  ;;  %v3978_v25 = vpack.c.bf16 %v959_v22, %v958_v20  ;;  %v913_v31 = vld [vmem:[#allocation7 + $0x78] sm:$0xff] }
 0x17a   :  { %v3952_v33 = vpack.c.bf16 %v913_v31, %v912_v30 }
 0x17b   :  { %3637 = vmatmul.mubr.f32.gmra.mrb[16].mxu1 %v381_v56  ;;  %v954_v56 = vld [vmem:[#allocation7 + $0x1c0] sm:$0xff]  ;;  %3941 = vmatpush3.bf16.msra.mxu0 %v3940_v57 }
 0x17c   :  { %3965 = vmatpush3.bf16.msra.mxu1 %v3964_v32  ;;  %v3970_v60 = vpack.c.bf16 %v955_v58, %v954_v56  ;;  %3943 = vmatprep.subr.bf16.mxu0 %v3942_v5  ;;  %v960_v32 = vld [vmem:[#allocation7 + $0x1f0] sm:$0xff] }
 0x17d   :  { %3967 = vmatprep.subr.bf16.mxu1 %v3966_v41  ;;  %v3982_v37 = vpack.c.bf16 %v961_v34, %v960_v32  ;;  %v4860_v41 = vpack.c.bf16 %v963_v40, %v962_v39 }
 0x17f   :  { %3945 = vmatpush3.bf16.msra.mxu0 %v3944_v9 }
 0x180   :  { %3969 = vmatpush3.bf16.msra.mxu1 %v3968_v48  ;;  %3947 = vmatprep.subr.bf16.mxu0 %v3946_v17  ;;  %v2926_v48 = vld [vmem:[%s5018_s4] ss:$0 sm:$0xff] }
 0x181   :  { %3971 = vmatprep.subr.bf16.mxu1 %v3970_v60 }
 0x183   :  { %3949 = vmatpush3.bf16.msra.mxu0 %v3948_v21 }
 0x184   :  { %3973 = vmatpush3.bf16.msra.mxu1 %v3972_v0  ;;  %3951 = vmatprep.subr.bf16.mxu0 %v3950_v29 }
 0x185   :  { %3975 = vmatprep.subr.bf16.mxu1 %v3974_v13 }
 0x187   :  { %3953 = vmatpush3.bf16.msra.mxu0 %v3952_v33 }
 0x188   :  { %3977 = vmatpush3.bf16.msra.mxu1 %v3976_v14  ;;  %3987 = vmatprep.subr.bf16.mxu0 %v4860_v41 }
 0x189   :  { %3979 = vmatprep.subr.bf16.mxu1 %v3978_v25 }
 0x18c   :  { %3981 = vmatpush3.bf16.msra.mxu1 %v3980_v26 }
 0x18d   :  { %3983 = vmatprep.subr.bf16.mxu1 %v3982_v37 }
 0x190   :  { %3985 = vmatpush3.bf16.msra.mxu1 %v3984_v38 }
 0x225   :  { %v3021_v42 = vpop.f32.mrb[6].mxu0 }
 0x226   :  { %v2971_v44 = vpop.f32.mrb[0].mxu1  ;;  %v3022_v45 = vpop.f32.mrb[7].mxu0 }
 0x227   :  { %v2972_v50 = vpop.f32.mrb[1].mxu1  ;;  %v3023_v51 = vadd.f32 %v3022_v45, %v3021_v42 }
 0x228   :  { %v2973_v53 = vadd.f32 %v2972_v50, %v2971_v44 }
 0x229   :  { %v3024_v57 = vpop.f32.mrb[8].mxu0 }
 0x22a   :  { %v572_v55 = vadd.f32 %v2973_v53, %v2926_v48  ;;  %v2974_v56 = vpop.f32.mrb[2].mxu1  ;;  %v3025_v60 = vpop.f32.mrb[9].mxu0 }
 0x22b   :  { %v2975_v58 = vpop.f32.mrb[3].mxu1  ;;  %v3026_v63 = vadd.f32 %v3025_v60, %v3024_v57 }
 0x22c   :  { %v2976_v62 = vadd.f32 %v2975_v58, %v2974_v56  ;;  %v667_v0 = vadd.f32 %v3023_v51, %v572_v55 }
 0x22d   :  { %v3027_v5 = vpop.f32.mrb[10].mxu0 }
 0x22e   :  { %v577_v1 = vadd.f32 %v2976_v62, %v2926_v48  ;;  %v2977_v4 = vpop.f32.mrb[4].mxu1  ;;  %v3028_v7 = vpop.f32.mrb[11].mxu0 }
 0x22f   :  { %v2978_v6 = vpop.f32.mrb[5].mxu1  ;;  %v3029_v9 = vadd.f32 %v3028_v7, %v3027_v5  ;;  %v965_v7 = vld [vmem:[#allocation7 + $0x218] sm:$0xff] }
 0x230   :  { %v2979_v8 = vadd.f32 %v2978_v6, %v2977_v4  ;;  %v672_v10 = vadd.f32 %v3026_v63, %v577_v1  ;;  %v964_v6 = vld [vmem:[#allocation7 + $0x210] sm:$0xff] }
 0x231   :  { %v3030_v13 = vpop.f32.mrb[12].mxu0 }
 0x232   :  { %v582_v11 = vadd.f32 %v2979_v8, %v2926_v48  ;;  %v2980_v12 = vpop.f32.mrb[6].mxu1  ;;  %v3031_v15 = vpop.f32.mrb[13].mxu0 }
 0x233   :  { %v2981_v14 = vpop.f32.mrb[7].mxu1  ;;  %v3032_v17 = vadd.f32 %v3031_v15, %v3030_v13  ;;  %v967_v13 = vld [vmem:[#allocation7 + $0x228] sm:$0xff] }
 0x234   :  { %v2982_v16 = vadd.f32 %v2981_v14, %v2980_v12  ;;  %v677_v18 = vadd.f32 %v3029_v9, %v582_v11  ;;  %v3990_v11 = vpack.c.bf16 %v965_v7, %v964_v6  ;;  %v966_v12 = vld [vmem:[#allocation7 + $0x220] sm:$0xff]  ;;  %v1409_v6 = vld [vmem:[#allocation9 + $0x10] sm:$0xff]  ;;  %v1410_v7 = vld [vmem:[#allocation9 + $0x18] sm:$0xff] }
 0x235   :  { %v3033_v21 = vpop.f32.mrb[14].mxu0 }
 0x236   :  { %v587_v19 = vadd.f32 %v2982_v16, %v2926_v48  ;;  %v2983_v20 = vpop.f32.mrb[8].mxu1  ;;  %v3034_v23 = vpop.f32.mrb[15].mxu0  ;;  %v3994_v16 = vpack.c.bf16 %v967_v13, %v966_v12  ;;  %v1440_v12 = vld [vmem:[#allocation9 + $0x108] sm:$0xff] }
 0x237   :  { %v2984_v22 = vpop.f32.mrb[9].mxu1  ;;  %v3035_v25 = vadd.f32 %v3034_v23, %v3033_v21  ;;  %v970_v23 = vld [vmem:[#allocation7 + $0x240] sm:$0xff] }
 0x238   :  { %v2985_v24 = vadd.f32 %v2984_v22, %v2983_v20  ;;  %v682_v26 = vadd.f32 %v3032_v17, %v587_v19  ;;  %v968_v17 = vld [vmem:[#allocation7 + $0x230] sm:$0xff]  ;;  %v969_v20 = vld [vmem:[#allocation7 + $0x238] sm:$0xff] }
 0x239   :  { %v3036_v29 = vpop.f32.mrb[16].mxu0  ;;  %v3998_v22 = vpack.c.bf16 %v969_v20, %v968_v17  ;;  %v1457_v20 = vld [vmem:[#allocation9 + $0x190] sm:$0xff] }
 0x23a   :  { %v592_v27 = vadd.f32 %v2985_v24, %v2926_v48  ;;  %v2986_v28 = vpop.f32.mrb[10].mxu1  ;;  %v3037_v31 = vpop.f32.mrb[17].mxu0 }
 0x23b   :  { %v2987_v30 = vpop.f32.mrb[11].mxu1  ;;  %v3038_v33 = vadd.f32 %v3037_v31, %v3036_v29  ;;  %v973_v31 = vld [vmem:[#allocation7 + $0x258] sm:$0xff] }
 0x23c   :  { %v2988_v32 = vadd.f32 %v2987_v30, %v2986_v28  ;;  %v687_v34 = vadd.f32 %v3035_v25, %v592_v27  ;;  %v971_v25 = vld [vmem:[#allocation7 + $0x248] sm:$0xff]  ;;  %v972_v28 = vld [vmem:[#allocation7 + $0x250] sm:$0xff] }
 0x23d   :  { %v4002_v27 = vpack.c.bf16 %v971_v25, %v970_v23  ;;  %v1441_v23 = vld [vmem:[#allocation9 + $0x110] sm:$0xff] }
 0x23e   :  { %v597_v35 = vadd.f32 %v2988_v32, %v2926_v48 }
 0x240   :  { %v692_v36 = vadd.f32 %v3038_v33, %v597_v35  ;;  %v4006_v33 = vpack.c.bf16 %v973_v31, %v972_v28  ;;  %v1459_v31 = vld [vmem:[#allocation9 + $0x1a0] sm:$0xff] }
 0x246   :  { %v3632_v37 = vpop.f32.mrb[12].mxu1 }
 0x247   :  { %v767_v38 = vadd.f32 %v3632_v37, %v672_v10  ;;  %v761_v39 = vpop.f32.mrb[13].mxu1  ;;  %v975_v37 = vld [vmem:[#allocation7 + $0x268] sm:$0xff] }
 0x248   :  { %v762_v40 = vadd.f32 %v761_v39, %v667_v0 }
 0x249   :  { %v797_v42 = vmax.f32 %v767_v38, 0.0 }
 0x24a   :  { %v790_v44 = vsel %vm140_vm1, %v762_v40, 0.0  ;;  %v3635_v45 = vpop.f32.mrb[14].mxu1 }
 0x24b   :  { %803 = vst [vmem:[#allocation2 + $0xa] sm:$0xff] %v797_v42  ;;  %v796_v50 = vmax.f32 %v790_v44, 0.0  ;;  %v777_v51 = vadd.f32 %v3635_v45, %v682_v26  ;;  %v771_v53 = vpop.f32.mrb[15].mxu1  ;;  %v977_v44 = vld [vmem:[#allocation7 + $0x278] sm:$0xff] }
 0x24c   :  { %v772_v55 = vadd.f32 %v771_v53, %v677_v18 }
 0x24d   :  { %802 = vst [vmem:[#allocation2 + $0x2] sm:$0xff] %v796_v50  ;;  %v793_v56 = vsel %vm161_vm2, %v777_v51, 0.0 }
 0x24e   :  { %v799_v48 = vmax.f32 %v793_v56, 0.0  ;;  %v792_v57 = vsel %vm148_vm3, %v772_v55, 0.0  ;;  %v3638_v58 = vpop.f32.mrb[16].mxu1 }
 0x24f   :  { %v798_v60 = vmax.f32 %v792_v57, 0.0  ;;  %v787_v62 = vadd.f32 %v3638_v58, %v692_v36  ;;  %v781_v63 = vpop.f32.mrb[17].mxu1  ;;  %v1423_v57 = vld [vmem:[#allocation9 + $0x80] sm:$0xff]  ;;  %v1424_v58 = vld [vmem:[#allocation9 + $0x88] sm:$0xff] }
 0x250   :  { %805 = vst [vmem:[#allocation2 + $0x1a] sm:$0xff] %v799_v48  ;;  %v4872_v0 = vadd.f32 %v781_v63, %v687_v34  ;;  %v974_v34 = vld [vmem:[#allocation7 + $0x260] sm:$0xff]  ;;  %v1408_v63 = vld [vmem:[#allocation9 + $0x8] sm:$0xff] }
 0x251   :  { %804 = vst [vmem:[#allocation2 + $0x12] sm:$0xff] %v798_v60  ;;  %v4876_v1 = vsel %vm169_vm4, %v787_v62, 0.0  ;;  %v4010_v39 = vpack.c.bf16 %v975_v37, %v974_v34  ;;  %v1407_v62 = vld [vmem:[#allocation9] sm:$0xff] }
 0x252   :  { %v801_v4 = vmax.f32 %v4876_v1, 0.0  ;;  %v800_v5 = vmax.f32 %v4872_v0, 0.0  ;;  %v4020_v0 = vpack.c.bf16 %v1408_v63, %v1407_v62  ;;  %v1425_v1 = vld [vmem:[#allocation9 + $0x90] sm:$0xff]  ;;  %v1443_v34 = vld [vmem:[#allocation9 + $0x120] sm:$0xff]  ;;  %v1418_v63 = vld [vmem:[#allocation9 + $0x58] sm:$0xff] }
 0x253   :  { %v1417_v62 = vld [vmem:[#allocation9 + $0x50] sm:$0xff] }
 0x254   :  { %v844_v8 = vld [vmem:[#allocation2 + $0x3] sm:$0xff]  ;;  %807 = vst [vmem:[#allocation2 + $0x2a] sm:$0xff] %v801_v4  ;;  %806 = vst [vmem:[#allocation2 + $0x22] sm:$0xff] %v800_v5 }
 0x255   :  { %v820_v9 = vld [vmem:[#allocation2 + $0x1] sm:$0xff]  ;;  %1144 = vmatprep.mubr.f32.mxu1 %v844_v8  ;;  %v821_v14 = vld [vmem:[#allocation2 + $0x9] sm:$0xff]  ;;  %v1455_v8 = vld [vmem:[#allocation9 + $0x180] sm:$0xff] }
 0x256   :  { %v808_v10 = vld [vmem:[#allocation2] sm:$0xff]  ;;  %1049 = vmatprep.mubr.f32.mxu0 %v820_v9  ;;  %1145 = vmatmul.mubr.f32.vlgmr.msra.gmra.mrb[18].mxu1 %v796_v50  ;;  %v809_v18 = vld [vmem:[#allocation2 + $0x8] sm:$0xff]  ;;  %v4024_v9 = vpack.c.bf16 %v1410_v7, %v1409_v6 }
 0x257   :  { %1050 = vmatmul.mubr.f32.vlgmr.msra.gmra.mrb[18].mxu0 %v808_v10  ;;  %v856_v45 = vld [vmem:[#allocation2 + $0x4] sm:$0xff] }
 0x258   :  { %3989 = vmatpush3.bf16.msra.mxu0 %v4860_v41  ;;  %1054 = vmatprep.mubr.f32.mxu0 %v821_v14  ;;  %v845_v15 = vld [vmem:[#allocation2 + $0xb] sm:$0xff]  ;;  %v846_v19 = vld [vmem:[#allocation2 + $0x13] sm:$0xff]  ;;  %v1456_v10 = vld [vmem:[#allocation9 + $0x188] sm:$0xff] }
 0x259   :  { %1149 = vmatprep.mubr.f32.mxu1 %v845_v15  ;;  %3991 = vmatprep.subr.bf16.mxu0 %v3990_v11  ;;  %v822_v21 = vld [vmem:[#allocation2 + $0x11] sm:$0xff]  ;;  %v823_v26 = vld [vmem:[#allocation2 + $0x19] sm:$0xff]  ;;  %v4050_v13 = vpack.c.bf16 %v1456_v10, %v1455_v8 }
 0x25a   :  { %1150 = vmatmul.mubr.f32.gmra.mrb[20].mxu1 %v797_v42  ;;  %v810_v24 = vld [vmem:[#allocation2 + $0x10] sm:$0xff]  ;;  %v811_v29 = vld [vmem:[#allocation2 + $0x18] sm:$0xff]  ;;  %v976_v42 = vld [vmem:[#allocation7 + $0x270] sm:$0xff] }
 0x25b   :  { %1055 = vmatmul.mubr.f32.gmra.mrb[20].mxu0 %v809_v18  ;;  %1154 = vmatprep.mubr.f32.mxu1 %v846_v19  ;;  %v847_v41 = vld [vmem:[#allocation2 + $0x1b] sm:$0xff]  ;;  %v848_v30 = vld [vmem:[#allocation2 + $0x23] sm:$0xff]  ;;  %v849_v36 = vld [vmem:[#allocation2 + $0x2b] sm:$0xff]  ;;  %v4014_v50 = vpack.c.bf16 %v977_v44, %v976_v42 }
 0x25c   :  { %3993 = vmatpush3.bf16.msra.mxu0 %v3990_v11  ;;  %1059 = vmatprep.mubr.f32.mxu0 %v822_v21  ;;  %v824_v32 = vld [vmem:[#allocation2 + $0x21] sm:$0xff]  ;;  %v825_v38 = vld [vmem:[#allocation2 + $0x29] sm:$0xff]  ;;  %v858_v53 = vld [vmem:[#allocation2 + $0x14] sm:$0xff] }
 0x25d   :  { %3995 = vmatprep.subr.bf16.mxu0 %v3994_v16  ;;  %v812_v35 = vld [vmem:[#allocation2 + $0x20] sm:$0xff]  ;;  %v813_v40 = vld [vmem:[#allocation2 + $0x28] sm:$0xff]  ;;  %v1439_v11 = vld [vmem:[#allocation9 + $0x100] sm:$0xff] }
 0x25e   :  { %1155 = vmatmul.mubr.f32.gmra.mrb[22].mxu1 %v798_v60  ;;  %v857_v51 = vld [vmem:[#allocation2 + $0xc] sm:$0xff]  ;;  %v859_v55 = vld [vmem:[#allocation2 + $0x1c] sm:$0xff]  ;;  %v860_v56 = vld [vmem:[#allocation2 + $0x24] sm:$0xff]  ;;  %v4018_v60 = vpack.c.bf16 %v1424_v58, %v1423_v57  ;;  %v4052_v14 = vpack.c.bf16 %v1440_v12, %v1439_v11 }
 0x25f   :  { %1060 = vmatmul.mubr.f32.gmra.mrb[22].mxu0 %v810_v24  ;;  %1159 = vmatprep.mubr.f32.mxu1 %v847_v41  ;;  %v1427_v15 = vld [vmem:[#allocation9 + $0xa0] sm:$0xff]  ;;  %v1412_v19 = vld [vmem:[#allocation9 + $0x28] sm:$0xff]  ;;  %v1442_v24 = vld [vmem:[#allocation9 + $0x118] sm:$0xff] }
 0x260   :  { %3997 = vmatpush3.bf16.msra.mxu0 %v3994_v16  ;;  %1064 = vmatprep.mubr.f32.mxu0 %v823_v26  ;;  %v1428_v16 = vld [vmem:[#allocation9 + $0xa8] sm:$0xff]  ;;  %v1411_v18 = vld [vmem:[#allocation9 + $0x20] sm:$0xff]  ;;  %v4056_v25 = vpack.c.bf16 %v1442_v24, %v1441_v23  ;;  %v1429_v26 = vld [vmem:[#allocation9 + $0xb0] sm:$0xff] }
 0x261   :  { %3999 = vmatprep.subr.bf16.mxu0 %v3998_v22  ;;  %4019 = vmatprep.subr.bf16.mxu1 %v4018_v60  ;;  %v4026_v17 = vpack.c.bf16 %v1428_v16, %v1427_v15  ;;  %v4028_v21 = vpack.c.bf16 %v1412_v19, %v1411_v18  ;;  %v1415_v42 = vld [vmem:[#allocation9 + $0x40] sm:$0xff]  ;;  %v1416_v44 = vld [vmem:[#allocation9 + $0x48] sm:$0xff]  ;;  %v1433_v57 = vld [vmem:[#allocation9 + $0xd0] sm:$0xff] }
 0x262   :  { %1160 = vmatmul.mubr.f32.gmra.mrb[24].mxu1 %v799_v48  ;;  %v861_v48 = vld [vmem:[#allocation2 + $0x2c] sm:$0xff]  ;;  %v1448_v6 = vld [vmem:[#allocation9 + $0x148] sm:$0xff]  ;;  %v1419_v11 = vld [vmem:[#allocation9 + $0x60] sm:$0xff] }
 0x263   :  { %1065 = vmatmul.mubr.f32.gmra.mrb[24].mxu0 %v811_v29  ;;  %1164 = vmatprep.mubr.f32.mxu1 %v848_v30  ;;  %v1413_v29 = vld [vmem:[#allocation9 + $0x30] sm:$0xff]  ;;  %v1414_v30 = vld [vmem:[#allocation9 + $0x38] sm:$0xff]  ;;  %v1436_v10 = vld [vmem:[#allocation9 + $0xe8] sm:$0xff] }
 0x264   :  { %4001 = vmatpush3.bf16.msra.mxu0 %v3998_v22  ;;  %1069 = vmatprep.mubr.f32.mxu0 %v824_v32  ;;  %v1458_v22 = vld [vmem:[#allocation9 + $0x198] sm:$0xff]  ;;  %v4032_v32 = vpack.c.bf16 %v1414_v30, %v1413_v29  ;;  %v1449_v18 = vld [vmem:[#allocation9 + $0x150] sm:$0xff]  ;;  %v1452_v30 = vld [vmem:[#allocation9 + $0x168] sm:$0xff] }
 0x265   :  { %4003 = vmatprep.subr.bf16.mxu0 %v4002_v27  ;;  %4021 = vmatpush3.bf16.msra.mxu1 %v4020_v0  ;;  %v4054_v41 = vpack.c.bf16 %v1458_v22, %v1457_v20  ;;  %v1434_v58 = vld [vmem:[#allocation9 + $0xd8] sm:$0xff]  ;;  %v1463_v0 = vld [vmem:[#allocation9 + $0x1c0] sm:$0xff]  ;;  %v1437_v20 = vld [vmem:[#allocation9 + $0xf0] sm:$0xff] }
 0x266   :  { %1165 = vmatmul.mubr.f32.gmra.mrb[26].mxu1 %v800_v5  ;;  %v4038_v60 = vpack.c.bf16 %v1434_v58, %v1433_v57  ;;  %v1466_v15 = vld [vmem:[#allocation9 + $0x1d8] sm:$0xff]  ;;  %v1421_v23 = vld [vmem:[#allocation9 + $0x70] sm:$0xff] }
 0x267   :  { %1070 = vmatmul.mubr.f32.gmra.mrb[26].mxu0 %v812_v35  ;;  %1169 = vmatprep.mubr.f32.mxu1 %v849_v36  ;;  %v1444_v35 = vld [vmem:[#allocation9 + $0x128] sm:$0xff]  ;;  %v1450_v19 = vld [vmem:[#allocation9 + $0x158] sm:$0xff] }
 0x268   :  { %4005 = vmatpush3.bf16.msra.mxu0 %v4002_v27  ;;  %1074 = vmatprep.mubr.f32.mxu0 %v825_v38  ;;  %v1430_v27 = vld [vmem:[#allocation9 + $0xb8] sm:$0xff]  ;;  %v4060_v37 = vpack.c.bf16 %v1444_v35, %v1443_v34  ;;  %v1431_v38 = vld [vmem:[#allocation9 + $0xc0] sm:$0xff]  ;;  %v1469_v35 = vld [vmem:[#allocation9 + $0x1f0] sm:$0xff] }
 0x269   :  { %4007 = vmatprep.subr.bf16.mxu0 %v4006_v33  ;;  %v4030_v28 = vpack.c.bf16 %v1430_v27, %v1429_v26  ;;  %v1438_v22 = vld [vmem:[#allocation9 + $0xf8] sm:$0xff]  ;;  %v1468_v26 = vld [vmem:[#allocation9 + $0x1e8] sm:$0xff]  ;;  %v1451_v27 = vld [vmem:[#allocation9 + $0x160] sm:$0xff] }
 0x26a   :  { %1170 = vmatmul.mubr.f32.gmra.mrb[28].mxu1 %v801_v4  ;;  %v1426_v4 = vld [vmem:[#allocation9 + $0x98] sm:$0xff] }
 0x26b   :  { %1075 = vmatmul.mubr.f32.gmra.mrb[28].mxu0 %v813_v40  ;;  %v4022_v5 = vpack.c.bf16 %v1426_v4, %v1425_v1  ;;  %v4040_v1 = vpack.c.bf16 %v1418_v63, %v1417_v62  ;;  %v1464_v4 = vld [vmem:[#allocation9 + $0x1c8] sm:$0xff]  ;;  %v1422_v24 = vld [vmem:[#allocation9 + $0x78] sm:$0xff] }
 0x26c   :  { %4009 = vmatpush3.bf16.msra.mxu0 %v4006_v33  ;;  %3671 = vmatprep.mubr.f32.mxu0 %v856_v45  ;;  %v1460_v33 = vld [vmem:[#allocation9 + $0x1a8] sm:$0xff]  ;;  %v1461_v45 = vld [vmem:[#allocation9 + $0x1b0] sm:$0xff]  ;;  %v4066_v7 = vpack.c.bf16 %v1464_v4, %v1463_v0 }
 0x26d   :  { %4011 = vmatprep.subr.bf16.mxu0 %v4010_v39  ;;  %4023 = vmatprep.subr.bf16.mxu1 %v4022_v5  ;;  %v4058_v36 = vpack.c.bf16 %v1460_v33, %v1459_v31  ;;  %v1447_v5 = vld [vmem:[#allocation9 + $0x140] sm:$0xff]  ;;  %v4076_v31 = vpack.c.bf16 %v1452_v30, %v1451_v27  ;;  %v1472_v33 = vld [vmem:[#allocation9 + $0x208] sm:$0xff] }
 0x26e   :  { %4025 = vmatpush3.bf16.msra.mxu1 %v4024_v9  ;;  %v4068_v8 = vpack.c.bf16 %v1448_v6, %v1447_v5  ;;  %v1435_v9 = vld [vmem:[#allocation9 + $0xe0] sm:$0xff] }
 0x26f   :  { %4027 = vmatprep.subr.bf16.mxu1 %v4026_v17  ;;  %v4042_v12 = vpack.c.bf16 %v1436_v10, %v1435_v9 }
 0x270   :  { %4013 = vmatpush3.bf16.msra.mxu0 %v4010_v39  ;;  %v1432_v39 = vld [vmem:[#allocation9 + $0xc8] sm:$0xff] }
 0x271   :  { %4015 = vmatprep.subr.bf16.mxu0 %v4014_v50  ;;  %v4034_v40 = vpack.c.bf16 %v1432_v39, %v1431_v38  ;;  %v1453_v38 = vld [vmem:[#allocation9 + $0x170] sm:$0xff]  ;;  %v1454_v39 = vld [vmem:[#allocation9 + $0x178] sm:$0xff] }
 0x272   :  { %4029 = vmatpush3.bf16.msra.mxu1 %v4028_v21  ;;  %v4072_v21 = vpack.c.bf16 %v1450_v19, %v1449_v18 }
 0x273   :  { %4031 = vmatprep.subr.bf16.mxu1 %v4030_v28  ;;  %v4048_v28 = vpack.c.bf16 %v1422_v24, %v1421_v23 }
 0x274   :  { %4017 = vmatpush3.bf16.msra.mxu0 %v4014_v50  ;;  %v4036_v50 = vpack.c.bf16 %v1416_v44, %v1415_v42 }
 0x275   :  { %4051 = vmatprep.subr.bf16.mxu0 %v4050_v13  ;;  %v1420_v13 = vld [vmem:[#allocation9 + $0x68] sm:$0xff] }
 0x276   :  { %4033 = vmatpush3.bf16.msra.mxu1 %v4032_v32  ;;  %v4044_v16 = vpack.c.bf16 %v1420_v13, %v1419_v11  ;;  %v1471_v32 = vld [vmem:[#allocation9 + $0x200] sm:$0xff] }
 0x277   :  { %3672 = vmatmul.mubr.f32.vlgmr.msra.gmra.mrb[30].mxu0 %v857_v51  ;;  %v1462_v51 = vld [vmem:[#allocation9 + $0x1b8] sm:$0xff]  ;;  %4035 = vmatprep.subr.bf16.mxu1 %v4034_v40  ;;  %v4885_v34 = vpack.c.bf16 %v1472_v33, %v1471_v32  ;;  %v4080_v40 = vpack.c.bf16 %v1454_v39, %v1453_v38 }
 0x278   :  { %3674 = vmatprep.mubr.f32.mxu0 %v858_v53  ;;  %4053 = vmatpush3.bf16.msra.mxu0 %v4052_v14  ;;  %v1445_v53 = vld [vmem:[#allocation9 + $0x130] sm:$0xff] }
 0x279   :  { %4055 = vmatprep.subr.bf16.mxu0 %v4054_v41  ;;  %v1465_v14 = vld [vmem:[#allocation9 + $0x1d0] sm:$0xff]  ;;  %v4046_v41 = vpack.c.bf16 %v1438_v22, %v1437_v20 }
 0x27a   :  { %4037 = vmatpush3.bf16.msra.mxu1 %v4036_v50  ;;  %v4070_v17 = vpack.c.bf16 %v1466_v15, %v1465_v14  ;;  %v2927_v50 = vld [vmem:[%s5020_s6] ss:$0 sm:$0xff] }
 0x27b   :  { %3675 = vmatmul.mubr.f32.gmra.mrb[32].mxu0 %v859_v55  ;;  %v1446_v55 = vld [vmem:[#allocation9 + $0x138] sm:$0xff]  ;;  %4039 = vmatprep.subr.bf16.mxu1 %v4038_v60 }
 0x27c   :  { %3677 = vmatprep.mubr.f32.mxu0 %v860_v56  ;;  %4057 = vmatpush3.bf16.msra.mxu0 %v4056_v25  ;;  %v4062_v56 = vpack.c.bf16 %v1462_v51, %v1461_v45  ;;  %v1467_v25 = vld [vmem:[#allocation9 + $0x1e0] sm:$0xff] }
 0x27d   :  { %4059 = vmatprep.subr.bf16.mxu0 %v4058_v36  ;;  %v4074_v29 = vpack.c.bf16 %v1468_v26, %v1467_v25  ;;  %v1470_v36 = vld [vmem:[#allocation9 + $0x1f8] sm:$0xff] }
 0x27e   :  { %4041 = vmatpush3.bf16.msra.mxu1 %v4040_v1 }
 0x27f   :  { %3678 = vmatmul.mubr.f32.gmra.mrb[34].mxu0 %v861_v48  ;;  %v4064_v48 = vpack.c.bf16 %v1446_v55, %v1445_v53  ;;  %4043 = vmatprep.subr.bf16.mxu1 %v4042_v12 }
 0x280   :  { %4061 = vmatpush3.bf16.msra.mxu0 %v4060_v37  ;;  %v4078_v37 = vpack.c.bf16 %v1470_v36, %v1469_v35 }
 0x281   :  { %4063 = vmatprep.subr.bf16.mxu0 %v4062_v56 }
 0x282   :  { %4045 = vmatpush3.bf16.msra.mxu1 %v4044_v16 }
 0x283   :  { %4047 = vmatprep.subr.bf16.mxu1 %v4046_v41 }
 0x284   :  { %4065 = vmatpush3.bf16.msra.mxu0 %v4064_v48 }
 0x285   :  { %4067 = vmatprep.subr.bf16.mxu0 %v4066_v7 }
 0x286   :  { %4049 = vmatpush3.bf16.msra.mxu1 %v4048_v28 }
 0x287   :  { %4083 = vmatprep.subr.bf16.mxu1 %v4885_v34 }
 0x288   :  { %4069 = vmatpush3.bf16.msra.mxu0 %v4068_v8 }
 0x289   :  { %4071 = vmatprep.subr.bf16.mxu0 %v4070_v17 }
 0x28c   :  { %4073 = vmatpush3.bf16.msra.mxu0 %v4072_v21 }
 0x28d   :  { %4075 = vmatprep.subr.bf16.mxu0 %v4074_v29 }
 0x290   :  { %4077 = vmatpush3.bf16.msra.mxu0 %v4076_v31 }
 0x291   :  { %4079 = vmatprep.subr.bf16.mxu0 %v4078_v37 }
 0x294   :  { %4081 = vmatpush3.bf16.msra.mxu0 %v4080_v40 }
 0x329   :  { %v3143_v42 = vpop.f32.mrb[18].mxu1 }
 0x32a   :  { %v3093_v44 = vpop.f32.mrb[18].mxu0  ;;  %v3144_v45 = vpop.f32.mrb[19].mxu1 }
 0x32b   :  { %v3094_v51 = vpop.f32.mrb[19].mxu0  ;;  %v3145_v53 = vadd.f32 %v3144_v45, %v3143_v42 }
 0x32c   :  { %v3095_v55 = vadd.f32 %v3094_v51, %v3093_v44 }
 0x32d   :  { %v3146_v56 = vpop.f32.mrb[20].mxu1 }
 0x32e   :  { %v1052_v48 = vadd.f32 %v3095_v55, %v2927_v50  ;;  %v3096_v57 = vpop.f32.mrb[20].mxu0  ;;  %v3147_v58 = vpop.f32.mrb[21].mxu1 }
 0x32f   :  { %v3097_v60 = vpop.f32.mrb[21].mxu0  ;;  %v3148_v62 = vadd.f32 %v3147_v58, %v3146_v56 }
 0x330   :  { %v3098_v63 = vadd.f32 %v3097_v60, %v3096_v57  ;;  %v1147_v0 = vadd.f32 %v3145_v53, %v1052_v48 }
 0x331   :  { %v3149_v1 = vpop.f32.mrb[22].mxu1 }
 0x332   :  { %v1057_v4 = vadd.f32 %v3098_v63, %v2927_v50  ;;  %v3099_v5 = vpop.f32.mrb[22].mxu0  ;;  %v3150_v6 = vpop.f32.mrb[23].mxu1 }
 0x333   :  { %v3100_v7 = vpop.f32.mrb[23].mxu0  ;;  %v3151_v8 = vadd.f32 %v3150_v6, %v3149_v1  ;;  %v4584_v6 = vmov 0.0  }
 0x334   :  { %v3101_v9 = vadd.f32 %v3100_v7, %v3099_v5  ;;  %v1152_v10 = vadd.f32 %v3148_v62, %v1057_v4 }
 0x335   :  { %v3152_v11 = vpop.f32.mrb[24].mxu1 }
 0x336   :  { %v1062_v12 = vadd.f32 %v3101_v9, %v2927_v50  ;;  %v3102_v13 = vpop.f32.mrb[24].mxu0  ;;  %v3153_v14 = vpop.f32.mrb[25].mxu1 }
 0x337   :  { %v3103_v15 = vpop.f32.mrb[25].mxu0  ;;  %v3154_v16 = vadd.f32 %v3153_v14, %v3152_v11  ;;  %v1474_v14 = vld [vmem:[#allocation9 + $0x218] sm:$0xff] }
 0x338   :  { %v3104_v17 = vadd.f32 %v3103_v15, %v3102_v13  ;;  %v1157_v18 = vadd.f32 %v3151_v8, %v1062_v12  ;;  %v1473_v13 = vld [vmem:[#allocation9 + $0x210] sm:$0xff] }
 0x339   :  { %v3155_v19 = vpop.f32.mrb[26].mxu1 }
 0x33a   :  { %v1067_v20 = vadd.f32 %v3104_v17, %v2927_v50  ;;  %v3105_v21 = vpop.f32.mrb[26].mxu0  ;;  %v3156_v22 = vpop.f32.mrb[27].mxu1 }
 0x33b   :  { %v3106_v23 = vpop.f32.mrb[27].mxu0  ;;  %v3157_v24 = vadd.f32 %v3156_v22, %v3155_v19  ;;  %v1475_v22 = vld [vmem:[#allocation9 + $0x220] sm:$0xff] }
 0x33c   :  { %v3107_v41 = vadd.f32 %v3106_v23, %v3105_v21  ;;  %v1162_v25 = vadd.f32 %v3154_v16, %v1067_v20  ;;  %v4086_v21 = vpack.c.bf16 %v1474_v14, %v1473_v13  ;;  %v1476_v23 = vld [vmem:[#allocation9 + $0x228] sm:$0xff]  ;;  %v1871_v13 = vld [vmem:[#allocation10 + $0x190] sm:$0xff]  ;;  %v1872_v14 = vld [vmem:[#allocation10 + $0x198] sm:$0xff] }
 0x33d   :  { %v3158_v26 = vpop.f32.mrb[28].mxu1 }
 0x33e   :  { %v1072_v27 = vadd.f32 %v3107_v41, %v2927_v50  ;;  %v3108_v28 = vpop.f32.mrb[28].mxu0  ;;  %v3159_v29 = vpop.f32.mrb[29].mxu1 }
 0x33f   :  { %v3109_v30 = vpop.f32.mrb[29].mxu0  ;;  %v3160_v31 = vadd.f32 %v3159_v29, %v3158_v26  ;;  %v4090_v26 = vpack.c.bf16 %v1476_v23, %v1475_v22  ;;  %v1842_v23 = vld [vmem:[#allocation10 + $0xa8] sm:$0xff] }
 0x340   :  { %v3110_v32 = vadd.f32 %v3109_v30, %v3108_v28  ;;  %v1167_v33 = vadd.f32 %v3157_v24, %v1072_v27  ;;  %v1477_v27 = vld [vmem:[#allocation9 + $0x230] sm:$0xff]  ;;  %v1478_v28 = vld [vmem:[#allocation9 + $0x238] sm:$0xff] }
 0x342   :  { %v1077_v35 = vadd.f32 %v3110_v32, %v2927_v50 }
 0x344   :  { %v1172_v36 = vadd.f32 %v3160_v31, %v1077_v35  ;;  %v4094_v31 = vpack.c.bf16 %v1478_v28, %v1477_v27  ;;  %v1873_v27 = vld [vmem:[#allocation10 + $0x1a0] sm:$0xff]  ;;  %v1874_v28 = vld [vmem:[#allocation10 + $0x1a8] sm:$0xff] }
 0x34a   :  { %v3673_v37 = vpop.f32.mrb[30].mxu0 }
 0x34b   :  { %v1247_v38 = vadd.f32 %v3673_v37, %v1152_v10  ;;  %v1241_v39 = vpop.f32.mrb[31].mxu0 }
 0x34c   :  { %v1242_v40 = vadd.f32 %v1241_v39, %v1147_v0  ;;  %v1481_v39 = vld [vmem:[#allocation9 + $0x250] sm:$0xff] }
 0x34d   :  { %v1277_v42 = vadd.f32 %v1247_v38, %v4812_v47 }
 0x34e   :  { %v1270_v44 = vsel %vm140_vm1, %v1242_v40, 0.0  ;;  %v3676_v45 = vpop.f32.mrb[32].mxu0  ;;  %v1482_v40 = vld [vmem:[#allocation9 + $0x258] sm:$0xff] }
 0x34f   :  { %1283 = vst [vmem:[#allocation2 + $0xa] sm:$0xff] %v1277_v42  ;;  %v1276_v51 = vadd.f32 %v1270_v44, %v4821_v52  ;;  %v1257_v53 = vadd.f32 %v3676_v45, %v1162_v25  ;;  %v1251_v55 = vpop.f32.mrb[33].mxu0  ;;  %v4102_v45 = vpack.c.bf16 %v1482_v40, %v1481_v39  ;;  %v1876_v39 = vld [vmem:[#allocation10 + $0x1b8] sm:$0xff]  ;;  %v1859_v40 = vld [vmem:[#allocation10 + $0x130] sm:$0xff] }
 0x350   :  { %v1252_v56 = vadd.f32 %v1251_v55, %v1157_v18 }
 0x351   :  { %1282 = vst [vmem:[#allocation2 + $0x2] sm:$0xff] %v1276_v51  ;;  %v1273_v50 = vsel %vm161_vm2, %v1257_v53, 0.0  ;;  %v1483_v51 = vld [vmem:[#allocation9 + $0x260] sm:$0xff]  ;;  %v1484_v53 = vld [vmem:[#allocation9 + $0x268] sm:$0xff] }
 0x352   :  { %v1279_v48 = vadd.f32 %v1273_v50, %v4831_v59  ;;  %v1272_v57 = vsel %vm148_vm3, %v1252_v56, 0.0  ;;  %v3679_v47 = vpop.f32.mrb[34].mxu0  ;;  %v4106_v55 = vpack.c.bf16 %v1484_v53, %v1483_v51  ;;  %v1485_v56 = vld [vmem:[#allocation9 + $0x270] sm:$0xff]  ;;  %v1486_v50 = vld [vmem:[#allocation9 + $0x278] sm:$0xff]  ;;  %v1845_v51 = vld [vmem:[#allocation10 + $0xc0] sm:$0xff] }
 0x353   :  { %v1278_v58 = vadd.f32 %v1272_v57, %v4836_v61  ;;  %v1267_v60 = vadd.f32 %v3679_v47, %v1172_v36  ;;  %v1261_v62 = vpop.f32.mrb[35].mxu0  ;;  %v1846_v53 = vld [vmem:[#allocation10 + $0xc8] sm:$0xff] }
 0x354   :  { %1285 = vst [vmem:[#allocation2 + $0x1a] sm:$0xff] %v1279_v48  ;;  %v1262_v63 = vadd.f32 %v1261_v62, %v1167_v33  ;;  %v1480_v33 = vld [vmem:[#allocation9 + $0x248] sm:$0xff]  ;;  %v4110_v48 = vpack.c.bf16 %v1486_v50, %v1485_v56  ;;  %v1829_v50 = vld [vmem:[#allocation10 + $0x40] sm:$0xff] }
 0x355   :  { %1284 = vst [vmem:[#allocation2 + $0x12] sm:$0xff] %v1278_v58  ;;  %v1275_v52 = vsel %vm169_vm4, %v1267_v60, 0.0  ;;  %v1837_v60 = vld [vmem:[#allocation10 + $0x80] sm:$0xff]  ;;  %v1838_v62 = vld [vmem:[#allocation10 + $0x88] sm:$0xff] }
 0x356   :  { %v1281_v0 = vadd.f32 %v1275_v52, %v4846_v3  ;;  %v1280_v1 = vadd.f32 %v1262_v63, %v4842_v2  ;;  %v4114_v63 = vpack.c.bf16 %v1838_v62, %v1837_v60  ;;  %v1821_v52 = vld [vmem:[#allocation10] sm:$0xff]  ;;  %v1862_v62 = vld [vmem:[#allocation10 + $0x148] sm:$0xff] }
 0x357   :  { %v1861_v60 = vld [vmem:[#allocation10 + $0x140] sm:$0xff] }
 0x358   :  { %1287 = vst [vmem:[#allocation2 + $0x2a] sm:$0xff] %v1281_v0  ;;  %1286 = vst [vmem:[#allocation2 + $0x22] sm:$0xff] %v1280_v1  ;;  %v1289_v59 = vld [vmem:[#allocation2 + $0x2] ss:$2 sm:$0xff]  ;;  %v1295_v4 = vld [vmem:[#allocation2 + $0x3] ss:$2 sm:$0xff]  ;;  %4115 = vmatprep.subr.bf16.mxu0 %v4114_v63 }
 0x359   :  { %v1300_v5 = vmax.f32 %v1289_v59, %v1295_v4  ;;  %1303 = vst [vmem:[#allocation2 + $0x2] sm:$0xff] %v4584_v6  ;;  %1304 = vst [vmem:[#allocation2 + $0xa] sm:$0xff] %v4584_v6  ;;  %v1822_v0 = vld [vmem:[#allocation10 + $0x8] sm:$0xff]  ;;  %v1869_v1 = vld [vmem:[#allocation10 + $0x180] sm:$0xff] }
 0x35a   :  { %v4116_v59 = vpack.c.bf16 %v1822_v0, %v1821_v52  ;;  %v1870_v4 = vld [vmem:[#allocation10 + $0x188] sm:$0xff]  ;;  %v4164_v52 = vpack.c.bf16 %v1862_v62, %v1861_v60  ;;  %v1847_v0 = vld [vmem:[#allocation10 + $0xd0] sm:$0xff] }
 0x35b   :  { %1307 = vst [vmem:[#allocation2 + $0x3] sm:$0xfe] %v1300_v5  ;;  %v1853_v5 = vld [vmem:[#allocation10 + $0x100] sm:$0xff] }
 0x35c   :  { %v1291_v61 = vld [vmem:[#allocation2 + $0x12] ss:$2 sm:$0xff]  ;;  %v1297_v7 = vld [vmem:[#allocation2 + $0x13] ss:$2 sm:$0xff] }
 0x35d   :  { %v1301_v8 = vmax.f32 %v1291_v61, %v1297_v7  ;;  %1305 = vst [vmem:[#allocation2 + $0x12] sm:$0xff] %v4584_v6  ;;  %1306 = vst [vmem:[#allocation2 + $0x1a] sm:$0xff] %v4584_v6  ;;  %v1854_v61 = vld [vmem:[#allocation10 + $0x108] sm:$0xff]  ;;  %v4146_v7 = vpack.c.bf16 %v1870_v4, %v1869_v1  ;;  %v1848_v1 = vld [vmem:[#allocation10 + $0xd8] sm:$0xff] }
 0x35e   :  { %v1831_v4 = vld [vmem:[#allocation10 + $0x50] sm:$0xff] }
 0x35f   :  { %v1293_v54 = vld [vmem:[#allocation2 + $0x22] ss:$2 sm:$0xff]  ;;  %v1299_v2 = vld [vmem:[#allocation2 + $0x23] ss:$2 sm:$0xff]  ;;  %1308 = vst [vmem:[#allocation2 + $0xb] sm:$0x1] %v1301_v8 }
 0x360   :  { %1309 = vst [vmem:[#allocation2 + $0xf] sm:$0xe0] %v1301_v8  ;;  %v1302_v3 = vmax.f32 %v1293_v54, %v1299_v2  ;;  %v4148_v8 = vpack.c.bf16 %v1854_v61, %v1853_v5  ;;  %v1839_v54 = vld [vmem:[#allocation10 + $0x90] sm:$0xff]  ;;  %v1840_v2 = vld [vmem:[#allocation10 + $0x98] sm:$0xff] }
 0x361   :  { %v1832_v5 = vld [vmem:[#allocation10 + $0x58] sm:$0xff]  ;;  %v1879_v61 = vld [vmem:[#allocation10 + $0x1d0] sm:$0xff] }
 0x362   :  { %v4909_v9 = vld [vmem:[#allocation2 + $0x2] sm:$0xff]  ;;  %1310 = vst [vmem:[#allocation2 + $0x17] sm:$0x1f] %v1302_v3 }
 0x363   :  { %v1339_v10 = vmax.f32 %v4909_v9, 0.0  ;;  %v1823_v3 = vld [vmem:[#allocation10 + $0x10] sm:$0xff] }
 0x365   :  { %1343 = vst [vmem:[#allocation2 + $0x2] sm:$0xff] %v1339_v10 }
 0x366   :  { %v4912_v11 = vld [vmem:[#allocation2 + $0xa] sm:$0xff] }
 0x367   :  { %v1340_v12 = vmax.f32 %v4912_v11, 0.0 }
 0x369   :  { %1344 = vst [vmem:[#allocation2 + $0xa] sm:$0xff] %v1340_v12  ;;  %v4915_v15 = vld [vmem:[#allocation2 + $0x12] sm:$0xff]  ;;  %v4917_v16 = vld [vmem:[#allocation2 + $0x1a] sm:$0xff] }
 0x36a   :  { %v1341_v17 = vmax.f32 %v4915_v15, 0.0  ;;  %v1342_v18 = vmax.f32 %v4917_v16, 0.0 }
 0x36c   :  { %v1355_v19 = vld [vmem:[#allocation2 + $0x1] sm:$0xff]  ;;  %1345 = vst [vmem:[#allocation2 + $0x12] sm:$0xff] %v1341_v17  ;;  %1346 = vst [vmem:[#allocation2 + $0x1a] sm:$0xff] %v1342_v18 }
 0x36d   :  { %v1347_v20 = vld [vmem:[#allocation2] sm:$0xff]  ;;  %1558 = vmatprep.mubr.f32.mxu1 %v1355_v19  ;;  %v1855_v19 = vld [vmem:[#allocation10 + $0x110] sm:$0xff] }
 0x36e   :  { %1559 = vmatmul.mubr.f32.vlgmr.msra.gmra.mrb[30].mxu1 %v1347_v20  ;;  %v1856_v20 = vld [vmem:[#allocation10 + $0x118] sm:$0xff] }
 0x36f   :  { %4085 = vmatpush3.bf16.msra.mxu1 %v4885_v34  ;;  %v1479_v34 = vld [vmem:[#allocation9 + $0x240] sm:$0xff]  ;;  %v4152_v22 = vpack.c.bf16 %v1856_v20, %v1855_v19 }
 0x370   :  { %v1356_v24 = vld [vmem:[#allocation2 + $0x9] sm:$0xff]  ;;  %4087 = vmatprep.subr.bf16.mxu1 %v4086_v21  ;;  %v4098_v37 = vpack.c.bf16 %v1480_v33, %v1479_v34  ;;  %v1881_v19 = vld [vmem:[#allocation10 + $0x1e0] sm:$0xff] }
 0x371   :  { %v1371_v41 = vld [vmem:[#allocation2 + $0x3] sm:$0xff]  ;;  %1563 = vmatprep.mubr.f32.mxu1 %v1356_v24  ;;  %v1825_v24 = vld [vmem:[#allocation10 + $0x20] sm:$0xff]  ;;  %v1844_v34 = vld [vmem:[#allocation10 + $0xb8] sm:$0xff] }
 0x372   :  { %v1348_v25 = vld [vmem:[#allocation2 + $0x8] sm:$0xff]  ;;  %1643 = vmatprep.mubr.f32.mxu0 %v1371_v41  ;;  %v1826_v41 = vld [vmem:[#allocation10 + $0x28] sm:$0xff] }
 0x373   :  { %1564 = vmatmul.mubr.f32.gmra.mrb[32].mxu1 %v1348_v25  ;;  %1644 = vmatmul.mubr.f32.vlgmr.msra.gmra.mrb[36].mxu0 %v1339_v10  ;;  %v1357_v29 = vld [vmem:[#allocation2 + $0x11] sm:$0xff]  ;;  %v1358_v35 = vld [vmem:[#allocation2 + $0x19] sm:$0xff]  ;;  %v1379_v44 = vld [vmem:[#allocation2 + $0x4] sm:$0xff]  ;;  %v4118_v10 = vpack.c.bf16 %v1840_v2, %v1839_v54 }
 0x374   :  { %4089 = vmatpush3.bf16.msra.mxu1 %v4086_v21  ;;  %v1372_v30 = vld [vmem:[#allocation2 + $0xb] sm:$0xff]  ;;  %1568 = vmatprep.mubr.f32.mxu1 %v1357_v29  ;;  %v1373_v36 = vld [vmem:[#allocation2 + $0x13] sm:$0xff]  ;;  %v1374_v42 = vld [vmem:[#allocation2 + $0x1b] sm:$0xff] }
 0x375   :  { %1648 = vmatprep.mubr.f32.mxu0 %v1372_v30  ;;  %4091 = vmatprep.subr.bf16.mxu1 %v4090_v26  ;;  %v1349_v32 = vld [vmem:[#allocation2 + $0x10] sm:$0xff]  ;;  %v1350_v38 = vld [vmem:[#allocation2 + $0x18] sm:$0xff]  ;;  %v4154_v30 = vpack.c.bf16 %v1874_v28, %v1873_v27  ;;  %v1863_v54 = vld [vmem:[#allocation10 + $0x150] sm:$0xff] }
 0x376   :  { %v1380_v57 = vld [vmem:[#allocation2 + $0xc] sm:$0xff]  ;;  %v1381_v47 = vld [vmem:[#allocation2 + $0x14] sm:$0xff]  ;;  %v1382_v58 = vld [vmem:[#allocation2 + $0x1c] sm:$0xff]  ;;  %4117 = vmatpush3.bf16.msra.mxu0 %v4116_v59  ;;  %v4134_v59 = vpack.c.bf16 %v1848_v1, %v1847_v0 }
 0x377   :  { %1569 = vmatmul.mubr.f32.gmra.mrb[34].mxu1 %v1349_v32  ;;  %1649 = vmatmul.mubr.f32.gmra.mrb[38].mxu0 %v1340_v12  ;;  %v1824_v12 = vld [vmem:[#allocation10 + $0x18] sm:$0xff]  ;;  %v1841_v21 = vld [vmem:[#allocation10 + $0xa0] sm:$0xff]  ;;  %v1843_v32 = vld [vmem:[#allocation10 + $0xb0] sm:$0xff] }
 0x378   :  { %4093 = vmatpush3.bf16.msra.mxu1 %v4090_v26  ;;  %1573 = vmatprep.mubr.f32.mxu1 %v1358_v35  ;;  %v4122_v25 = vpack.c.bf16 %v1842_v23, %v1841_v21  ;;  %v4124_v26 = vpack.c.bf16 %v1826_v41, %v1825_v24  ;;  %v1857_v29 = vld [vmem:[#allocation10 + $0x120] sm:$0xff]  ;;  %v4126_v35 = vpack.c.bf16 %v1844_v34, %v1843_v32  ;;  %v1864_v2 = vld [vmem:[#allocation10 + $0x158] sm:$0xff]  ;;  %v1882_v21 = vld [vmem:[#allocation10 + $0x1e8] sm:$0xff] }
 0x379   :  { %1653 = vmatprep.mubr.f32.mxu0 %v1373_v36  ;;  %4095 = vmatprep.subr.bf16.mxu1 %v4094_v31  ;;  %v1827_v36 = vld [vmem:[#allocation10 + $0x30] sm:$0xff]  ;;  %v1866_v23 = vld [vmem:[#allocation10 + $0x168] sm:$0xff]  ;;  %v4170_v24 = vpack.c.bf16 %v1882_v21, %v1881_v19  ;;  %v1884_v32 = vld [vmem:[#allocation10 + $0x1f8] sm:$0xff] }
 0x37a   :  { %4119 = vmatprep.subr.bf16.mxu0 %v4118_v10  ;;  %v4168_v10 = vpack.c.bf16 %v1864_v2, %v1863_v54  ;;  %v1835_v28 = vld [vmem:[#allocation10 + $0x70] sm:$0xff] }
 0x37b   :  { %1574 = vmatmul.mubr.f32.gmra.mrb[36].mxu1 %v1350_v38  ;;  %1654 = vmatmul.mubr.f32.gmra.mrb[40].mxu0 %v1341_v17  ;;  %v4120_v17 = vpack.c.bf16 %v1824_v12, %v1823_v3  ;;  %v1875_v38 = vld [vmem:[#allocation10 + $0x1b0] sm:$0xff]  ;;  %v1849_v12 = vld [vmem:[#allocation10 + $0xe0] sm:$0xff] }
 0x37c   :  { %4097 = vmatpush3.bf16.msra.mxu1 %v4094_v31  ;;  %1658 = vmatprep.mubr.f32.mxu0 %v1374_v42  ;;  %v1858_v31 = vld [vmem:[#allocation10 + $0x128] sm:$0xff]  ;;  %v1860_v42 = vld [vmem:[#allocation10 + $0x138] sm:$0xff]  ;;  %v1867_v34 = vld [vmem:[#allocation10 + $0x170] sm:$0xff] }
 0x37d   :  { %3712 = vmatprep.mubr.f32.mxu1 %v1379_v44  ;;  %4099 = vmatprep.subr.bf16.mxu1 %v4098_v37  ;;  %v4156_v33 = vpack.c.bf16 %v1858_v31, %v1857_v29  ;;  %v4160_v56 = vpack.c.bf16 %v1860_v42, %v1859_v40  ;;  %v1836_v29 = vld [vmem:[#allocation10 + $0x78] sm:$0xff] }
 0x37e   :  { %4121 = vmatpush3.bf16.msra.mxu0 %v4120_v17  ;;  %v1833_v17 = vld [vmem:[#allocation10 + $0x60] sm:$0xff]  ;;  %v4144_v31 = vpack.c.bf16 %v1836_v29, %v1835_v28 }
 0x37f   :  { %1659 = vmatmul.mubr.f32.gmra.mrb[42].mxu0 %v1342_v18  ;;  %v4150_v18 = vpack.c.bf16 %v1872_v14, %v1871_v13  ;;  %4123 = vmatprep.subr.bf16.mxu0 %v4122_v25  ;;  %v1850_v13 = vld [vmem:[#allocation10 + $0xe8] sm:$0xff]  ;;  %v1851_v25 = vld [vmem:[#allocation10 + $0xf0] sm:$0xff] }
 0x380   :  { %4101 = vmatpush3.bf16.msra.mxu1 %v4098_v37  ;;  %v1828_v37 = vld [vmem:[#allocation10 + $0x38] sm:$0xff]  ;;  %v4138_v14 = vpack.c.bf16 %v1850_v13, %v1849_v12 }
 0x381   :  { %4103 = vmatprep.subr.bf16.mxu1 %v4102_v45  ;;  %v4128_v44 = vpack.c.bf16 %v1828_v37, %v1827_v36  ;;  %v1885_v37 = vld [vmem:[#allocation10 + $0x200] sm:$0xff] }
 0x382   :  { %4125 = vmatpush3.bf16.msra.mxu0 %v4124_v26  ;;  %v1852_v26 = vld [vmem:[#allocation10 + $0xf8] sm:$0xff] }
 0x383   :  { %4127 = vmatprep.subr.bf16.mxu0 %v4126_v35  ;;  %v4142_v27 = vpack.c.bf16 %v1852_v26, %v1851_v25 }
 0x384   :  { %4105 = vmatpush3.bf16.msra.mxu1 %v4102_v45  ;;  %v4158_v45 = vpack.c.bf16 %v1876_v39, %v1875_v38  ;;  %v1886_v38 = vld [vmem:[#allocation10 + $0x208] sm:$0xff] }
 0x385   :  { %4107 = vmatprep.subr.bf16.mxu1 %v4106_v55  ;;  %v4922_v39 = vpack.c.bf16 %v1886_v38, %v1885_v37 }
 0x386   :  { %4129 = vmatpush3.bf16.msra.mxu0 %v4128_v44 }
 0x388   :  { %4109 = vmatpush3.bf16.msra.mxu1 %v4106_v55  ;;  %v4130_v55 = vpack.c.bf16 %v1846_v53, %v1845_v51 }
 0x389   :  { %4111 = vmatprep.subr.bf16.mxu1 %v4110_v48 }
 0x38a   :  { %4131 = vmatprep.subr.bf16.mxu0 %v4130_v55 }
 0x38c   :  { %4113 = vmatpush3.bf16.msra.mxu1 %v4110_v48  ;;  %v1830_v48 = vld [vmem:[#allocation10 + $0x48] sm:$0xff] }
 0x38d   :  { %4147 = vmatprep.subr.bf16.mxu1 %v4146_v7  ;;  %v4136_v7 = vpack.c.bf16 %v1832_v5, %v1831_v4 }
 0x38f   :  { %3713 = vmatmul.mubr.f32.vlgmr.msra.gmra.mrb[38].mxu1 %v1380_v57  ;;  %v1877_v57 = vld [vmem:[#allocation10 + $0x1c0] sm:$0xff] }
 0x390   :  { %3715 = vmatprep.mubr.f32.mxu1 %v1381_v47  ;;  %4149 = vmatpush3.bf16.msra.mxu1 %v4148_v8  ;;  %v4132_v47 = vpack.c.bf16 %v1830_v48, %v1829_v50  ;;  %v1880_v8 = vld [vmem:[#allocation10 + $0x1d8] sm:$0xff] }
 0x391   :  { %4151 = vmatprep.subr.bf16.mxu1 %v4150_v18  ;;  %v4166_v3 = vpack.c.bf16 %v1880_v8, %v1879_v61  ;;  %v1834_v18 = vld [vmem:[#allocation10 + $0x68] sm:$0xff] }
 0x392   :  { %4133 = vmatpush3.bf16.msra.mxu0 %v4132_v47  ;;  %v4140_v20 = vpack.c.bf16 %v1834_v18, %v1833_v17  ;;  %v4929_v18 = vadd.s32 8, %v4804_v43 }
 0x393   :  { %3716 = vmatmul.mubr.f32.gmra.mrb[40].mxu1 %v1382_v58  ;;  %v1878_v58 = vld [vmem:[#allocation10 + $0x1c8] sm:$0xff]  ;;  %4135 = vmatprep.subr.bf16.mxu0 %v4134_v59 }
 0x394   :  { %4153 = vmatpush3.bf16.msra.mxu1 %v4152_v22  ;;  %v4162_v63 = vpack.c.bf16 %v1878_v58, %v1877_v57  ;;  %v1865_v22 = vld [vmem:[#allocation10 + $0x160] sm:$0xff]  ;;  %vm1316_vm5 = vcmp.lt.s32.totalorder %v4929_v18, 10  ;;  %vm2192_vm8 = vcmp.ge.s32.totalorder %v4929_v18, 10  ;;  %vm2194_vm9 = vcmp.lt.s32.totalorder %v4929_v18, 14 }
 0x395   :  { %4155 = vmatprep.subr.bf16.mxu1 %v4154_v30  ;;  %v4172_v41 = vpack.c.bf16 %v1866_v23, %v1865_v22  ;;  %v1883_v30 = vld [vmem:[#allocation10 + $0x1f0] sm:$0xff]  ;;  %vm4976_vm11 = vmand %vm2192_vm8, %vm2194_vm9 }
 0x396   :  { %4137 = vmatpush3.bf16.msra.mxu0 %v4136_v7  ;;  %v4174_v35 = vpack.c.bf16 %v1884_v32, %v1883_v30 }
 0x397   :  { %4139 = vmatprep.subr.bf16.mxu0 %v4138_v14 }
 0x398   :  { %4157 = vmatpush3.bf16.msra.mxu1 %v4156_v33  ;;  %v1868_v33 = vld [vmem:[#allocation10 + $0x178] sm:$0xff] }
 0x399   :  { %4159 = vmatprep.subr.bf16.mxu1 %v4158_v45  ;;  %v4176_v36 = vpack.c.bf16 %v1868_v33, %v1867_v34  ;;  %v2928_v45 = vld [vmem:[%s5022_s8] ss:$0 sm:$0xff]  ;;  %v1887_v33 = vld [vmem:[#allocation10 + $0x210] sm:$0xff] }
 0x39a   :  { %4141 = vmatpush3.bf16.msra.mxu0 %v4140_v20 }
 0x39b   :  { %4143 = vmatprep.subr.bf16.mxu0 %v4142_v27 }
 0x39c   :  { %4161 = vmatpush3.bf16.msra.mxu1 %v4160_v56 }
 0x39d   :  { %4163 = vmatprep.subr.bf16.mxu1 %v4162_v63 }
 0x39e   :  { %4145 = vmatpush3.bf16.msra.mxu0 %v4144_v31 }
 0x39f   :  { %4179 = vmatprep.subr.bf16.mxu0 %v4922_v39 }
 0x3a0   :  { %4165 = vmatpush3.bf16.msra.mxu1 %v4164_v52 }
 0x3a1   :  { %4167 = vmatprep.subr.bf16.mxu1 %v4166_v3 }
 0x3a4   :  { %4169 = vmatpush3.bf16.msra.mxu1 %v4168_v10 }
 0x3a5   :  { %4171 = vmatprep.subr.bf16.mxu1 %v4170_v24 }
 0x3a8   :  { %4173 = vmatpush3.bf16.msra.mxu1 %v4172_v41 }
 0x3a9   :  { %4175 = vmatprep.subr.bf16.mxu1 %v4174_v35  ;;  %v1888_v35 = vld [vmem:[#allocation10 + $0x218] sm:$0xff] }
 0x3ac   :  { %4177 = vmatpush3.bf16.msra.mxu1 %v4176_v36 }
 0x441   :  { %v3215_v40 = vpop.f32.mrb[30].mxu1 }
 0x442   :  { %v3216_v42 = vpop.f32.mrb[31].mxu1 }
 0x443   :  { %v3217_v44 = vadd.f32 %v3216_v42, %v3215_v40  ;;  %v4182_v40 = vpack.c.bf16 %v1888_v35, %v1887_v33  ;;  %v1889_v42 = vld [vmem:[#allocation10 + $0x220] sm:$0xff]  ;;  %v2254_v35 = vld [vmem:[#allocation12 + $0xa8] sm:$0xff] }
 0x444   :  { %v2253_v33 = vld [vmem:[#allocation12 + $0xa0] sm:$0xff] }
 0x445   :  { %v1561_v50 = vadd.f32 %v3217_v44, %v2928_v45  ;;  %v1890_v44 = vld [vmem:[#allocation10 + $0x228] sm:$0xff] }
 0x446   :  { %v3218_v51 = vpop.f32.mrb[32].mxu1  ;;  %v3259_v53 = vpop.f32.mrb[36].mxu0 }
 0x447   :  { %v3219_v55 = vpop.f32.mrb[33].mxu1  ;;  %v3260_v56 = vpop.f32.mrb[37].mxu0 }
 0x448   :  { %v3220_v48 = vadd.f32 %v3219_v55, %v3218_v51  ;;  %v3261_v57 = vadd.f32 %v3260_v56, %v3259_v53  ;;  %v4186_v53 = vpack.c.bf16 %v1890_v44, %v1889_v42  ;;  %v1891_v56 = vld [vmem:[#allocation10 + $0x230] sm:$0xff]  ;;  %v2284_v44 = vld [vmem:[#allocation12 + $0x198] sm:$0xff] }
 0x44a   :  { %v3221_v47 = vpop.f32.mrb[34].mxu1  ;;  %v3262_v58 = vpop.f32.mrb[38].mxu0  ;;  %v1646_v60 = vadd.f32 %v3261_v57, %v1561_v50  ;;  %v1566_v52 = vadd.f32 %v3220_v48, %v2928_v45  ;;  %v1892_v50 = vld [vmem:[#allocation10 + $0x238] sm:$0xff] }
 0x44b   :  { %v3222_v62 = vpop.f32.mrb[35].mxu1  ;;  %v3263_v63 = vpop.f32.mrb[39].mxu0 }
 0x44c   :  { %v3223_v0 = vadd.f32 %v3222_v62, %v3221_v47  ;;  %v3264_v1 = vadd.f32 %v3263_v63, %v3262_v58  ;;  %v4190_v47 = vpack.c.bf16 %v1892_v50, %v1891_v56  ;;  %v2255_v56 = vld [vmem:[#allocation12 + $0xb0] sm:$0xff]  ;;  %v2256_v50 = vld [vmem:[#allocation12 + $0xb8] sm:$0xff] }
 0x44e   :  { %v3224_v59 = vpop.f32.mrb[36].mxu1  ;;  %v3265_v4 = vpop.f32.mrb[40].mxu0  ;;  %v1651_v5 = vadd.f32 %v3264_v1, %v1566_v52  ;;  %v1571_v8 = vadd.f32 %v3223_v0, %v2928_v45  ;;  %v1895_v1 = vld [vmem:[#allocation10 + $0x250] sm:$0xff] }
 0x44f   :  { %v3225_v61 = vpop.f32.mrb[37].mxu1  ;;  %v3266_v7 = vpop.f32.mrb[41].mxu0 }
 0x450   :  { %v3226_v54 = vadd.f32 %v3225_v61, %v3224_v59  ;;  %v3267_v2 = vadd.f32 %v3266_v7, %v3265_v4  ;;  %v1896_v59 = vld [vmem:[#allocation10 + $0x258] sm:$0xff]  ;;  %v1897_v61 = vld [vmem:[#allocation10 + $0x260] sm:$0xff]  ;;  %v1898_v7 = vld [vmem:[#allocation10 + $0x268] sm:$0xff] }
 0x452   :  { %v3268_v3 = vpop.f32.mrb[42].mxu0  ;;  %v1656_v10 = vadd.f32 %v3267_v2, %v1571_v8  ;;  %v1576_v13 = vadd.f32 %v3226_v54, %v2928_v45  ;;  %v4202_v8 = vpack.c.bf16 %v1898_v7, %v1897_v61  ;;  %v1899_v54 = vld [vmem:[#allocation10 + $0x270] sm:$0xff]  ;;  %v1900_v2 = vld [vmem:[#allocation10 + $0x278] sm:$0xff] }
 0x453   :  { %v3269_v12 = vpop.f32.mrb[43].mxu0  ;;  %v2287_v7 = vld [vmem:[#allocation12 + $0x1b0] sm:$0xff] }
 0x454   :  { %v3270_v14 = vadd.f32 %v3269_v12, %v3268_v3  ;;  %v4206_v3 = vpack.c.bf16 %v1900_v2, %v1899_v54  ;;  %v2271_v54 = vld [vmem:[#allocation12 + $0x130] sm:$0xff] }
 0x456   :  { %v1661_v17 = vadd.f32 %v3270_v14, %v1576_v13  ;;  %v2249_v14 = vld [vmem:[#allocation12 + $0x80] sm:$0xff] }
 0x462   :  { %v3714_v19 = vpop.f32.mrb[38].mxu1 }
 0x463   :  { %v1736_v20 = vadd.f32 %v3714_v19, %v1651_v5  ;;  %v1730_v21 = vpop.f32.mrb[39].mxu1  ;;  %v4198_v5 = vpack.c.bf16 %v1896_v59, %v1895_v1  ;;  %v2258_v59 = vld [vmem:[#allocation12 + $0xc8] sm:$0xff] }
 0x464   :  { %v1731_v22 = vadd.f32 %v1730_v21, %v1646_v60  ;;  %v1893_v60 = vld [vmem:[#allocation10 + $0x240] sm:$0xff]  ;;  %v2234_v21 = vld [vmem:[#allocation12 + $0x8] sm:$0xff] }
 0x465   :  { %v1750_v23 = vsel %vm1316_vm5, %v1736_v20, 0.0  ;;  %v2233_v20 = vld [vmem:[#allocation12] sm:$0xff] }
 0x466   :  { %v1754_v24 = vmax.f32 %v1750_v23, 0.0  ;;  %v1749_v41 = vsel %vm140_vm1, %v1731_v22, 0.0  ;;  %v3717_v25 = vpop.f32.mrb[40].mxu1  ;;  %v4212_v22 = vpack.c.bf16 %v2234_v21, %v2233_v20  ;;  %v2251_v23 = vld [vmem:[#allocation12 + $0x90] sm:$0xff]  ;;  %v2289_v20 = vld [vmem:[#allocation12 + $0x1c0] sm:$0xff] }
 0x467   :  { %v1753_v26 = vmax.f32 %v1749_v41, 0.0  ;;  %v1746_v27 = vadd.f32 %v3717_v25, %v1661_v17  ;;  %v1740_v28 = vpop.f32.mrb[41].mxu1  ;;  %v2250_v17 = vld [vmem:[#allocation12 + $0x88] sm:$0xff]  ;;  %v2235_v25 = vld [vmem:[#allocation12 + $0x10] sm:$0xff] }
 0x468   :  { %1758 = vst [vmem:[#allocation2 + $0xa] sm:$0xff] %v1754_v24  ;;  %v1741_v29 = vadd.f32 %v1740_v28, %v1656_v10  ;;  %v4210_v19 = vpack.c.bf16 %v2250_v17, %v2249_v14  ;;  %v2243_v17 = vld [vmem:[#allocation12 + $0x50] sm:$0xff] }
 0x469   :  { %1757 = vst [vmem:[#allocation2 + $0x2] sm:$0xff] %v1753_v26  ;;  %v1752_v30 = vsel %vm1330_vm6, %v1746_v27, 0.0  ;;  %v2281_v27 = vld [vmem:[#allocation12 + $0x180] sm:$0xff] }
 0x46a   :  { %v1756_v31 = vmax.f32 %v1752_v30, 0.0  ;;  %v1751_v32 = vsel %vm1325_vm7, %v1741_v29, 0.0  ;;  %4211 = vmatprep.subr.bf16.mxu1 %v4210_v19  ;;  %v2282_v29 = vld [vmem:[#allocation12 + $0x188] sm:$0xff]  ;;  %v2265_v30 = vld [vmem:[#allocation12 + $0x100] sm:$0xff]  ;;  %v2244_v19 = vld [vmem:[#allocation12 + $0x58] sm:$0xff] }
 0x46b   :  { %v1755_v34 = vmax.f32 %v1751_v32, 0.0  ;;  %v4242_v32 = vpack.c.bf16 %v2282_v29, %v2281_v27  ;;  %v4232_v27 = vpack.c.bf16 %v2244_v19, %v2243_v17  ;;  %v2292_v29 = vld [vmem:[#allocation12 + $0x1d8] sm:$0xff] }
 0x46c   :  { %1760 = vst [vmem:[#allocation2 + $0x1a] sm:$0xff] %v1756_v31 }
 0x46d   :  { %1759 = vst [vmem:[#allocation2 + $0x12] sm:$0xff] %v1755_v34 }
 0x470   :  { %v1769_v36 = vld [vmem:[#allocation2 + $0x1] sm:$0xff]  ;;  %v1770_v45 = vld [vmem:[#allocation2 + $0x9] sm:$0xff] }
 0x471   :  { %v1785_v37 = vld [vmem:[#allocation2 + $0x3] sm:$0xff]  ;;  %1972 = vmatprep.mubr.f32.mxu0 %v1769_v36  ;;  %v4218_v36 = vpack.c.bf16 %v2254_v35, %v2253_v33  ;;  %v2264_v35 = vld [vmem:[#allocation12 + $0xf8] sm:$0xff] }
 0x472   :  { %v1761_v38 = vld [vmem:[#allocation2] sm:$0xff]  ;;  %2057 = vmatprep.mubr.f32.mxu1 %v1785_v37  ;;  %v1762_v55 = vld [vmem:[#allocation2 + $0x8] sm:$0xff]  ;;  %v2237_v37 = vld [vmem:[#allocation12 + $0x20] sm:$0xff] }
 0x473   :  { %1973 = vmatmul.mubr.f32.vlgmr.msra.gmra.mrb[44].mxu0 %v1761_v38  ;;  %2058 = vmatmul.mubr.f32.vlgmr.msra.gmra.mrb[42].mxu1 %v1753_v26  ;;  %v1788_v63 = vld [vmem:[#allocation2 + $0x1b] sm:$0xff]  ;;  %v1793_v4 = vld [vmem:[#allocation2 + $0x4] sm:$0xff]  ;;  %v2236_v26 = vld [vmem:[#allocation12 + $0x18] sm:$0xff] }
 0x474   :  { %4181 = vmatpush3.bf16.msra.mxu0 %v4922_v39  ;;  %1977 = vmatprep.mubr.f32.mxu0 %v1770_v45  ;;  %v1786_v51 = vld [vmem:[#allocation2 + $0xb] sm:$0xff]  ;;  %v1787_v57 = vld [vmem:[#allocation2 + $0x13] sm:$0xff]  ;;  %v1894_v39 = vld [vmem:[#allocation10 + $0x248] sm:$0xff]  ;;  %v4216_v28 = vpack.c.bf16 %v2236_v26, %v2235_v25 }
 0x475   :  { %4183 = vmatprep.subr.bf16.mxu0 %v4182_v40  ;;  %2062 = vmatprep.mubr.f32.mxu1 %v1786_v51  ;;  %v1771_v48 = vld [vmem:[#allocation2 + $0x11] sm:$0xff]  ;;  %v1772_v62 = vld [vmem:[#allocation2 + $0x19] sm:$0xff]  ;;  %v4194_v52 = vpack.c.bf16 %v1894_v39, %v1893_v60  ;;  %v2267_v45 = vld [vmem:[#allocation12 + $0x110] sm:$0xff] }
 0x476   :  { %v1763_v58 = vld [vmem:[#allocation2 + $0x10] sm:$0xff]  ;;  %v1764_v0 = vld [vmem:[#allocation2 + $0x18] sm:$0xff]  ;;  %4213 = vmatpush3.bf16.msra.mxu1 %v4212_v22  ;;  %v2238_v38 = vld [vmem:[#allocation12 + $0x28] sm:$0xff] }
 0x477   :  { %1978 = vmatmul.mubr.f32.gmra.mrb[46].mxu0 %v1762_v55  ;;  %2063 = vmatmul.mubr.f32.gmra.mrb[44].mxu1 %v1754_v24  ;;  %v1794_v10 = vld [vmem:[#allocation2 + $0xc] sm:$0xff]  ;;  %v1795_v12 = vld [vmem:[#allocation2 + $0x14] sm:$0xff]  ;;  %v1796_v13 = vld [vmem:[#allocation2 + $0x1c] sm:$0xff]  ;;  %v4220_v42 = vpack.c.bf16 %v2238_v38, %v2237_v37 }
 0x478   :  { %4185 = vmatpush3.bf16.msra.mxu0 %v4182_v40  ;;  %1982 = vmatprep.mubr.f32.mxu0 %v1771_v48  ;;  %v2252_v24 = vld [vmem:[#allocation12 + $0x98] sm:$0xff]  ;;  %v2283_v40 = vld [vmem:[#allocation12 + $0x190] sm:$0xff]  ;;  %v2286_v60 = vld [vmem:[#allocation12 + $0x1a8] sm:$0xff] }
 0x479   :  { %2067 = vmatprep.mubr.f32.mxu1 %v1787_v57  ;;  %4187 = vmatprep.subr.bf16.mxu0 %v4186_v53  ;;  %v4214_v41 = vpack.c.bf16 %v2252_v24, %v2251_v23  ;;  %v2268_v51 = vld [vmem:[#allocation12 + $0x118] sm:$0xff]  ;;  %v2239_v48 = vld [vmem:[#allocation12 + $0x30] sm:$0xff]  ;;  %v4222_v57 = vpack.c.bf16 %v2256_v50, %v2255_v56  ;;  %v2290_v22 = vld [vmem:[#allocation12 + $0x1c8] sm:$0xff] }
 0x47a   :  { %v4248_v55 = vpack.c.bf16 %v2268_v51, %v2267_v45  ;;  %v2273_v23 = vld [vmem:[#allocation12 + $0x140] sm:$0xff]  ;;  %v4258_v24 = vpack.c.bf16 %v2290_v22, %v2289_v20  ;;  %v2262_v26 = vld [vmem:[#allocation12 + $0xe8] sm:$0xff]  ;;  %v2263_v33 = vld [vmem:[#allocation12 + $0xf0] sm:$0xff] }
 0x47b   :  { %1983 = vmatmul.mubr.f32.gmra.mrb[48].mxu0 %v1763_v58  ;;  %2068 = vmatmul.mubr.f32.gmra.mrb[46].mxu1 %v1755_v34  ;;  %v2285_v58 = vld [vmem:[#allocation12 + $0x1a0] sm:$0xff]  ;;  %v2275_v37 = vld [vmem:[#allocation12 + $0x150] sm:$0xff]  ;;  %v2276_v38 = vld [vmem:[#allocation12 + $0x158] sm:$0xff]  ;;  %v4238_v45 = vpack.c.bf16 %v2264_v35, %v2263_v33 }
 0x47c   :  { %4189 = vmatpush3.bf16.msra.mxu0 %v4186_v53  ;;  %1987 = vmatprep.mubr.f32.mxu0 %v1772_v62  ;;  %v4246_v53 = vpack.c.bf16 %v2284_v44, %v2283_v40  ;;  %v4250_v62 = vpack.c.bf16 %v2286_v60, %v2285_v58  ;;  %v2261_v25 = vld [vmem:[#allocation12 + $0xe0] sm:$0xff]  ;;  %v2294_v44 = vld [vmem:[#allocation12 + $0x1e8] sm:$0xff]  ;;  %v2247_v51 = vld [vmem:[#allocation12 + $0x70] sm:$0xff] }
 0x47d   :  { %2072 = vmatprep.mubr.f32.mxu1 %v1788_v63  ;;  %4191 = vmatprep.subr.bf16.mxu0 %v4190_v47  ;;  %v2269_v63 = vld [vmem:[#allocation12 + $0x120] sm:$0xff]  ;;  %v2298_v60 = vld [vmem:[#allocation12 + $0x208] sm:$0xff] }
 0x47e   :  { %4215 = vmatprep.subr.bf16.mxu1 %v4214_v41  ;;  %v2274_v41 = vld [vmem:[#allocation12 + $0x148] sm:$0xff]  ;;  %v2277_v50 = vld [vmem:[#allocation12 + $0x160] sm:$0xff] }
 0x47f   :  { %1988 = vmatmul.mubr.f32.gmra.mrb[50].mxu0 %v1764_v0  ;;  %2073 = vmatmul.mubr.f32.gmra.mrb[48].mxu1 %v1756_v31  ;;  %v2266_v31 = vld [vmem:[#allocation12 + $0x108] sm:$0xff]  ;;  %v2257_v0 = vld [vmem:[#allocation12 + $0xc0] sm:$0xff] }
 0x480   :  { %4193 = vmatpush3.bf16.msra.mxu0 %v4190_v47  ;;  %3750 = vmatprep.mubr.f32.mxu0 %v1793_v4  ;;  %v4244_v34 = vpack.c.bf16 %v2266_v31, %v2265_v30  ;;  %v2240_v47 = vld [vmem:[#allocation12 + $0x38] sm:$0xff]  ;;  %v2241_v4 = vld [vmem:[#allocation12 + $0x40] sm:$0xff]  ;;  %v4226_v61 = vpack.c.bf16 %v2258_v59, %v2257_v0  ;;  %v4234_v30 = vpack.c.bf16 %v2262_v26, %v2261_v25  ;;  %v2279_v0 = vld [vmem:[#allocation12 + $0x170] sm:$0xff] }
 0x481   :  { %4195 = vmatprep.subr.bf16.mxu0 %v4194_v52  ;;  %4217 = vmatpush3.bf16.msra.mxu1 %v4216_v28  ;;  %v4224_v39 = vpack.c.bf16 %v2240_v47, %v2239_v48  ;;  %v2291_v28 = vld [vmem:[#allocation12 + $0x1d0] sm:$0xff]  ;;  %v2245_v31 = vld [vmem:[#allocation12 + $0x60] sm:$0xff]  ;;  %v2278_v48 = vld [vmem:[#allocation12 + $0x168] sm:$0xff] }
 0x482   :  { %4219 = vmatprep.subr.bf16.mxu1 %v4218_v36  ;;  %v4262_v36 = vpack.c.bf16 %v2292_v29, %v2291_v28  ;;  %v4268_v47 = vpack.c.bf16 %v2278_v48, %v2277_v50  ;;  %v2297_v58 = vld [vmem:[#allocation12 + $0x200] sm:$0xff] }
 0x484   :  { %4197 = vmatpush3.bf16.msra.mxu0 %v4194_v52  ;;  %v2270_v52 = vld [vmem:[#allocation12 + $0x128] sm:$0xff] }
 0x485   :  { %4199 = vmatprep.subr.bf16.mxu0 %v4198_v5  ;;  %4221 = vmatpush3.bf16.msra.mxu1 %v4220_v42  ;;  %v4252_v1 = vpack.c.bf16 %v2270_v52, %v2269_v63  ;;  %v2293_v42 = vld [vmem:[#allocation12 + $0x1e0] sm:$0xff]  ;;  %v2296_v63 = vld [vmem:[#allocation12 + $0x1f8] sm:$0xff] }
 0x486   :  { %4223 = vmatprep.subr.bf16.mxu1 %v4222_v57  ;;  %v4266_v56 = vpack.c.bf16 %v2294_v44, %v2293_v42 }
 0x488   :  { %4201 = vmatpush3.bf16.msra.mxu0 %v4198_v5  ;;  %v2242_v5 = vld [vmem:[#allocation12 + $0x48] sm:$0xff] }
 0x489   :  { %4203 = vmatprep.subr.bf16.mxu0 %v4202_v8  ;;  %4225 = vmatpush3.bf16.msra.mxu1 %v4224_v39  ;;  %v4228_v2 = vpack.c.bf16 %v2242_v5, %v2241_v4  ;;  %v4943_v39 = vpack.c.bf16 %v2298_v60, %v2297_v58 }
 0x48a   :  { %4227 = vmatprep.subr.bf16.mxu1 %v4226_v61  ;;  %v2929_v61 = vld [vmem:[%s5024_s10] ss:$0 sm:$0xff] }
 0x48c   :  { %4205 = vmatpush3.bf16.msra.mxu0 %v4202_v8  ;;  %v2288_v8 = vld [vmem:[#allocation12 + $0x1b8] sm:$0xff] }
 0x48d   :  { %4207 = vmatprep.subr.bf16.mxu0 %v4206_v3  ;;  %4229 = vmatpush3.bf16.msra.mxu1 %v4228_v2 }
 0x490   :  { %4209 = vmatpush3.bf16.msra.mxu0 %v4206_v3  ;;  %v4254_v3 = vpack.c.bf16 %v2288_v8, %v2287_v7 }
 0x491   :  { %4243 = vmatprep.subr.bf16.mxu0 %v4242_v32  ;;  %v2246_v32 = vld [vmem:[#allocation12 + $0x68] sm:$0xff] }
 0x492   :  { %v4236_v40 = vpack.c.bf16 %v2246_v32, %v2245_v31 }
 0x493   :  { %3751 = vmatmul.mubr.f32.vlgmr.msra.gmra.mrb[52].mxu0 %v1794_v10  ;;  %v2272_v10 = vld [vmem:[#allocation12 + $0x138] sm:$0xff] }
 0x494   :  { %3753 = vmatprep.mubr.f32.mxu0 %v1795_v12  ;;  %4245 = vmatpush3.bf16.msra.mxu0 %v4244_v34  ;;  %v2259_v12 = vld [vmem:[#allocation12 + $0xd0] sm:$0xff]  ;;  %v4256_v21 = vpack.c.bf16 %v2272_v10, %v2271_v54  ;;  %v4260_v34 = vpack.c.bf16 %v2274_v41, %v2273_v23 }
 0x495   :  { %4247 = vmatprep.subr.bf16.mxu0 %v4246_v53  ;;  %v2248_v53 = vld [vmem:[#allocation12 + $0x78] sm:$0xff] }
 0x496   :  { %v4240_v57 = vpack.c.bf16 %v2248_v53, %v2247_v51 }
 0x497   :  { %3754 = vmatmul.mubr.f32.gmra.mrb[54].mxu0 %v1796_v13  ;;  %v2260_v13 = vld [vmem:[#allocation12 + $0xd8] sm:$0xff] }
 0x498   :  { %4249 = vmatpush3.bf16.msra.mxu0 %v4248_v55  ;;  %v4230_v14 = vpack.c.bf16 %v2260_v13, %v2259_v12  ;;  %v4264_v55 = vpack.c.bf16 %v2276_v38, %v2275_v37 }
 0x499   :  { %4251 = vmatprep.subr.bf16.mxu0 %v4250_v62  ;;  %v2295_v62 = vld [vmem:[#allocation12 + $0x1f0] sm:$0xff] }
 0x49a   :  { %4231 = vmatprep.subr.bf16.mxu1 %v4230_v14  ;;  %v4270_v52 = vpack.c.bf16 %v2296_v63, %v2295_v62 }
 0x49b   :  { %4233 = vmatpush3.bf16.msra.mxu1 %v4232_v27 }
 0x49c   :  { %4253 = vmatpush3.bf16.msra.mxu0 %v4252_v1  ;;  %4235 = vmatprep.subr.bf16.mxu1 %v4234_v30  ;;  %v2280_v1 = vld [vmem:[#allocation12 + $0x178] sm:$0xff] }
 0x49d   :  { %4255 = vmatprep.subr.bf16.mxu0 %v4254_v3  ;;  %v4272_v59 = vpack.c.bf16 %v2280_v1, %v2279_v0 }
 0x49f   :  { %4237 = vmatpush3.bf16.msra.mxu1 %v4236_v40 }
 0x4a0   :  { %4257 = vmatpush3.bf16.msra.mxu0 %v4256_v21  ;;  %4239 = vmatprep.subr.bf16.mxu1 %v4238_v45 }
 0x4a1   :  { %4259 = vmatprep.subr.bf16.mxu0 %v4258_v24 }
 0x4a3   :  { %4241 = vmatpush3.bf16.msra.mxu1 %v4240_v57 }
 0x4a4   :  { %4261 = vmatpush3.bf16.msra.mxu0 %v4260_v34  ;;  %4275 = vmatprep.subr.bf16.mxu1 %v4943_v39 }
 0x4a5   :  { %4263 = vmatprep.subr.bf16.mxu0 %v4262_v36 }
 0x4a8   :  { %4265 = vmatpush3.bf16.msra.mxu0 %v4264_v55 }
 0x4a9   :  { %4267 = vmatprep.subr.bf16.mxu0 %v4266_v56 }
 0x4ac   :  { %4269 = vmatpush3.bf16.msra.mxu0 %v4268_v47 }
 0x4ad   :  { %4271 = vmatprep.subr.bf16.mxu0 %v4270_v52 }
 0x4b0   :  { %4273 = vmatpush3.bf16.msra.mxu0 %v4272_v59  ;;  %v2299_v59 = vld [vmem:[#allocation12 + $0x210] sm:$0xff] }
 0x546   :  { %v3323_v4 = vpop.f32.mrb[44].mxu0  ;;  %v3367_v5 = vpop.f32.mrb[42].mxu1 }
 0x547   :  { %v3324_v7 = vpop.f32.mrb[45].mxu0  ;;  %v3368_v8 = vpop.f32.mrb[43].mxu1 }
 0x548   :  { %v3325_v54 = vadd.f32 %v3324_v7, %v3323_v4  ;;  %v3369_v2 = vadd.f32 %v3368_v8, %v3367_v5  ;;  %v2300_v4 = vld [vmem:[#allocation12 + $0x218] sm:$0xff]  ;;  %v2301_v7 = vld [vmem:[#allocation12 + $0x220] sm:$0xff]  ;;  %v2302_v8 = vld [vmem:[#allocation12 + $0x228] sm:$0xff] }
 0x54a   :  { %v1975_v3 = vadd.f32 %v3325_v54, %v2929_v61  ;;  %v3326_v10 = vpop.f32.mrb[46].mxu0  ;;  %v3370_v12 = vpop.f32.mrb[44].mxu1 }
 0x54b   :  { %v3327_v13 = vpop.f32.mrb[47].mxu0  ;;  %v3371_v14 = vpop.f32.mrb[45].mxu1 }
 0x54c   :  { %v3328_v17 = vadd.f32 %v3327_v13, %v3326_v10  ;;  %v3372_v19 = vadd.f32 %v3371_v14, %v3370_v12  ;;  %v2060_v20 = vadd.f32 %v3369_v2, %v1975_v3  ;;  %v4282_v10 = vpack.c.bf16 %v2302_v8, %v2301_v7  ;;  %v2303_v12 = vld [vmem:[#allocation12 + $0x230] sm:$0xff]  ;;  %v2304_v13 = vld [vmem:[#allocation12 + $0x238] sm:$0xff] }
 0x54d   :  { %v2604_v7 = vld [vmem:[#allocation13 + $0xb8] sm:$0xff]  ;;  %v2587_v8 = vld [vmem:[#allocation13 + $0x30] sm:$0xff] }
 0x54e   :  { %v1980_v21 = vadd.f32 %v3328_v17, %v2929_v61  ;;  %v3329_v22 = vpop.f32.mrb[48].mxu0  ;;  %v3373_v23 = vpop.f32.mrb[46].mxu1 }
 0x54f   :  { %v3330_v24 = vpop.f32.mrb[49].mxu0  ;;  %v3374_v41 = vpop.f32.mrb[47].mxu1 }
 0x550   :  { %v3331_v25 = vadd.f32 %v3330_v24, %v3329_v22  ;;  %v3375_v26 = vadd.f32 %v3374_v41, %v3373_v23  ;;  %v2065_v27 = vadd.f32 %v3372_v19, %v1980_v21  ;;  %v4286_v19 = vpack.c.bf16 %v2304_v13, %v2303_v12  ;;  %v2307_v22 = vld [vmem:[#allocation12 + $0x250] sm:$0xff]  ;;  %v2308_v23 = vld [vmem:[#allocation12 + $0x258] sm:$0xff]  ;;  %v2309_v41 = vld [vmem:[#allocation12 + $0x260] sm:$0xff] }
 0x551   :  { %v4294_v24 = vpack.c.bf16 %v2308_v23, %v2307_v22  ;;  %v2636_v12 = vld [vmem:[#allocation13 + $0x1b8] sm:$0xff]  ;;  %v2589_v23 = vld [vmem:[#allocation13 + $0x40] sm:$0xff] }
 0x552   :  { %v1985_v28 = vadd.f32 %v3331_v25, %v2929_v61  ;;  %v3332_v29 = vpop.f32.mrb[50].mxu0  ;;  %v3376_v30 = vpop.f32.mrb[48].mxu1  ;;  %v2310_v25 = vld [vmem:[#allocation12 + $0x268] sm:$0xff] }
 0x553   :  { %v3333_v31 = vpop.f32.mrb[51].mxu0  ;;  %v3377_v32 = vpop.f32.mrb[49].mxu1 }
 0x554   :  { %v3334_v34 = vadd.f32 %v3333_v31, %v3332_v29  ;;  %v3378_v33 = vadd.f32 %v3377_v32, %v3376_v30  ;;  %v2070_v35 = vadd.f32 %v3375_v26, %v1985_v28  ;;  %v4298_v26 = vpack.c.bf16 %v2310_v25, %v2309_v41  ;;  %v2312_v28 = vld [vmem:[#allocation12 + $0x278] sm:$0xff]  ;;  %v2597_v31 = vld [vmem:[#allocation13 + $0x80] sm:$0xff]  ;;  %v2598_v32 = vld [vmem:[#allocation13 + $0x88] sm:$0xff] }
 0x555   :  { %v2637_v41 = vld [vmem:[#allocation13 + $0x1c0] sm:$0xff] }
 0x556   :  { %v1990_v36 = vadd.f32 %v3334_v34, %v2929_v61  ;;  %v2581_v34 = vld [vmem:[#allocation13] sm:$0xff] }
 0x558   :  { %v2075_v37 = vadd.f32 %v3378_v33, %v1990_v36  ;;  %v4306_v33 = vpack.c.bf16 %v2598_v32, %v2597_v31  ;;  %v2629_v36 = vld [vmem:[#allocation13 + $0x180] sm:$0xff]  ;;  %v2607_v31 = vld [vmem:[#allocation13 + $0xd0] sm:$0xff]  ;;  %v2608_v32 = vld [vmem:[#allocation13 + $0xd8] sm:$0xff] }
 0x55a   :  { %4307 = vmatprep.subr.bf16.mxu0 %v4306_v33  ;;  %v2591_v33 = vld [vmem:[#allocation13 + $0x50] sm:$0xff] }
 0x566   :  { %v3752_v38 = vpop.f32.mrb[52].mxu0 }
 0x567   :  { %v2150_v40 = vadd.f32 %v3752_v38, %v2065_v27  ;;  %v2144_v42 = vpop.f32.mrb[53].mxu0  ;;  %v2311_v27 = vld [vmem:[#allocation12 + $0x270] sm:$0xff] }
 0x568   :  { %v2145_v44 = vadd.f32 %v2144_v42, %v2060_v20  ;;  %v2305_v20 = vld [vmem:[#allocation12 + $0x240] sm:$0xff]  ;;  %v4302_v29 = vpack.c.bf16 %v2312_v28, %v2311_v27  ;;  %v2622_v28 = vld [vmem:[#allocation13 + $0x148] sm:$0xff] }
 0x569   :  { %v2164_v45 = vsel %vm1316_vm5, %v2150_v40, 0.0  ;;  %v2613_v42 = vld [vmem:[#allocation13 + $0x100] sm:$0xff] }
 0x56a   :  { %v2168_v51 = vadd.f32 %v2164_v45, %v4912_v11  ;;  %v2163_v53 = vsel %vm140_vm1, %v2145_v44, 0.0  ;;  %v3755_v55 = vpop.f32.mrb[54].mxu0  ;;  %v2614_v44 = vld [vmem:[#allocation13 + $0x108] sm:$0xff]  ;;  %v2599_v45 = vld [vmem:[#allocation13 + $0x90] sm:$0xff]  ;;  %v2621_v27 = vld [vmem:[#allocation13 + $0x140] sm:$0xff] }
 0x56b   :  { %v2167_v56 = vadd.f32 %v2163_v53, %v4909_v9  ;;  %v2160_v50 = vadd.f32 %v3755_v55, %v2075_v37  ;;  %v2154_v48 = vpop.f32.mrb[55].mxu0  ;;  %v2630_v37 = vld [vmem:[#allocation13 + $0x188] sm:$0xff]  ;;  %v2600_v53 = vld [vmem:[#allocation13 + $0x98] sm:$0xff]  ;;  %v2583_v55 = vld [vmem:[#allocation13 + $0x10] sm:$0xff] }
 0x56c   :  { %2172 = vst [vmem:[#allocation2 + $0xa] sm:$0xff] %v2168_v51  ;;  %v2155_v57 = vadd.f32 %v2154_v48, %v2070_v35  ;;  %v2582_v35 = vld [vmem:[#allocation13 + $0x8] sm:$0xff]  ;;  %v4338_v40 = vpack.c.bf16 %v2630_v37, %v2629_v36  ;;  %v4340_v51 = vpack.c.bf16 %v2614_v44, %v2613_v42  ;;  %v2639_v36 = vld [vmem:[#allocation13 + $0x1d0] sm:$0xff]  ;;  %v2624_v42 = vld [vmem:[#allocation13 + $0x158] sm:$0xff] }
 0x56d   :  { %2171 = vst [vmem:[#allocation2 + $0x2] sm:$0xff] %v2167_v56  ;;  %v2166_v47 = vsel %vm1330_vm6, %v2160_v50, 0.0  ;;  %v4308_v38 = vpack.c.bf16 %v2582_v35, %v2581_v34  ;;  %v2584_v56 = vld [vmem:[#allocation13 + $0x18] sm:$0xff]  ;;  %v4310_v50 = vpack.c.bf16 %v2600_v53, %v2599_v45  ;;  %v4326_v34 = vpack.c.bf16 %v2608_v32, %v2607_v31  ;;  %v2610_v53 = vld [vmem:[#allocation13 + $0xe8] sm:$0xff] }
 0x56e   :  { %v2170_v58 = vadd.f32 %v2166_v47, %v4917_v16  ;;  %v2165_v60 = vsel %vm1325_vm7, %v2155_v57, 0.0  ;;  %v4312_v48 = vpack.c.bf16 %v2584_v56, %v2583_v55  ;;  %v2631_v57 = vld [vmem:[#allocation13 + $0x190] sm:$0xff]  ;;  %v2632_v47 = vld [vmem:[#allocation13 + $0x198] sm:$0xff]  ;;  %v2593_v56 = vld [vmem:[#allocation13 + $0x60] sm:$0xff] }
 0x56f   :  { %v2169_v11 = vadd.f32 %v2165_v60, %v4915_v15  ;;  %v4342_v60 = vpack.c.bf16 %v2632_v47, %v2631_v57  ;;  %v2592_v35 = vld [vmem:[#allocation13 + $0x58] sm:$0xff]  ;;  %v2642_v47 = vld [vmem:[#allocation13 + $0x1e8] sm:$0xff] }
 0x570   :  { %2174 = vst [vmem:[#allocation2 + $0x1a] sm:$0xff] %v2170_v58  ;;  %v2615_v58 = vld [vmem:[#allocation13 + $0x110] sm:$0xff]  ;;  %v4328_v37 = vpack.c.bf16 %v2592_v35, %v2591_v33 }
 0x571   :  { %2173 = vst [vmem:[#allocation2 + $0x12] sm:$0xff] %v2169_v11  ;;  %v2616_v11 = vld [vmem:[#allocation13 + $0x118] sm:$0xff] }
 0x574   :  { %v2175_v62 = vld [vmem:[#allocation2 + $0x2] ss:$2 sm:$0xff]  ;;  %v2177_v63 = vld [vmem:[#allocation2 + $0x3] ss:$2 sm:$0xff] }
 0x575   :  { %v2179_v9 = vmax.f32 %v2175_v62, %v2177_v63  ;;  %2181 = vst [vmem:[#allocation2 + $0x2] sm:$0xff] %v4584_v6  ;;  %2182 = vst [vmem:[#allocation2 + $0xa] sm:$0xff] %v4584_v6  ;;  %v4278_v6 = vpack.c.bf16 %v2300_v4, %v2299_v59  ;;  %v2601_v62 = vld [vmem:[#allocation13 + $0xa0] sm:$0xff]  ;;  %v2602_v63 = vld [vmem:[#allocation13 + $0xa8] sm:$0xff] }
 0x576   :  { %v2617_v59 = vld [vmem:[#allocation13 + $0x120] sm:$0xff]  ;;  %v2618_v4 = vld [vmem:[#allocation13 + $0x128] sm:$0xff] }
 0x577   :  { %2183 = vst [vmem:[#allocation2 + $0x3] sm:$0x1e] %v2179_v9  ;;  %v4344_v9 = vpack.c.bf16 %v2616_v11, %v2615_v58  ;;  %v2625_v58 = vld [vmem:[#allocation13 + $0x160] sm:$0xff] }
 0x578   :  { %v2176_v52 = vld [vmem:[#allocation2 + $0x12] ss:$2 sm:$0xff]  ;;  %v2178_v46 = vld [vmem:[#allocation2 + $0x13] ss:$2 sm:$0xff] }
 0x579   :  { %v2180_v0 = vmax.f32 %v2176_v52, %v2178_v46  ;;  %v4314_v52 = vpack.c.bf16 %v2602_v63, %v2601_v62  ;;  %v2585_v46 = vld [vmem:[#allocation13 + $0x20] sm:$0xff]  ;;  %v2611_v63 = vld [vmem:[#allocation13 + $0xf0] sm:$0xff] }
 0x57b   :  { %2184 = vst [vmem:[#allocation2 + $0xb] sm:$0x1e] %v2180_v0  ;;  %v2586_v0 = vld [vmem:[#allocation13 + $0x28] sm:$0xff] }
 0x57e   :  { %v4963_v16 = vld [vmem:[#allocation2 + $0x2] sm:$0xff] }
 0x57f   :  { %v2199_v49 = vmax.f32 %v4963_v16, 0.0 }
 0x581   :  { %2201 = vst [vmem:[#allocation2 + $0x2] sm:$0xff] %v2199_v49 }
 0x582   :  { %v4966_v15 = vld [vmem:[#allocation2 + $0xa] sm:$0xff] }
 0x583   :  { %v2200_v1 = vmax.f32 %v4966_v15, 0.0 }
 0x585   :  { %2202 = vst [vmem:[#allocation2 + $0xa] sm:$0xff] %v2200_v1 }
 0x588   :  { %v2207_v5 = vld [vmem:[#allocation2 + $0x1] sm:$0xff] }
 0x589   :  { %v2203_v61 = vld [vmem:[#allocation2] sm:$0xff]  ;;  %2384 = vmatprep.mubr.f32.mxu1 %v2207_v5  ;;  %v4316_v5 = vpack.c.bf16 %v2586_v0, %v2585_v46  ;;  %v2596_v0 = vld [vmem:[#allocation13 + $0x78] sm:$0xff] }
 0x58a   :  { %2385 = vmatmul.mubr.f32.vlgmr.msra.gmra.mrb[50].mxu1 %v2203_v61 }
 0x58b   :  { %4277 = vmatpush3.bf16.msra.mxu1 %v4943_v39  ;;  %v2306_v39 = vld [vmem:[#allocation12 + $0x248] sm:$0xff] }
 0x58c   :  { %v2208_v54 = vld [vmem:[#allocation2 + $0x9] sm:$0xff]  ;;  %4279 = vmatprep.subr.bf16.mxu1 %v4278_v6  ;;  %v4290_v21 = vpack.c.bf16 %v2306_v39, %v2305_v20  ;;  %v2606_v20 = vld [vmem:[#allocation13 + $0xc8] sm:$0xff] }
 0x58d   :  { %v2215_v2 = vld [vmem:[#allocation2 + $0x3] sm:$0xff]  ;;  %2389 = vmatprep.mubr.f32.mxu1 %v2208_v54  ;;  %v2216_v14 = vld [vmem:[#allocation2 + $0xb] sm:$0xff]  ;;  %v4348_v54 = vpack.c.bf16 %v2618_v4, %v2617_v59 }
 0x58e   :  { %v2204_v3 = vld [vmem:[#allocation2 + $0x8] sm:$0xff]  ;;  %2459 = vmatprep.mubr.f32.mxu0 %v2215_v2 }
 0x58f   :  { %2390 = vmatmul.mubr.f32.gmra.mrb[52].mxu1 %v2204_v3  ;;  %2460 = vmatmul.mubr.f32.vlgmr.msra.gmra.mrb[56].mxu0 %v2199_v49  ;;  %v2219_v17 = vld [vmem:[#allocation2 + $0x4] sm:$0xff]  ;;  %v2220_v30 = vld [vmem:[#allocation2 + $0xc] sm:$0xff]  ;;  %v2633_v49 = vld [vmem:[#allocation13 + $0x1a0] sm:$0xff] }
 0x590   :  { %4281 = vmatpush3.bf16.msra.mxu1 %v4278_v6  ;;  %2464 = vmatprep.mubr.f32.mxu0 %v2216_v14  ;;  %v2603_v6 = vld [vmem:[#allocation13 + $0xb0] sm:$0xff]  ;;  %v2588_v3 = vld [vmem:[#allocation13 + $0x38] sm:$0xff] }
 0x591   :  { %3788 = vmatprep.mubr.f32.mxu1 %v2219_v17  ;;  %4283 = vmatprep.subr.bf16.mxu1 %v4282_v10  ;;  %v4318_v2 = vpack.c.bf16 %v2604_v7, %v2603_v6  ;;  %v2619_v14 = vld [vmem:[#allocation13 + $0x130] sm:$0xff]  ;;  %v2620_v17 = vld [vmem:[#allocation13 + $0x138] sm:$0xff]  ;;  %v4320_v39 = vpack.c.bf16 %v2588_v3, %v2587_v8  ;;  %v2645_v7 = vld [vmem:[#allocation13 + $0x200] sm:$0xff] }
 0x592   :  { %4309 = vmatpush3.bf16.msra.mxu0 %v4308_v38  ;;  %v2640_v38 = vld [vmem:[#allocation13 + $0x1d8] sm:$0xff]  ;;  %v2646_v8 = vld [vmem:[#allocation13 + $0x208] sm:$0xff] }
 0x593   :  { %2465 = vmatmul.mubr.f32.gmra.mrb[58].mxu0 %v2200_v1  ;;  %4311 = vmatprep.subr.bf16.mxu0 %v4310_v50  ;;  %v2634_v1 = vld [vmem:[#allocation13 + $0x1a8] sm:$0xff]  ;;  %v4358_v44 = vpack.c.bf16 %v2640_v38, %v2639_v36  ;;  %v2647_v36 = vld [vmem:[#allocation13 + $0x210] sm:$0xff] }
 0x594   :  { %4285 = vmatpush3.bf16.msra.mxu1 %v4282_v10  ;;  %v4346_v61 = vpack.c.bf16 %v2634_v1, %v2633_v49  ;;  %v2635_v10 = vld [vmem:[#allocation13 + $0x1b0] sm:$0xff]  ;;  %v2594_v50 = vld [vmem:[#allocation13 + $0x68] sm:$0xff]  ;;  %v2644_v1 = vld [vmem:[#allocation13 + $0x1f8] sm:$0xff] }
 0x595   :  { %4287 = vmatprep.subr.bf16.mxu1 %v4286_v19  ;;  %v4350_v13 = vpack.c.bf16 %v2636_v12, %v2635_v10  ;;  %v4332_v57 = vpack.c.bf16 %v2594_v50, %v2593_v56  ;;  %v2643_v49 = vld [vmem:[#allocation13 + $0x1f0] sm:$0xff]  ;;  %v2930_v12 = vld [vmem:[%s5026_s12] ss:$0 sm:$0xff] }
 0x596   :  { %4313 = vmatpush3.bf16.msra.mxu0 %v4312_v48  ;;  %v2641_v48 = vld [vmem:[#allocation13 + $0x1e0] sm:$0xff]  ;;  %v4366_v4 = vpack.c.bf16 %v2644_v1, %v2643_v49  ;;  %v2651_v50 = vld [vmem:[#allocation13 + $0x230] sm:$0xff]  ;;  %v2660_v1 = vld [vmem:[#allocation13 + $0x278] sm:$0xff] }
 0x597   :  { %4315 = vmatprep.subr.bf16.mxu0 %v4314_v52  ;;  %v4362_v11 = vpack.c.bf16 %v2642_v47, %v2641_v48  ;;  %v2595_v52 = vld [vmem:[#allocation13 + $0x70] sm:$0xff]  ;;  %v2652_v48 = vld [vmem:[#allocation13 + $0x238] sm:$0xff] }
 0x598   :  { %4289 = vmatpush3.bf16.msra.mxu1 %v4286_v19  ;;  %v2605_v19 = vld [vmem:[#allocation13 + $0xc0] sm:$0xff]  ;;  %v4336_v59 = vpack.c.bf16 %v2596_v0, %v2595_v52  ;;  %v4382_v47 = vpack.c.bf16 %v2652_v48, %v2651_v50  ;;  %v2659_v49 = vld [vmem:[#allocation13 + $0x270] sm:$0xff] }
 0x599   :  { %4291 = vmatprep.subr.bf16.mxu1 %v4290_v21  ;;  %v4322_v22 = vpack.c.bf16 %v2606_v20, %v2605_v19  ;;  %v2657_v52 = vld [vmem:[#allocation13 + $0x260] sm:$0xff] }
 0x59a   :  { %4317 = vmatpush3.bf16.msra.mxu0 %v4316_v5  ;;  %v2627_v5 = vld [vmem:[#allocation13 + $0x170] sm:$0xff] }
 0x59b   :  { %4319 = vmatprep.subr.bf16.mxu0 %v4318_v2 }
 0x59c   :  { %4293 = vmatpush3.bf16.msra.mxu1 %v4290_v21  ;;  %v4352_v21 = vpack.c.bf16 %v2620_v17, %v2619_v14 }
 0x59d   :  { %4295 = vmatprep.subr.bf16.mxu1 %v4294_v24 }
 0x59e   :  { %4321 = vmatpush3.bf16.msra.mxu0 %v4320_v39 }
 0x59f   :  { %4323 = vmatprep.subr.bf16.mxu0 %v4322_v22 }
 0x5a0   :  { %4297 = vmatpush3.bf16.msra.mxu1 %v4294_v24  ;;  %v2590_v24 = vld [vmem:[#allocation13 + $0x48] sm:$0xff] }
 0x5a1   :  { %4299 = vmatprep.subr.bf16.mxu1 %v4298_v26  ;;  %v4324_v25 = vpack.c.bf16 %v2590_v24, %v2589_v23 }
 0x5a3   :  { %4325 = vmatpush3.bf16.msra.mxu0 %v4324_v25 }
 0x5a4   :  { %4301 = vmatpush3.bf16.msra.mxu1 %v4298_v26  ;;  %v2638_v26 = vld [vmem:[#allocation13 + $0x1c8] sm:$0xff]  ;;  %4327 = vmatprep.subr.bf16.mxu0 %v4326_v34 }
 0x5a5   :  { %4303 = vmatprep.subr.bf16.mxu1 %v4302_v29 }
 0x5a7   :  { %4329 = vmatpush3.bf16.msra.mxu0 %v4328_v37  ;;  %v2648_v37 = vld [vmem:[#allocation13 + $0x218] sm:$0xff] }
 0x5a8   :  { %4305 = vmatpush3.bf16.msra.mxu1 %v4302_v29  ;;  %v4354_v29 = vpack.c.bf16 %v2638_v26, %v2637_v41 }
 0x5a9   :  { %4339 = vmatprep.subr.bf16.mxu1 %v4338_v40  ;;  %v2623_v40 = vld [vmem:[#allocation13 + $0x150] sm:$0xff] }
 0x5aa   :  { %v4360_v45 = vpack.c.bf16 %v2624_v42, %v2623_v40  ;;  %v4374_v42 = vpack.c.bf16 %v2648_v37, %v2647_v36 }
 0x5ab   :  { %3789 = vmatmul.mubr.f32.vlgmr.msra.gmra.mrb[54].mxu1 %v2220_v30  ;;  %v4356_v30 = vpack.c.bf16 %v2622_v28, %v2621_v27 }
 0x5ac   :  { %4341 = vmatpush3.bf16.msra.mxu1 %v4340_v51  ;;  %v2609_v51 = vld [vmem:[#allocation13 + $0xe0] sm:$0xff] }
 0x5ad   :  { %4343 = vmatprep.subr.bf16.mxu1 %v4342_v60  ;;  %v4330_v55 = vpack.c.bf16 %v2610_v53, %v2609_v51  ;;  %v2626_v60 = vld [vmem:[#allocation13 + $0x168] sm:$0xff] }
 0x5ae   :  { %v4364_v62 = vpack.c.bf16 %v2626_v60, %v2625_v58  ;;  %v2653_v58 = vld [vmem:[#allocation13 + $0x240] sm:$0xff]  ;;  %v2654_v60 = vld [vmem:[#allocation13 + $0x248] sm:$0xff] }
 0x5af   :  { %4331 = vmatprep.subr.bf16.mxu0 %v4330_v55 }
 0x5b0   :  { %4345 = vmatpush3.bf16.msra.mxu1 %v4344_v9  ;;  %v2612_v9 = vld [vmem:[#allocation13 + $0xf8] sm:$0xff]  ;;  %4333 = vmatpush3.bf16.msra.mxu0 %v4332_v57 }
 0x5b1   :  { %4347 = vmatprep.subr.bf16.mxu1 %v4346_v61  ;;  %v4334_v46 = vpack.c.bf16 %v2612_v9, %v2611_v63  ;;  %v2628_v61 = vld [vmem:[#allocation13 + $0x178] sm:$0xff] }
 0x5b2   :  { %v4368_v6 = vpack.c.bf16 %v2628_v61, %v2627_v5  ;;  %v2656_v63 = vld [vmem:[#allocation13 + $0x258] sm:$0xff] }
 0x5b3   :  { %4335 = vmatprep.subr.bf16.mxu0 %v4334_v46  ;;  %v2658_v46 = vld [vmem:[#allocation13 + $0x268] sm:$0xff] }
 0x5b4   :  { %4349 = vmatpush3.bf16.msra.mxu1 %v4348_v54  ;;  %4337 = vmatpush3.bf16.msra.mxu0 %v4336_v59  ;;  %v4370_v54 = vpack.c.bf16 %v2646_v8, %v2645_v7  ;;  %v4394_v0 = vpack.c.bf16 %v2658_v46, %v2657_v52  ;;  %v4398_v59 = vpack.c.bf16 %v2660_v1, %v2659_v49 }
 0x5b5   :  { %4351 = vmatprep.subr.bf16.mxu1 %v4350_v13 }
 0x5b6   :  { %4371 = vmatprep.subr.bf16.mxu0 %v4370_v54 }
 0x5b8   :  { %4353 = vmatpush3.bf16.msra.mxu1 %v4352_v21 }
 0x5b9   :  { %4355 = vmatprep.subr.bf16.mxu1 %v4354_v29 }
 0x5bc   :  { %4357 = vmatpush3.bf16.msra.mxu1 %v4356_v30 }
 0x5bd   :  { %4359 = vmatprep.subr.bf16.mxu1 %v4358_v44  ;;  %v2649_v44 = vld [vmem:[#allocation13 + $0x220] sm:$0xff] }
 0x5c0   :  { %4361 = vmatpush3.bf16.msra.mxu1 %v4360_v45  ;;  %v2650_v45 = vld [vmem:[#allocation13 + $0x228] sm:$0xff] }
 0x5c1   :  { %4363 = vmatprep.subr.bf16.mxu1 %v4362_v11  ;;  %v4378_v55 = vpack.c.bf16 %v2650_v45, %v2649_v44  ;;  %v4386_v11 = vpack.c.bf16 %v2654_v60, %v2653_v58 }
 0x5c4   :  { %4365 = vmatpush3.bf16.msra.mxu1 %v4364_v62  ;;  %v2655_v62 = vld [vmem:[#allocation13 + $0x250] sm:$0xff] }
 0x5c5   :  { %4367 = vmatprep.subr.bf16.mxu1 %v4366_v4  ;;  %v4390_v9 = vpack.c.bf16 %v2656_v63, %v2655_v62 }
 0x5c8   :  { %4369 = vmatpush3.bf16.msra.mxu1 %v4368_v6  ;;  %v2931_v6 = vld [vmem:[%s5028_s14] ss:$0 sm:$0xff]  ;;  %s2904_s14 = sshll.u32 %s4585_s22, 4  ;;  %s2905_s14 = int_to_ptr.vmem [resolvable:$true] %s2904_s14 }
 0x5c9   :  { %s4544_s23 = scalar_lea.vmem %s2905_s14, 256  ;;  %p4549_p7 = scmp.lt.s32.totalorder %s2905_s14, %s2905_s14 }
 0x5ca   :  { %p4545_p6 = scmp.ne.s32.totalorder %s2905_s14, %s4544_s23  ;;  %p4550_p8 = scmp.lt.s32.totalorder %s4544_s23, %s4544_s23 }
 0x5cc   :  { %p4551_p9 = por %p4550_p8, %p4549_p7 }
 0x5ce   :  { %p4552_p10 = pnand %p4551_p9, %p4545_p6 }
 0x65d   :  { %v3431_v2 = vpop.f32.mrb[50].mxu1 }
 0x65e   :  { %v3432_v3 = vpop.f32.mrb[51].mxu1 }
 0x65f   :  { %v3433_v10 = vadd.f32 %v3432_v3, %v3431_v2 }
 0x661   :  { %v2387_v20 = vadd.f32 %v3433_v10, %v2930_v12 }
 0x662   :  { %v3434_v13 = vpop.f32.mrb[52].mxu1  ;;  %v3469_v14 = vpop.f32.mrb[56].mxu0 }
 0x663   :  { %v3435_v17 = vpop.f32.mrb[53].mxu1  ;;  %v3470_v19 = vpop.f32.mrb[57].mxu0 }
 0x664   :  { %v3436_v39 = vadd.f32 %v3435_v17, %v3434_v13  ;;  %v3471_v21 = vadd.f32 %v3470_v19, %v3469_v14 }
 0x666   :  { %v3472_v22 = vpop.f32.mrb[58].mxu0  ;;  %v2462_v23 = vadd.f32 %v3471_v21, %v2387_v20  ;;  %v2392_v41 = vadd.f32 %v3436_v39, %v2930_v12 }
 0x667   :  { %v3473_v24 = vpop.f32.mrb[59].mxu0 }
 0x668   :  { %v3474_v25 = vadd.f32 %v3473_v24, %v3472_v22 }
 0x66a   :  { %v2467_v26 = vadd.f32 %v3474_v25, %v2392_v41 }
 0x67e   :  { %v3790_v28 = vpop.f32.mrb[54].mxu1 }
 0x67f   :  { %v2542_v29 = vadd.f32 %v3790_v28, %v2467_v26  ;;  %v2536_v31 = vpop.f32.mrb[55].mxu1 }
 0x680   :  { %v2537_v32 = vadd.f32 %v2536_v31, %v2462_v23 }
 0x681   :  { %v2546_v34 = vsel %vm4976_vm11, %v2542_v29, 0.0 }
 0x682   :  { %v2548_v18 = vmax.f32 %v2546_v34, 0.0  ;;  %v2545_v33 = vsel %vm4982_vm12, %v2537_v32, 0.0 }
 0x683   :  { %v2547_v35 = vmax.f32 %v2545_v33, 0.0 }
 0x684   :  { %2550 = vst [vmem:[#allocation2 + $0xa] sm:$0xff] %v2548_v18 }
 0x685   :  { %2549 = vst [vmem:[#allocation2 + $0x2] sm:$0xff] %v2547_v35 }
 0x68b   :  { %v2564_v53 = vld [vmem:[#allocation2 + $0xb] sm:$0xff] }
 0x68c   :  { %v2555_v38 = vld [vmem:[#allocation2 + $0x1] sm:$0xff]  ;;  %v2556_v51 = vld [vmem:[#allocation2 + $0x9] sm:$0xff] }
 0x68d   :  { %v2563_v43 = vld [vmem:[#allocation2 + $0x3] sm:$0xff]  ;;  %2732 = vmatprep.mubr.f32.mxu0 %v2555_v38  ;;  %v2568_v4 = vld [vmem:[#allocation2 + $0xc] sm:$0xff] }
 0x68e   :  { %v2551_v40 = vld [vmem:[#allocation2] sm:$0xff]  ;;  %2807 = vmatprep.mubr.f32.mxu1 %v2563_v43  ;;  %v2552_v56 = vld [vmem:[#allocation2 + $0x8] sm:$0xff] }
 0x68f   :  { %2733 = vmatmul.mubr.f32.vlgmr.msra.gmra.mrb[60].mxu0 %v2551_v40  ;;  %2808 = vmatmul.mubr.f32.vlgmr.msra.gmra.mrb[56].mxu1 %v2547_v35  ;;  %v2567_v57 = vld [vmem:[#allocation2 + $0x4] sm:$0xff] }
 0x690   :  { %4373 = vmatpush3.bf16.msra.mxu0 %v4370_v54  ;;  %2737 = vmatprep.mubr.f32.mxu0 %v2556_v51 }
 0x691   :  { %2812 = vmatprep.mubr.f32.mxu1 %v2564_v53  ;;  %4375 = vmatprep.subr.bf16.mxu0 %v4374_v42 }
 0x693   :  { %2738 = vmatmul.mubr.f32.gmra.mrb[62].mxu0 %v2552_v56  ;;  %2813 = vmatmul.mubr.f32.gmra.mrb[58].mxu1 %v2548_v18 }
 0x694   :  { %4377 = vmatpush3.bf16.msra.mxu0 %v4374_v42  ;;  %3823 = vmatprep.mubr.f32.mxu0 %v2567_v57 }
 0x695   :  { %4379 = vmatprep.subr.bf16.mxu0 %v4378_v55 }
 0x698   :  { %4381 = vmatpush3.bf16.msra.mxu0 %v4378_v55 }
 0x699   :  { %4383 = vmatprep.subr.bf16.mxu0 %v4382_v47 }
 0x69c   :  { %4385 = vmatpush3.bf16.msra.mxu0 %v4382_v47 }
 0x69d   :  { %4387 = vmatprep.subr.bf16.mxu0 %v4386_v11 }
 0x6a0   :  { %4389 = vmatpush3.bf16.msra.mxu0 %v4386_v11 }
 0x6a1   :  { %4391 = vmatprep.subr.bf16.mxu0 %v4390_v9 }
 0x6a4   :  { %4393 = vmatpush3.bf16.msra.mxu0 %v4390_v9 }
 0x6a5   :  { %4395 = vmatprep.subr.bf16.mxu0 %v4394_v0 }
 0x6a8   :  { %4397 = vmatpush3.bf16.msra.mxu0 %v4394_v0 }
 0x6a9   :  { %4399 = vmatprep.subr.bf16.mxu0 %v4398_v59 }
 0x6ac   :  { %4401 = vmatpush3.bf16.msra.mxu0 %v4398_v59 }
 0x6af   :  { %3824 = vmatmul.mubr.f32.vlgmr.msra.gmra.mrb[64].mxu0 %v2568_v4 }
 0x762   :  { %v3525_v5 = vpop.f32.mrb[60].mxu0  ;;  %v3563_v61 = vpop.f32.mrb[56].mxu1 }
 0x763   :  { %v3526_v7 = vpop.f32.mrb[61].mxu0  ;;  %v3564_v8 = vpop.f32.mrb[57].mxu1 }
 0x764   :  { %v3527_v54 = vadd.f32 %v3526_v7, %v3525_v5  ;;  %v3565_v2 = vadd.f32 %v3564_v8, %v3563_v61 }
 0x766   :  { %v2735_v3 = vadd.f32 %v3527_v54, %v2931_v6  ;;  %v3528_v10 = vpop.f32.mrb[62].mxu0  ;;  %v3566_v12 = vpop.f32.mrb[58].mxu1 }
 0x767   :  { %v3529_v13 = vpop.f32.mrb[63].mxu0  ;;  %v3567_v14 = vpop.f32.mrb[59].mxu1 }
 0x768   :  { %v3530_v17 = vadd.f32 %v3529_v13, %v3528_v10  ;;  %v3568_v19 = vadd.f32 %v3567_v14, %v3566_v12  ;;  %v2810_v20 = vadd.f32 %v3565_v2, %v2735_v3 }
 0x76a   :  { %v2740_v39 = vadd.f32 %v3530_v17, %v2931_v6 }
 0x76c   :  { %v2815_v21 = vadd.f32 %v3568_v19, %v2740_v39 }
 0x782   :  { %v3825_v22 = vpop.f32.mrb[64].mxu0 }
 0x783   :  { %v2890_v23 = vadd.f32 %v3825_v22, %v2815_v21  ;;  %v2884_v24 = vpop.f32.mrb[65].mxu0 }
 0x784   :  { %v2885_v41 = vadd.f32 %v2884_v24, %v2810_v20 }
 0x785   :  { %v2894_v25 = vsel %vm4976_vm11, %v2890_v23, 0.0 }
 0x786   :  { %v2896_v26 = vadd.f32 %v2894_v25, %v4966_v15  ;;  %v2893_v28 = vsel %vm4982_vm12, %v2885_v41, 0.0 }
 0x787   :  { %v2895_v29 = vadd.f32 %v2893_v28, %v4963_v16 }
 0x788   :  { %2898 = vst [vmem:[#allocation15 + $0x8] sm:$0xff] %v2896_v26 }
 0x789   :  { %2897 = vst [vmem:[#allocation15] sm:$0xff] %v2895_v29 }
 0x78a   :  { %4555 = shalt.err (!%p4552_p10)
}
 0x78b   :  { %s4556_s20 = scalar_lea.hbm %s5029_s15, 256 }
 0x78c   :  { %p4557_p11 = scmp.ne.s32.totalorder %s5029_s15, %s4556_s20  ;;  %p4560_p12 = scmp.lt.u32.totalorder %s4556_s20, %s5029_s15 }
 0x78e   :  { %p4562_p13 = pnand %p4560_p12, %p4557_p11 }
 0x790   :  { %4565 = shalt.err (!%p4562_p13)
}
 0x791   :  { %2910 = dma.vmem_to_hbm [thread:$0]  %s2905_s14, 256, %s5029_s15, [#allocation6], %s4578_s30, %s4578_s30, %s4579_s16  }
 0x792   :  { %4574 = dma.done.wait [#allocation6], 256  }
 0x793   :  { %4575 = vsyncadd [#allocation6], 4294967040 }
 0x794   :  { %2914 = vsyncpa [#allocation5], 1 }
 0x795   :  { %2915 = vsyncpa [#allocation8], 1 }
 0x796   :  { %2916 = vsyncpa [#allocation11], 1 }
 0x797   :  { %2917 = vsyncpa [#allocation14], 1 }
 0x798   :  { %2918 = vsyncpa [#allocation6], 1 }

</bundles_post_ra>
